<compile_context>
chip_gen: v6e
topology: v6e:2x2x1
jax: 0.10.0
libtpu: 0.0.40
codegen_flags: <defaults>
</compile_context>

<pallas_src>
import math

import jax
import jax.numpy as jnp
from jax.experimental import pallas as pl
from jax.experimental.pallas import tpu as pltpu

D_MODEL = 768                     # num_features hard-coded to 768 in the torch module
N_HEADS = 6
HEAD_DIM = D_MODEL // N_HEADS     # 128
D_FF = 1024
N_LAYERS = 2
VOCAB = 128
NUM_CLASSES = 2
C_PAD = 128                       # pad classifier output to a full lane width
RMS_EPS = 1e-6
ROPE_THETA = 10000.0
ROW_TILE = 256                    # M-tile for the dense (B*S, D) kernels


# ---------------------------------------------------------------------------
# Pallas kernels
# ---------------------------------------------------------------------------
def _rmsnorm_f32(x, w):
    var = jnp.mean(x * x, axis=-1, keepdims=True)
    return (x * jax.lax.rsqrt(var + RMS_EPS)) * w


def _norm_qkv_kernel(x_ref, nw_ref, wqkv_ref, o_ref):
    # fused RMSNorm + QKV projection: (tm, D) -> (tm, 3D), bf16 MXU, f32 accum
    xn = _rmsnorm_f32(x_ref[...].astype(jnp.float32), nw_ref[...])
    o_ref[...] = jnp.dot(xn.astype(jnp.bfloat16), wqkv_ref[...],
                         preferred_element_type=jnp.float32).astype(o_ref.dtype)


def _rotate_half(x):
    half = HEAD_DIM // 2
    return jnp.concatenate([-x[:, half:], x[:, :half]], axis=-1)


def _attention_kernel(q_ref, k_ref, v_ref, cos_ref, sin_ref, o_ref):
    # one (batch, head) tile: q/k/v refs are (S, HEAD_DIM), bf16
    cos = cos_ref[...]
    sin = sin_ref[...]
    q = q_ref[...].astype(jnp.float32)
    k = k_ref[...].astype(jnp.float32)
    # RoPE (matches HF rotate_half)
    q = q * cos + _rotate_half(q) * sin
    k = k * cos + _rotate_half(k) * sin
    # contract on the last axes directly (no explicit transpose of k)
    scores = jax.lax.dot_general(
        q.astype(jnp.bfloat16), k.astype(jnp.bfloat16),
        (((1,), (1,)), ((), ())),
        preferred_element_type=jnp.float32) * (1.0 / math.sqrt(HEAD_DIM))
    S = scores.shape[0]
    row = jax.lax.broadcasted_iota(jnp.int32, (S, S), 0)
    col = jax.lax.broadcasted_iota(jnp.int32, (S, S), 1)
    scores = jnp.where(col <= row, scores, -1e30)          # causal mask
    m = jnp.max(scores, axis=-1, keepdims=True)
    e = jnp.exp(scores - m)
    p = e / jnp.sum(e, axis=-1, keepdims=True)
    # NOTE: full (S, S) scores tile — fine for short sequences; a flash-style
    # KV-tiled grid would be needed for S in the multi-K range.
    out = jnp.dot(p.astype(jnp.bfloat16), v_ref[...],
                  preferred_element_type=jnp.float32)
    o_ref[...] = out.astype(o_ref.dtype)


def _proj_residual_kernel(a_ref, w_ref, h_ref, o_ref):
    # fused attention-output projection + residual add
    proj = jnp.dot(a_ref[...], w_ref[...], preferred_element_type=jnp.float32)
    o_ref[...] = (h_ref[...].astype(jnp.float32) + proj).astype(o_ref.dtype)


def _norm_mlp_residual_kernel(h_ref, nw_ref, wgu_ref, wd_ref, o_ref):
    # fused RMSNorm + SwiGLU MLP + residual add
    h = h_ref[...].astype(jnp.float32)
    xn = _rmsnorm_f32(h, nw_ref[...]).astype(jnp.bfloat16)
    gu = jnp.dot(xn, wgu_ref[...], preferred_element_type=jnp.float32)
    g = gu[:, :D_FF]
    u = gu[:, D_FF:]
    act = (g * jax.nn.sigmoid(g)) * u                       # SiLU(gate) * up
    down = jnp.dot(act.astype(jnp.bfloat16), wd_ref[...],
                   preferred_element_type=jnp.float32)
    o_ref[...] = (h + down).astype(o_ref.dtype)


def _gelu_exact(z):
    # exact (erf-based) GELU, matching torch.nn.GELU(approximate='none')
    return 0.5 * z * (1.0 + jax.lax.erf(z * (1.0 / math.sqrt(2.0))))


def _pool_head_kernel(h_ref, nw_ref, w1_ref, b1_ref, w2_ref, b2_ref,
                      feat_ref, logits_ref):
    # fused final RMSNorm + mean-pool over seq + Linear/GELU/Linear classifier
    h = h_ref[...].astype(jnp.float32)                      # (B, S, D)
    hn = _rmsnorm_f32(h, nw_ref[...])                       # (1,1,D) broadcasts
    pooled = jnp.mean(hn, axis=1)                           # (B, D)
    feat_ref[...] = pooled
    z = jnp.dot(pooled.astype(jnp.bfloat16), w1_ref[...],
                preferred_element_type=jnp.float32) + b1_ref[...]
    z = _gelu_exact(z)
    logits_ref[...] = jnp.dot(z.astype(jnp.bfloat16), w2_ref[...],
                              preferred_element_type=jnp.float32) + b2_ref[...]


def _classifier_kernel(x_ref, w1_ref, b1_ref, w2_ref, b2_ref, o_ref):
    # standalone classifier (only_fc path)
    z = jnp.dot(x_ref[...].astype(jnp.bfloat16), w1_ref[...],
                preferred_element_type=jnp.float32) + b1_ref[...]
    z = _gelu_exact(z)
    o_ref[...] = jnp.dot(z.astype(jnp.bfloat16), w2_ref[...],
                         preferred_element_type=jnp.float32) + b2_ref[...]


# ---------------------------------------------------------------------------
# pallas_call wrappers
# ---------------------------------------------------------------------------
def _row_tiled_call(kernel, x, extra_inputs, extra_specs, out_cols,
                    out_dtype=jnp.bfloat16):
    """Tile the M = B*S row axis; weights stay resident (block index (0,0))."""
    M, D = x.shape
    tm = min(M, ROW_TILE)
    grid = (pl.cdiv(M, tm),)
    return pl.pallas_call(
        kernel,
        out_shape=jax.ShapeDtypeStruct((M, out_cols), out_dtype),
        grid=grid,
        in_specs=[pl.BlockSpec((tm, D), lambda i: (i, 0))] + extra_specs,
        out_specs=pl.BlockSpec((tm, out_cols), lambda i: (i, 0)),
        compiler_params=pltpu.CompilerParams(
            dimension_semantics=("parallel",)),
    )(x, *extra_inputs)


def norm_qkv(x, norm_w, w_qkv):
    D = x.shape[1]
    N = w_qkv.shape[1]
    return _row_tiled_call(
        _norm_qkv_kernel, x,
        [norm_w, w_qkv],
        [pl.BlockSpec((1, D), lambda i: (0, 0)),
         pl.BlockSpec((D, N), lambda i: (0, 0))],
        out_cols=N)


def attention(qkv, cos, sin):
    # qkv: (B, S, 3*D_MODEL) bf16, heads laid out contiguously per q/k/v block
    B, S, _ = qkv.shape

    def head_spec(block_offset):
        return pl.BlockSpec((None, S, HEAD_DIM),
                            lambda b, h, _o=block_offset: (b, 0, _o + h))

    rope_spec = pl.BlockSpec((S, HEAD_DIM), lambda b, h: (0, 0))
    return pl.pallas_call(
        _attention_kernel,
        out_shape=jax.ShapeDtypeStruct((B, S, D_MODEL), jnp.bfloat16),
        grid=(B, N_HEADS),
        in_specs=[head_spec(0),                 # q, head h
                  head_spec(N_HEADS),           # k, head h
                  head_spec(2 * N_HEADS),       # v, head h
                  rope_spec, rope_spec],
        out_specs=pl.BlockSpec((None, S, HEAD_DIM), lambda b, h: (b, 0, h)),
        compiler_params=pltpu.CompilerParams(
            dimension_semantics=("parallel", "parallel")),
    )(qkv, qkv, qkv, cos, sin)


def proj_residual(a, wo, h):
    D = a.shape[1]
    return _row_tiled_call(
        _proj_residual_kernel, a,
        [wo, h],
        [pl.BlockSpec((D, D), lambda i: (0, 0)),
         pl.BlockSpec((min(a.shape[0], ROW_TILE), D), lambda i: (i, 0))],
        out_cols=D)


def norm_mlp_residual(h, norm_w, w_gu, wd):
    D = h.shape[1]
    return _row_tiled_call(
        _norm_mlp_residual_kernel, h,
        [norm_w, w_gu, wd],
        [pl.BlockSpec((1, D), lambda i: (0, 0)),
         pl.BlockSpec((D, 2 * D_FF), lambda i: (0, 0)),
         pl.BlockSpec((D_FF, D), lambda i: (0, 0))],
        out_cols=D)


def pool_and_classify(h, norm_w3, w1, b1, w2p, b2p):
    B, S, D = h.shape
    feat, logits_pad = pl.pallas_call(
        _pool_head_kernel,
        out_shape=(jax.ShapeDtypeStruct((B, D), jnp.float32),
                   jax.ShapeDtypeStruct((B, C_PAD), jnp.float32)),
        grid=(1,),
        in_specs=[pl.BlockSpec((B, S, D), lambda i: (0, 0, 0)),
                  pl.BlockSpec((1, 1, D), lambda i: (0, 0, 0)),
                  pl.BlockSpec((D, D), lambda i: (0, 0)),
                  pl.BlockSpec((1, D), lambda i: (0, 0)),
                  pl.BlockSpec((D, C_PAD), lambda i: (0, 0)),
                  pl.BlockSpec((1, C_PAD), lambda i: (0, 0))],
        out_specs=[pl.BlockSpec((B, D), lambda i: (0, 0)),
                   pl.BlockSpec((B, C_PAD), lambda i: (0, 0))],
    )(h, norm_w3, w1, b1, w2p, b2p)
    return feat, logits_pad[:, :NUM_CLASSES]


def classify(feat, w1, b1, w2p, b2p):
    B, D = feat.shape
    logits_pad = pl.pallas_call(
        _classifier_kernel,
        out_shape=jax.ShapeDtypeStruct((B, C_PAD), jnp.float32),
        grid=(1,),
        in_specs=[pl.BlockSpec((B, D), lambda i: (0, 0)),
                  pl.BlockSpec((D, D), lambda i: (0, 0)),
                  pl.BlockSpec((1, D), lambda i: (0, 0)),
                  pl.BlockSpec((D, C_PAD), lambda i: (0, 0)),
                  pl.BlockSpec((1, C_PAD), lambda i: (0, 0))],
        out_specs=pl.BlockSpec((B, C_PAD), lambda i: (0, 0)),
    )(feat, w1, b1, w2p, b2p)
    return logits_pad[:, :NUM_CLASSES]


# ---------------------------------------------------------------------------
# Model glue (parameter setup, reshapes, forward orchestration)
# ---------------------------------------------------------------------------
def rope_tables(S):
    inv_freq = 1.0 / (ROPE_THETA ** (
        jnp.arange(0, HEAD_DIM, 2, dtype=jnp.float32) / HEAD_DIM))
    pos = jnp.arange(S, dtype=jnp.float32)
    freqs = pos[:, None] * inv_freq[None, :]              # (S, HEAD_DIM//2)
    emb = jnp.concatenate([freqs, freqs], axis=-1)        # (S, HEAD_DIM)
    return jnp.cos(emb), jnp.sin(emb)


def init_params(key):
    # deterministic synthetic weights (no checkpoint load / LoRA)
    def nrm(k, shape, scale=0.02):
        return scale * jax.random.normal(k, shape, dtype=jnp.float32)

    keys = jax.random.split(key, 2 + N_LAYERS)
    params = {
        'embed': nrm(keys[0], (VOCAB, D_MODEL)).astype(jnp.bfloat16),
        'final_norm3': jnp.ones((1, 1, D_MODEL), jnp.float32),
        'layers': [],
    }
    for i in range(N_LAYERS):
        ks = jax.random.split(keys[1 + i], 7)
        wq = nrm(ks[0], (D_MODEL, D_MODEL))
        wk = nrm(ks[1], (D_MODEL, D_MODEL))
        wv = nrm(ks[2], (D_MODEL, D_MODEL))
        wg = nrm(ks[4], (D_MODEL, D_FF))
        wu = nrm(ks[5], (D_MODEL, D_FF))
        params['layers'].append({
            'attn_norm': jnp.ones((1, D_MODEL), jnp.float32),
            # fused QKV weight: columns = [q heads | k heads | v heads]
            'w_qkv': jnp.concatenate([wq, wk, wv], axis=1).astype(jnp.bfloat16),
            'wo': nrm(ks[3], (D_MODEL, D_MODEL)).astype(jnp.bfloat16),
            'mlp_norm': jnp.ones((1, D_MODEL), jnp.float32),
            # fused gate/up weight: columns = [gate | up]
            'w_gu': jnp.concatenate([wg, wu], axis=1).astype(jnp.bfloat16),
            'wd': nrm(ks[6], (D_FF, D_MODEL)).astype(jnp.bfloat16),
        })
    kc = jax.random.split(keys[1 + N_LAYERS], 2)
    # classifier = Linear(768, 768) -> GELU -> Linear(768, num_classes)
    params['cls_w1'] = nrm(kc[0], (D_MODEL, D_MODEL)).astype(jnp.bfloat16)
    params['cls_b1'] = jnp.zeros((1, D_MODEL), jnp.float32)
    w2 = nrm(kc[1], (D_MODEL, NUM_CLASSES))
    params['cls_w2p'] = jnp.pad(
        w2, ((0, 0), (0, C_PAD - NUM_CLASSES))).astype(jnp.bfloat16)
    params['cls_b2p'] = jnp.zeros((1, C_PAD), jnp.float32)
    return params


def llama_backbone(params, input_ids):
    B, S = input_ids.shape
    M = B * S
    # token embedding gather done as JAX glue (data-dependent gather)
    embed = jnp.take(params['embed'], input_ids, axis=0)    # (B, S, D) bf16
    h = embed.reshape(M, D_MODEL)
    cos, sin = rope_tables(S)

    for layer in params['layers']:
        qkv = norm_qkv(h, layer['attn_norm'], layer['w_qkv'])      # (M, 3D)
        a = attention(qkv.reshape(B, S, 3 * D_MODEL), cos, sin)    # (B, S, D)
        h = proj_residual(a.reshape(M, D_MODEL), layer['wo'], h)   # (M, D)
        h = norm_mlp_residual(h, layer['mlp_norm'],
                              layer['w_gu'], layer['wd'])          # (M, D)
    return h.reshape(B, S, D_MODEL), embed


def classification_llama_forward(params, x, only_fc=False, only_feat=False,
                                 return_embed=False):
    """Mirrors ClassificationLlama.forward.

    x: int32 token ids (B, S) for the full path, or float features (B, 768)
       when only_fc=True.
    """
    if only_fc:
        return classify(x, params['cls_w1'], params['cls_b1'],
                        params['cls_w2p'], params['cls_b2p'])
    h, embed = llama_backbone(params, x)
    # Dropout(p=0.1) is the identity at inference (eval mode) — applied as such.
    feat, logits = pool_and_classify(
        h, params['final_norm3'], params['cls_w1'], params['cls_b1'],
        params['cls_w2p'], params['cls_b2p'])
    if only_feat:
        return feat
    result = {'logits': logits, 'feat': feat}
    if return_embed:
        result['embed'] = embed
    return result


if __name__ == "__main__":
    key = jax.random.PRNGKey(0)
    kp, kx = jax.random.split(key)
    params = init_params(kp)

    B, S = 2, 8
    input_ids = jax.random.randint(kx, (B, S), 0, VOCAB, dtype=jnp.int32)

    out = classification_llama_forward(params, input_ids)
    jax.block_until_ready(out['logits'])
    jax.block_until_ready(out['feat'])
    assert out['logits'].shape == (B, NUM_CLASSES)
    assert out['feat'].shape == (B, D_MODEL)

    # also exercise the only_fc / only_feat paths once
    feat_only = classification_llama_forward(params, input_ids, only_feat=True)
    logits_fc = classification_llama_forward(params, feat_only, only_fc=True)
    jax.block_until_ready(logits_fc)
    assert logits_fc.shape == (B, NUM_CLASSES)

    print("KERNEL_OK")
</pallas_src>

<mosaic_0001>
module attributes {stable_mosaic.version = 11 : i64} {
  func.func @_norm_qkv_kernel(%arg0: i32, %arg1: memref<16x768xbf16, #tpu.memory_space<vmem>>, %arg2: memref<1x768xf32, #tpu.memory_space<vmem>>, %arg3: memref<768x2304xbf16, #tpu.memory_space<vmem>>, %arg4: memref<16x2304xbf16, #tpu.memory_space<vmem>>) attributes {dimension_semantics = [#tpu.dimension_semantics<parallel>], iteration_bounds = array<i64: 1>, scalar_prefetch = 0 : i64, scratch_operands = 0 : i64, tpu.core_type = #tpu.core_type<tc>, window_params = [{transform_indices = @transform_0, window_bounds = array<i64: 16, 768>}, {pipeline_mode = #tpu.pipeline_mode<synchronous>, transform_indices = @transform_1, window_bounds = array<i64: 1, 768>}, {pipeline_mode = #tpu.pipeline_mode<synchronous>, transform_indices = @transform_2, window_bounds = array<i64: 768, 2304>}, {transform_indices = @transform_3, window_bounds = array<i64: 16, 2304>}]} {
    %c0 = arith.constant 0 : index
    %c0_0 = arith.constant 0 : index
    %0 = vector.load %arg1[%c0, %c0_0] : memref<16x768xbf16, #tpu.memory_space<vmem>>, vector<16x768xbf16>
    %1 = arith.extf %0 : vector<16x768xbf16> to vector<16x768xf32>
    %c0_1 = arith.constant 0 : index
    %c0_2 = arith.constant 0 : index
    %2 = vector.load %arg2[%c0_1, %c0_2] : memref<1x768xf32, #tpu.memory_space<vmem>>, vector<1x768xf32>
    %3 = arith.mulf %1, %1 : vector<16x768xf32>
    %cst = arith.constant dense<0.000000e+00> : vector<16xf32>
    %4 = vector.multi_reduction <add>, %3, %cst [1] : vector<16x768xf32> to vector<16xf32>
    %5 = vector.shape_cast %4 : vector<16xf32> to vector<16x1xf32>
    %cst_3 = arith.constant 7.680000e+02 : f32
    %6 = vector.broadcast %cst_3 : f32 to vector<16x1xf32>
    %7 = arith.divf %5, %6 : vector<16x1xf32>
    %cst_4 = arith.constant 9.99999997E-7 : f32
    %8 = vector.broadcast %cst_4 : f32 to vector<16x1xf32>
    %9 = arith.addf %7, %8 : vector<16x1xf32>
    %10 = math.rsqrt %9 : vector<16x1xf32>
    %11 = vector.broadcast %10 : vector<16x1xf32> to vector<16x768xf32>
    %12 = arith.mulf %1, %11 : vector<16x768xf32>
    %13 = vector.broadcast %2 : vector<1x768xf32> to vector<16x768xf32>
    %14 = arith.mulf %12, %13 : vector<16x768xf32>
    %15 = arith.truncf %14 : vector<16x768xf32> to vector<16x768xbf16>
    %c0_5 = arith.constant 0 : index
    %c0_6 = arith.constant 0 : index
    %16 = vector.load %arg3[%c0_5, %c0_6] : memref<768x2304xbf16, #tpu.memory_space<vmem>>, vector<768x2304xbf16>
    %cst_7 = arith.constant dense<0.000000e+00> : vector<16x2304xf32>
    %17 = tpu.matmul %15, %16, %cst_7 {dimension_numbers = #tpu.dot_dimension_numbers<[1], [0], [0], [1], [0, 0, 1, 1], [], []>} : vector<16x768xbf16>, vector<768x2304xbf16>, vector<16x2304xf32> -> vector<16x2304xf32>
    %18 = arith.truncf %17 : vector<16x2304xf32> to vector<16x2304xbf16>
    %c0_8 = arith.constant 0 : index
    %c0_9 = arith.constant 0 : index
    %19 = vector.load %arg4[%c0_8, %c0_9] : memref<16x2304xbf16, #tpu.memory_space<vmem>>, vector<16x2304xbf16>
    tpu.vector_store %arg4[%c0_8, %c0_9], %18 {strides = array<i32>} : memref<16x2304xbf16, #tpu.memory_space<vmem>>, vector<16x2304xbf16>,
    return
  }
  func.func @transform_0(%arg0: i32) -> (i32, i32) {
    %c0_i32 = arith.constant 0 : i32
    %c0_i32_0 = arith.constant 0 : i32
    return %arg0, %c0_i32 : i32, i32
  }
  func.func @transform_1(%arg0: i32) -> (i32, i32) {
    %c0_i32 = arith.constant 0 : i32
    %c0_i32_0 = arith.constant 0 : i32
    %c0_i32_1 = arith.constant 0 : i32
    return %c0_i32, %c0_i32_0 : i32, i32
  }
  func.func @transform_2(%arg0: i32) -> (i32, i32) {
    %c0_i32 = arith.constant 0 : i32
    %c0_i32_0 = arith.constant 0 : i32
    %c0_i32_1 = arith.constant 0 : i32
    return %c0_i32, %c0_i32_0 : i32, i32
  }
  func.func @transform_3(%arg0: i32) -> (i32, i32) {
    %c0_i32 = arith.constant 0 : i32
    %c0_i32_0 = arith.constant 0 : i32
    return %arg0, %c0_i32 : i32, i32
  }
}

</mosaic_0001>

<bundles_post_ra>
// kernel: tpu_custom_call.1
= control target key start
LH: loop header
LB: loop body
LE: loop exit
PB: predicated region body
PF: predicated region fallthrough
CT: control target
= control target key end

     0   :  { %8 = vsyncpa [#allocation3], 0  ;;  %s9142_s0 = inlined_call_operand.hbm [shape: bf16[16,768], index: 0, kind: input, shape index: {}]   ;;  %s9143_s1 = inlined_call_operand.hbm [shape: f32[1,768], index: 1, kind: input, shape index: {}]   ;;  %s9144_s2 = inlined_call_operand.hbm [shape: bf16[768,2304], index: 2, kind: input, shape index: {}]   ;;  %s9145_s3 = inlined_call_operand.hbm [shape: bf16[16,2304], index: 3, kind: output, shape index: {}]  }
   0x1   :  { %9 = vsyncpa [#allocation6], 0 }
   0x2   :  { %10 = vsyncpa [#allocation4], 0  ;;  %s8950_s12 = smov [#allocation5]   ;;  %s8951_s14 = smov [#allocation2]  }
   0x3   :  { %s29_s13 = sshll.u32 %s8950_s12, 4  ;;  %s16_s15 = sshll.u32 %s8951_s14, 4  ;;  %s30_s13 = int_to_ptr.vmem [resolvable:$true] %s29_s13  ;;  %s17_s15 = int_to_ptr.vmem [resolvable:$true] %s16_s15 }
   0x4   :  { %s8872_s16 = scalar_lea.vmem %s30_s13, 96  ;;  %p8877_p1 = scmp.lt.s32.totalorder %s30_s13, %s30_s13 }
   0x5   :  { %p8873_p0 = scmp.ne.s32.totalorder %s30_s13, %s8872_s16  ;;  %p8878_p2 = scmp.lt.s32.totalorder %s8872_s16, %s8872_s16 }
   0x7   :  { %p8879_p3 = por %p8878_p2, %p8877_p1 }
   0x9   :  { %p8880_p4 = pnand %p8879_p3, %p8873_p0 }
   0xb   :  { %8883 = shalt.err (!%p8880_p4)
}
   0xc   :  { %32 = dma.hbm_to_vmem [thread:$0]  %s9143_s1, 96, %s30_s13, [#allocation6]  }
   0xd   :  { %s8892_s19 = scalar_lea.vmem %s17_s15, 768  ;;  %p8897_p6 = scmp.lt.s32.totalorder %s17_s15, %s17_s15 }
   0xe   :  { %p8893_p5 = scmp.ne.s32.totalorder %s17_s15, %s8892_s19  ;;  %p8898_p7 = scmp.lt.s32.totalorder %s8892_s19, %s8892_s19 }
  0x10   :  { %p8899_p8 = por %p8898_p7, %p8897_p6 }
  0x12   :  { %p8900_p9 = pnand %p8899_p8, %p8893_p5 }
  0x14   :  { %8903 = shalt.err (!%p8900_p9)
}
  0x15   :  { %s8952_s20 = smov 384   ;;  %s8953_s21 = smov 24  }
  0x16   :  { %22 = dma.hbm_to_vmem [thread:$0]  %s9142_s0, 768, %s17_s15, [#allocation3], %s8952_s20, %s8952_s20, %s8953_s21  }
  0x17   :  { %s8954_s24 = smov [#allocation7]  }
  0x18   :  { %s38_s25 = sshll.u32 %s8954_s24, 4  ;;  %s39_s25 = int_to_ptr.vmem [resolvable:$true] %s38_s25 }
  0x19   :  { %s8912_s26 = scalar_lea.vmem %s39_s25, 110592  ;;  %p8917_p11 = scmp.lt.s32.totalorder %s39_s25, %s39_s25 }
  0x1a   :  { %p8913_p10 = scmp.ne.s32.totalorder %s39_s25, %s8912_s26  ;;  %p8918_p12 = scmp.lt.s32.totalorder %s8912_s26, %s8912_s26 }
  0x1c   :  { %p8919_p13 = por %p8918_p12, %p8917_p11 }
  0x1e   :  { %p8920_p0 = pnand %p8919_p13, %p8913_p10 }
  0x20   :  { %8923 = shalt.err (!%p8920_p0)
}
  0x21   :  { %s8955_s1 = smov 1152   ;;  %s8956_s27 = smov 72  }
  0x22   :  { %44 = dma.hbm_to_vmem [thread:$0]  %s9144_s2, 110592, %s39_s25, [#allocation6], %s8955_s1, %s8955_s1, %s8956_s27  }
  0x23   :  { %8944 = dma.done.wait [#allocation3], 768  }
  0x24   :  { %8945 = vsyncadd [#allocation3], 4294966528 }
  0x25   :  { %8946 = dma.done.wait [#allocation6], 110688  }
  0x26   :  { %8947 = vsyncadd [#allocation6], 4294856608  ;;  %v54_v0 = vld [vmem:[#allocation2] sm:$0xff]  ;;  %v55_v1 = vld [vmem:[#allocation2 + $0x8] sm:$0xff]  ;;  %s8957_s0 = smov [#allocation8]  }
  0x27   :  { %v56_v2 = vld [vmem:[#allocation2 + $0x10] sm:$0xff]  ;;  %v8990_v3 = vunpack.c.l.bf16 %v54_v0  ;;  %v8992_v4 = vunpack.c.h.bf16 %v54_v0  ;;  %v8994_v5 = vunpack.c.l.bf16 %v55_v1  ;;  %v8996_v6 = vunpack.c.h.bf16 %v55_v1  ;;  %v57_v7 = vld [vmem:[#allocation2 + $0x18] sm:$0xff]  ;;  %v58_v8 = vld [vmem:[#allocation2 + $0x20] sm:$0xff]  ;;  %s6643_s2 = sshll.u32 %s8957_s0, 4  ;;  %s6644_s2 = int_to_ptr.vmem [resolvable:$true] %s6643_s2 }
  0x28   :  { %v59_v9 = vld [vmem:[#allocation2 + $0x28] sm:$0xff]  ;;  %v8998_v10 = vunpack.c.l.bf16 %v57_v7  ;;  %v9000_v11 = vunpack.c.h.bf16 %v57_v7  ;;  %v9002_v13 = vunpack.c.l.bf16 %v56_v2  ;;  %v9010_v18 = vunpack.c.l.bf16 %v58_v8  ;;  %v7570_v26 = vld [vmem:[#allocation7 + $0x364] ss:$72 sps:$4 sm:$0xff]   ;;  %v7574_v31 = vld [vmem:[#allocation7 + $0x360] ss:$72 sps:$4 sm:$0xff]   ;;  %s8924_s30 = scalar_lea.vmem %s6644_s2, 2304  ;;  %p8929_p2 = scmp.lt.s32.totalorder %s6644_s2, %s6644_s2 }
  0x29   :  { %v7564_v12 = vld [vmem:[#allocation7 + $0x3f4] ss:$72 sps:$4 sm:$0xff]   ;;  %v73_v14 = vmul.f32 %v8990_v3, %v8990_v3  ;;  %v74_v15 = vmul.f32 %v8992_v4, %v8992_v4  ;;  %v75_v16 = vmul.f32 %v8994_v5, %v8994_v5  ;;  %v9012_v19 = vunpack.c.h.bf16 %v58_v8  ;;  %v7568_v20 = vld [vmem:[#allocation7 + $0x3f0] ss:$72 sps:$4 sm:$0xff]   ;;  %v7572_v30 = vld [vmem:[#allocation7 + $0xc64] ss:$72 sps:$4 sm:$0xff]   ;;  %p8925_p1 = scmp.ne.s32.totalorder %s6644_s2, %s8924_s30  ;;  %p8930_p3 = scmp.lt.s32.totalorder %s8924_s30, %s8924_s30 }
  0x2a   :  { %v7566_v17 = vld [vmem:[#allocation7 + $0xcf4] ss:$72 sps:$4 sm:$0xff]   ;;  %5351 = vmatprep.subr.bf16.mxu0 %v7564_v12  ;;  %v7569_v21 = vld [vmem:[#allocation7 + $0xcf0] ss:$72 sps:$4 sm:$0xff]   ;;  %v9014_v22 = vunpack.c.h.bf16 %v56_v2  ;;  %v76_v23 = vmul.f32 %v8996_v6, %v8996_v6  ;;  %v79_v25 = vmul.f32 %v8998_v10, %v8998_v10  ;;  %v9020_v27 = vunpack.c.l.bf16 %v59_v9  ;;  %v7575_v34 = vld [vmem:[#allocation7 + $0xc60] ss:$72 sps:$4 sm:$0xff]  }
  0x2b   :  { %v85_v24 = vadd.f32 %v74_v15, %v73_v14  ;;  %5394 = vmatprep.subr.bf16.mxu1 %v7566_v17  ;;  %v80_v28 = vmul.f32 %v9000_v11, %v9000_v11  ;;  %v81_v29 = vmul.f32 %v9010_v18, %v9010_v18  ;;  %5352 = vmatpush1.bf16.msra.mxu0 %v7568_v20  ;;  %v9028_v35 = vunpack.c.h.bf16 %v59_v9  ;;  %v7576_v38 = vld [vmem:[#allocation7 + $0x2d4] ss:$72 sps:$4 sm:$0xff]   ;;  %v7580_v42 = vld [vmem:[#allocation7 + $0x2d0] ss:$72 sps:$4 sm:$0xff]   ;;  %v7582_v47 = vld [vmem:[#allocation7 + $0x244] ss:$72 sps:$4 sm:$0xff]   ;;  %p8931_p4 = por %p8930_p3, %p8929_p2 }
  0x2c   :  { %5395 = vmatpush1.bf16.msra.mxu1 %v7569_v21  ;;  %v77_v32 = vmul.f32 %v9002_v13, %v9002_v13  ;;  %5353 = vmatprep.subr.bf16.mxu0 %v7570_v26  ;;  %v82_v36 = vmul.f32 %v9012_v19, %v9012_v19  ;;  %v78_v39 = vmul.f32 %v9014_v22, %v9014_v22  ;;  %v7578_v41 = vld [vmem:[#allocation7 + $0xbd4] ss:$72 sps:$4 sm:$0xff]   ;;  %v7581_v45 = vld [vmem:[#allocation7 + $0xbd0] ss:$72 sps:$4 sm:$0xff]   ;;  %v7584_v50 = vld [vmem:[#allocation7 + $0xb44] ss:$72 sps:$4 sm:$0xff]  }
  0x2d   :  { %v86_v33 = vadd.f32 %v85_v24, %v75_v16  ;;  %v92_v37 = vadd.f32 %v80_v28, %v79_v25  ;;  %5396 = vmatprep.subr.bf16.mxu1 %v7572_v30  ;;  %v83_v43 = vmul.f32 %v9020_v27, %v9020_v27  ;;  %v84_v48 = vmul.f32 %v9028_v35, %v9028_v35  ;;  %v7586_v53 = vld [vmem:[#allocation7 + $0x240] ss:$72 sps:$4 sm:$0xff]   ;;  %v7588_v55 = vld [vmem:[#allocation7 + $0x1b4] ss:$72 sps:$4 sm:$0xff]   ;;  %v7592_v58 = vld [vmem:[#allocation7 + $0x1b0] ss:$72 sps:$4 sm:$0xff]   ;;  %p8932_p5 = pnand %p8931_p4, %p8925_p1 }
  0x2e   :  { %v7587_v54 = vld [vmem:[#allocation7 + $0xb40] ss:$72 sps:$4 sm:$0xff]   ;;  %v7590_v57 = vld [vmem:[#allocation7 + $0xab4] ss:$72 sps:$4 sm:$0xff]   ;;  %v7593_v59 = vld [vmem:[#allocation7 + $0xab0] ss:$72 sps:$4 sm:$0xff]   ;;  %v119_v28 = vlaneseq }
  0x2f   :  { %v87_v40 = vadd.f32 %v86_v33, %v76_v23  ;;  %v93_v44 = vadd.f32 %v92_v37, %v81_v29  ;;  %5354 = vmatpush1.bf16.msra.mxu0 %v7574_v31  ;;  %v7594_v60 = vld [vmem:[#allocation7 + $0x124] ss:$72 sps:$4 sm:$0xff]   ;;  %v7598_v62 = vld [vmem:[#allocation7 + $0x120] ss:$72 sps:$4 sm:$0xff]   ;;  %v7600_v0 = vld [vmem:[#allocation7 + $0x94] ss:$72 sps:$4 sm:$0xff]  }
  0x30   :  { %5397 = vmatpush1.bf16.msra.mxu1 %v7575_v34  ;;  %5355 = vmatprep.subr.bf16.mxu0 %v7576_v38  ;;  %v7596_v61 = vld [vmem:[#allocation7 + $0xa24] ss:$72 sps:$4 sm:$0xff]   ;;  %v7599_v63 = vld [vmem:[#allocation7 + $0xa20] ss:$72 sps:$4 sm:$0xff]   ;;  %v7602_v1 = vld [vmem:[#allocation7 + $0x994] ss:$72 sps:$4 sm:$0xff]  }
  0x31   :  { %v88_v46 = vadd.f32 %v87_v40, %v77_v32  ;;  %5398 = vmatprep.subr.bf16.mxu1 %v7578_v41  ;;  %v94_v49 = vadd.f32 %v93_v44, %v82_v36  ;;  %v7604_v2 = vld [vmem:[#allocation7 + $0x90] ss:$72 sps:$4 sm:$0xff]   ;;  %v7606_v8 = vld [vmem:[#allocation7 + $0x4] ss:$72 sps:$4 sm:$0xff]   ;;  %v7610_v12 = vld [vmem:[#allocation7] ss:$72 sps:$4 sm:$0xff]  }
  0x32   :  { %v7605_v7 = vld [vmem:[#allocation7 + $0x990] ss:$72 sps:$4 sm:$0xff]   ;;  %v7608_v9 = vld [vmem:[#allocation7 + $0x904] ss:$72 sps:$4 sm:$0xff]   ;;  %v7611_v14 = vld [vmem:[#allocation7 + $0x900] ss:$72 sps:$4 sm:$0xff]  }
  0x33   :  { %v89_v51 = vadd.f32 %v88_v46, %v78_v39  ;;  %v95_v52 = vadd.f32 %v94_v49, %v83_v43  ;;  %5356 = vmatpush1.bf16.msra.mxu0 %v7580_v42  ;;  %v7612_v15 = vld [vmem:[#allocation7 + $0x874] ss:$72 sps:$4 sm:$0xff]   ;;  %v7616_v17 = vld [vmem:[#allocation7 + $0x870] ss:$72 sps:$4 sm:$0xff]   ;;  %v7618_v21 = vld [vmem:[#allocation7 + $0x7e4] ss:$72 sps:$4 sm:$0xff]  }
  0x34   :  { %5399 = vmatpush1.bf16.msra.mxu1 %v7581_v45  ;;  %5357 = vmatprep.subr.bf16.mxu0 %v7582_v47  ;;  %v7614_v16 = vld [vmem:[#allocation7 + $0x1174] ss:$72 sps:$4 sm:$0xff]   ;;  %v7617_v20 = vld [vmem:[#allocation7 + $0x1170] ss:$72 sps:$4 sm:$0xff]   ;;  %v7620_v23 = vld [vmem:[#allocation7 + $0x10e4] ss:$72 sps:$4 sm:$0xff]  }
  0x35   :  { %90 = vadd.xlane.f32.xlu0 %v89_v51  ;;  %v96_v56 = vadd.f32 %v95_v52, %v84_v48  ;;  %5400 = vmatprep.subr.bf16.mxu1 %v7584_v50  ;;  %v7622_v24 = vld [vmem:[#allocation7 + $0x7e0] ss:$72 sps:$4 sm:$0xff]   ;;  %v7624_v26 = vld [vmem:[#allocation7 + $0x754] ss:$72 sps:$4 sm:$0xff]   ;;  %v7628_v30 = vld [vmem:[#allocation7 + $0x750] ss:$72 sps:$4 sm:$0xff]  }
  0x36   :  { %v7623_v25 = vld [vmem:[#allocation7 + $0x10e0] ss:$72 sps:$4 sm:$0xff]   ;;  %v7626_v29 = vld [vmem:[#allocation7 + $0x1054] ss:$72 sps:$4 sm:$0xff]   ;;  %v7629_v31 = vld [vmem:[#allocation7 + $0x1050] ss:$72 sps:$4 sm:$0xff]  }
  0x37   :  { %5358 = vmatpush1.bf16.msra.mxu0 %v7586_v53  ;;  %v7630_v32 = vld [vmem:[#allocation7 + $0x6c4] ss:$72 sps:$4 sm:$0xff]   ;;  %v9038_v33 = vshrl.u32 %v119_v28, 7  ;;  %v7634_v36 = vld [vmem:[#allocation7 + $0x6c0] ss:$72 sps:$4 sm:$0xff]  }
  0x38   :  { %5401 = vmatpush1.bf16.msra.mxu1 %v7587_v54  ;;  %5359 = vmatprep.subr.bf16.mxu0 %v7588_v55  ;;  %v7632_v34 = vld [vmem:[#allocation7 + $0xfc4] ss:$72 sps:$4 sm:$0xff]   ;;  %v7635_v37 = vld [vmem:[#allocation7 + $0xfc0] ss:$72 sps:$4 sm:$0xff]   ;;  %v9040_v38 = vld [vmem:[#allocation5] sm:$0x3f] }
  0x39   :  { %97 = vadd.xlane.f32.xlu0 %v96_v56  ;;  %5402 = vmatprep.subr.bf16.mxu1 %v7590_v57  ;;  %v7636_v39 = vld [vmem:[#allocation7 + $0x634] ss:$72 sps:$4 sm:$0xff]   ;;  %v137_v41 = vsub.s32 4, %v9038_v33  ;;  %v7640_v42 = vld [vmem:[#allocation7 + $0x630] ss:$72 sps:$4 sm:$0xff]  }
  0x3a   :  { %v7638_v40 = vld [vmem:[#allocation7 + $0xf34] ss:$72 sps:$4 sm:$0xff]   ;;  %v7641_v43 = vld [vmem:[#allocation7 + $0xf30] ss:$72 sps:$4 sm:$0xff]   ;;  %v7642_v45 = vld [vmem:[#allocation7 + $0x5a4] ss:$72 sps:$4 sm:$0xff]  }
  0x3b   :  { %5360 = vmatpush1.bf16.msra.mxu0 %v7592_v58  ;;  %v9044_v44 = vrot.slane %v9040_v38, %v137_v41  ;;  %v7644_v46 = vld [vmem:[#allocation7 + $0xea4] ss:$72 sps:$4 sm:$0xff]   ;;  %v7646_v47 = vld [vmem:[#allocation7 + $0x5a0] ss:$72 sps:$4 sm:$0xff]   ;;  %v7648_v49 = vld [vmem:[#allocation7 + $0x514] ss:$72 sps:$4 sm:$0xff]  }
  0x3c   :  { %5403 = vmatpush1.bf16.msra.mxu1 %v7593_v59  ;;  %5361 = vmatprep.subr.bf16.mxu0 %v7594_v60  ;;  %v7647_v48 = vld [vmem:[#allocation7 + $0xea0] ss:$72 sps:$4 sm:$0xff]   ;;  %v7650_v50 = vld [vmem:[#allocation7 + $0xe14] ss:$72 sps:$4 sm:$0xff]   ;;  %v7652_v51 = vld [vmem:[#allocation7 + $0x510] ss:$72 sps:$4 sm:$0xff]  }
  0x3d   :  { %5404 = vmatprep.subr.bf16.mxu1 %v7596_v61  ;;  %v7653_v52 = vld [vmem:[#allocation7 + $0xe10] ss:$72 sps:$4 sm:$0xff]   ;;  %v7654_v53 = vld [vmem:[#allocation7 + $0x484] ss:$72 sps:$4 sm:$0xff]   ;;  %v7658_v55 = vld [vmem:[#allocation7 + $0x480] ss:$72 sps:$4 sm:$0xff]  }
  0x3e   :  { %v7656_v54 = vld [vmem:[#allocation7 + $0xd84] ss:$72 sps:$4 sm:$0xff]   ;;  %v7659_v56 = vld [vmem:[#allocation7 + $0xd80] ss:$72 sps:$4 sm:$0xff]   ;;  %v7662_v57 = vld [vmem:[#allocation7 + $0x15f4] ss:$72 sps:$4 sm:$0xff]  }
  0x3f   :  { %5362 = vmatpush1.bf16.msra.mxu0 %v7598_v62  ;;  %v7665_v58 = vld [vmem:[#allocation7 + $0x3fc] ss:$72 sps:$4 sm:$0xff]  }
  0x40   :  { %5405 = vmatpush1.bf16.msra.mxu1 %v7599_v63  ;;  %5363 = vmatprep.subr.bf16.mxu0 %v7600_v0 }
  0x41   :  { %5406 = vmatprep.subr.bf16.mxu1 %v7602_v1  ;;  %v125_v1 = vsub.s32 1, %v9038_v33 }
  0x43   :  { %5364 = vmatpush1.bf16.msra.mxu0 %v7604_v2  ;;  %v133_v2 = vsub.s32 3, %v9038_v33 }
  0x44   :  { %5407 = vmatpush1.bf16.msra.mxu1 %v7605_v7  ;;  %5365 = vmatprep.subr.bf16.mxu0 %v7606_v8  ;;  %v121_v7 = vsub.s32 0, %v9038_v33  ;;  %v129_v8 = vsub.s32 2, %v9038_v33 }
  0x45   :  { %5408 = vmatprep.subr.bf16.mxu1 %v7608_v9  ;;  %v141_v9 = vsub.s32 5, %v9038_v33 }
  0x47   :  { %5366 = vmatpush1.bf16.msra.mxu0 %v7610_v12 }
  0x48   :  { %5409 = vmatpush1.bf16.msra.mxu1 %v7611_v14  ;;  %5367 = vmatprep.subr.bf16.mxu0 %v7612_v15  ;;  %v126_v14 = vrot.slane %v9040_v38, %v125_v1  ;;  %v134_v15 = vrot.slane %v9040_v38, %v133_v2  ;;  %v7698_v1 = vld [vmem:[#allocation7 + $0x1294] ss:$72 sps:$4 sm:$0xff]  }
  0x49   :  { %5410 = vmatprep.subr.bf16.mxu1 %v7614_v16  ;;  %v7701_v2 = vld [vmem:[#allocation7 + $0x9c] ss:$72 sps:$4 sm:$0xff]  }
  0x4b   :  { %5368 = vmatpush2.bf16.msra.mxu0 %v7616_v17 }
  0x4c   :  { %5411 = vmatpush2.bf16.msra.mxu1 %v7617_v20  ;;  %5369 = vmatprep.subr.bf16.mxu0 %v7618_v21  ;;  %v122_v20 = vrot.slane %v9040_v38, %v121_v7  ;;  %v7696_v7 = vld [vmem:[#allocation7 + $0x1290] ss:$72 sps:$4 sm:$0xff]  }
  0x4d   :  { %5412 = vmatprep.subr.bf16.mxu1 %v7620_v23 }
  0x4f   :  { %5370 = vmatpush2.bf16.msra.mxu0 %v7622_v24  ;;  %v130_v24 = vrot.slane %v9040_v38, %v129_v8  ;;  %v7699_v8 = vld [vmem:[#allocation7 + $0x98] ss:$72 sps:$4 sm:$0xff]  }
  0x50   :  { %5413 = vmatpush2.bf16.msra.mxu1 %v7623_v25  ;;  %5371 = vmatprep.subr.bf16.mxu0 %v7624_v26  ;;  %v142_v26 = vrot.slane %v9040_v38, %v141_v9  ;;  %v7704_v9 = vld [vmem:[#allocation7 + $0x1204] ss:$72 sps:$4 sm:$0xff]  }
  0x51   :  { %5414 = vmatprep.subr.bf16.mxu1 %v7626_v29 }
  0x53   :  { %5372 = vmatpush2.bf16.msra.mxu0 %v7628_v30 }
  0x54   :  { %5415 = vmatpush2.bf16.msra.mxu1 %v7629_v31  ;;  %5373 = vmatprep.subr.bf16.mxu0 %v7630_v32 }
  0x55   :  { %5416 = vmatprep.subr.bf16.mxu1 %v7632_v34 }
  0x57   :  { %5374 = vmatpush2.bf16.msra.mxu0 %v7634_v36 }
  0x58   :  { %5417 = vmatpush2.bf16.msra.mxu1 %v7635_v37  ;;  %5375 = vmatprep.subr.bf16.mxu0 %v7636_v39  ;;  %v7660_v39 = vld [vmem:[#allocation7 + $0x15f0] ss:$72 sps:$4 sm:$0xff]  }
  0x59   :  { %5418 = vmatprep.subr.bf16.mxu1 %v7638_v40 }
  0x5b   :  { %5376 = vmatpush2.bf16.msra.mxu0 %v7640_v42 }
  0x5c   :  { %5419 = vmatpush2.bf16.msra.mxu1 %v7641_v43  ;;  %5377 = vmatprep.subr.bf16.mxu0 %v7642_v45 }
  0x5d   :  { %5420 = vmatprep.subr.bf16.mxu1 %v7644_v46  ;;  %v7666_v46 = vld [vmem:[#allocation7 + $0x1560] ss:$72 sps:$4 sm:$0xff]  }
  0x5f   :  { %5378 = vmatpush2.bf16.msra.mxu0 %v7646_v47  ;;  %v7669_v47 = vld [vmem:[#allocation7 + $0x368] ss:$72 sps:$4 sm:$0xff]  }
  0x60   :  { %5421 = vmatpush2.bf16.msra.mxu1 %v7647_v48  ;;  %5379 = vmatprep.subr.bf16.mxu0 %v7648_v49  ;;  %v7671_v48 = vld [vmem:[#allocation7 + $0x36c] ss:$72 sps:$4 sm:$0xff]  }
  0x61   :  { %5422 = vmatprep.subr.bf16.mxu1 %v7650_v50  ;;  %v7674_v49 = vld [vmem:[#allocation7 + $0x14d4] ss:$72 sps:$4 sm:$0xff]  }
  0x62   :  { %v7677_v50 = vld [vmem:[#allocation7 + $0x2dc] ss:$72 sps:$4 sm:$0xff]  }
  0x63   :  { %5380 = vmatpush2.bf16.msra.mxu0 %v7652_v51  ;;  %v7672_v51 = vld [vmem:[#allocation7 + $0x14d0] ss:$72 sps:$4 sm:$0xff]  }
  0x64   :  { %5423 = vmatpush2.bf16.msra.mxu1 %v7653_v52  ;;  %5381 = vmatprep.subr.bf16.mxu0 %v7654_v53  ;;  %v7675_v52 = vld [vmem:[#allocation7 + $0x2d8] ss:$72 sps:$4 sm:$0xff]   ;;  %v7680_v53 = vld [vmem:[#allocation7 + $0x1444] ss:$72 sps:$4 sm:$0xff]  }
  0x65   :  { %5424 = vmatprep.subr.bf16.mxu1 %v7656_v54  ;;  %v7683_v54 = vld [vmem:[#allocation7 + $0x24c] ss:$72 sps:$4 sm:$0xff]  }
  0x67   :  { %5382 = vmatpush2.bf16.msra.mxu0 %v7658_v55  ;;  %v7678_v55 = vld [vmem:[#allocation7 + $0x1440] ss:$72 sps:$4 sm:$0xff]  }
  0x68   :  { %5425 = vmatpush2.bf16.msra.mxu1 %v7659_v56  ;;  %5437 = vmatprep.subr.bf16.mxu0 %v7662_v57  ;;  %v7681_v56 = vld [vmem:[#allocation7 + $0x248] ss:$72 sps:$4 sm:$0xff]   ;;  %v7686_v57 = vld [vmem:[#allocation7 + $0x13b4] ss:$72 sps:$4 sm:$0xff]  }
  0x69   :  { %5480 = vmatprep.subr.bf16.mxu1 %v7665_v58  ;;  %v7689_v58 = vld [vmem:[#allocation7 + $0x1bc] ss:$72 sps:$4 sm:$0xff]  }
  0xbe   :  { %v91_v59 = vpop.xlane.xlu0 %90 }
  0xbf   :  { %v100_v60 = vmul.f32 0.0013020834, %v91_v59  ;;  %v7684_v59 = vld [vmem:[#allocation7 + $0x13b0] ss:$72 sps:$4 sm:$0xff]  }
  0xc1   :  { %v102_v61 = vadd.f32 1e-06, %v100_v60  ;;  %v7687_v60 = vld [vmem:[#allocation7 + $0x1b8] ss:$72 sps:$4 sm:$0xff]  }
  0xc2   :  { %v98_v62 = vpop.xlane.xlu0 %97 }
  0xc3   :  { %8860 = vrsqrt.f32 %v102_v61  ;;  %v101_v63 = vmul.f32 0.0013020834, %v98_v62  ;;  %v7692_v61 = vld [vmem:[#allocation7 + $0x1324] ss:$72 sps:$4 sm:$0xff]  }
  0xc4   :  { %v7695_v62 = vld [vmem:[#allocation7 + $0x12c] ss:$72 sps:$4 sm:$0xff]  }
  0xc5   :  { %v103_v0 = vadd.f32 1e-06, %v101_v63  ;;  %v7690_v63 = vld [vmem:[#allocation7 + $0x1320] ss:$72 sps:$4 sm:$0xff]  }
  0xc7   :  { %8862 = vrsqrt.f32 %v103_v0  ;;  %v7693_v0 = vld [vmem:[#allocation7 + $0x128] ss:$72 sps:$4 sm:$0xff]  }
  0xd0   :  { %v8861_v12 = vpop.eup %8860 }
  0xd1   :  { %v107_v16 = vmul.f32 %v8861_v12, %v8992_v4  ;;  %v109_v17 = vmul.f32 %v8861_v12, %v8996_v6  ;;  %v106_v21 = vmul.f32 %v8861_v12, %v8990_v3  ;;  %v108_v23 = vmul.f32 %v8861_v12, %v8994_v5 }
  0xd2   :  { %v110_v25 = vmul.f32 %v8861_v12, %v9002_v13  ;;  %v111_v31 = vmul.f32 %v8861_v12, %v9014_v22  ;;  %v7663_v22 = vld [vmem:[#allocation7 + $0x3f8] ss:$72 sps:$4 sm:$0xff]   ;;  %v7707_v12 = vld [vmem:[#allocation7 + $0xc] ss:$72 sps:$4 sm:$0xff]  }
  0xd3   :  { %v150_v29 = vmul.f32 %v126_v14, %v107_v16  ;;  %v152_v30 = vmul.f32 %v134_v15, %v109_v17  ;;  %v149_v33 = vmul.f32 %v122_v20, %v106_v21  ;;  %v151_v34 = vmul.f32 %v130_v24, %v108_v23  ;;  %v7710_v16 = vld [vmem:[#allocation7 + $0x1a74] ss:$72 sps:$4 sm:$0xff]   ;;  %v7711_v21 = vld [vmem:[#allocation7 + $0x878] ss:$72 sps:$4 sm:$0xff]   ;;  %v7716_v23 = vld [vmem:[#allocation7 + $0x19e4] ss:$72 sps:$4 sm:$0xff]  }
  0xd4   :  { %v8863_v28 = vpop.eup %8862  ;;  %v153_v4 = vmul.f32 %v9044_v44, %v110_v25  ;;  %v154_v45 = vmul.f32 %v142_v26, %v111_v31  ;;  %v7713_v17 = vld [vmem:[#allocation7 + $0x87c] ss:$72 sps:$4 sm:$0xff]   ;;  %v7714_v25 = vld [vmem:[#allocation7 + $0x19e0] ss:$72 sps:$4 sm:$0xff]  }
  0xd5   :  { %v113_v6 = vmul.f32 %v8863_v28, %v9000_v11  ;;  %v115_v32 = vmul.f32 %v8863_v28, %v9012_v19  ;;  %v112_v3 = vmul.f32 %v8863_v28, %v8998_v10  ;;  %v114_v5 = vmul.f32 %v8863_v28, %v9010_v18  ;;  %v7723_v31 = vld [vmem:[#allocation7 + $0x758] ss:$72 sps:$4 sm:$0xff]  }
  0xd6   :  { %v117_v13 = vmul.f32 %v8863_v28, %v9028_v35  ;;  %v116_v36 = vmul.f32 %v8863_v28, %v9020_v27  ;;  %v7668_v35 = vld [vmem:[#allocation7 + $0x1564] ss:$72 sps:$4 sm:$0xff]   ;;  %v7722_v28 = vld [vmem:[#allocation7 + $0x1954] ss:$72 sps:$4 sm:$0xff]  }
  0xd7   :  { %v156_v37 = vmul.f32 %v126_v14, %v113_v6  ;;  %v158_v38 = vmul.f32 %v134_v15, %v115_v32  ;;  %v155_v40 = vmul.f32 %v122_v20, %v112_v3  ;;  %v157_v41 = vmul.f32 %v130_v24, %v114_v5  ;;  %v7702_v14 = vld [vmem:[#allocation7 + $0x1200] ss:$72 sps:$4 sm:$0xff]   ;;  %v7708_v20 = vld [vmem:[#allocation7 + $0x1a70] ss:$72 sps:$4 sm:$0xff]   ;;  %v7719_v24 = vld [vmem:[#allocation7 + $0x7ec] ss:$72 sps:$4 sm:$0xff]  }
  0xd8   :  { %v160_v42 = vmul.f32 %v142_v26, %v117_v13  ;;  %v159_v11 = vmul.f32 %v9044_v44, %v116_v36  ;;  %v7705_v15 = vld [vmem:[#allocation7 + $0x8] ss:$72 sps:$4 sm:$0xff]   ;;  %v7731_v6 = vld [vmem:[#allocation7 + $0x6cc] ss:$72 sps:$4 sm:$0xff]   ;;  %v7735_v13 = vld [vmem:[#allocation7 + $0x638] ss:$72 sps:$4 sm:$0xff]  }
  0xd9   :  { %v9070_v19 = vpack.c.bf16 %v156_v37, %v150_v29  ;;  %v9072_v10 = vpack.c.bf16 %v158_v38, %v152_v30  ;;  %v9074_v18 = vpack.c.bf16 %v155_v40, %v149_v33  ;;  %v9076_v43 = vpack.c.bf16 %v157_v41, %v151_v34  ;;  %v7717_v26 = vld [vmem:[#allocation7 + $0x7e8] ss:$72 sps:$4 sm:$0xff]   ;;  %v7725_v29 = vld [vmem:[#allocation7 + $0x75c] ss:$72 sps:$4 sm:$0xff]   ;;  %v7743_v37 = vld [vmem:[#allocation7 + $0x5ac] ss:$72 sps:$4 sm:$0xff]  }
  0xda   :  { %v9078_v27 = vpack.c.bf16 %v159_v11, %v153_v4  ;;  %v9084_v44 = vpack.c.bf16 %v160_v42, %v154_v45  ;;  %v7720_v30 = vld [vmem:[#allocation7 + $0x1950] ss:$72 sps:$4 sm:$0xff]   ;;  %v7728_v4 = vld [vmem:[#allocation7 + $0x18c4] ss:$72 sps:$4 sm:$0xff]   ;;  %v7726_v32 = vld [vmem:[#allocation7 + $0x18c0] ss:$72 sps:$4 sm:$0xff]  }
  0xdb   :  { %5383 = vmatprep.mubr.bf16.mxu0 %v9070_v19  ;;  %5426 = vmatprep.mubr.bf16.mxu1 %v9072_v10  ;;  %v7729_v3 = vld [vmem:[#allocation7 + $0x6c8] ss:$72 sps:$4 sm:$0xff]   ;;  %v7734_v5 = vld [vmem:[#allocation7 + $0x1834] ss:$72 sps:$4 sm:$0xff]   ;;  %v7740_v36 = vld [vmem:[#allocation7 + $0x17a4] ss:$72 sps:$4 sm:$0xff]  }
  0xdc   :  { %5384 = vmatmul.mubr.bf16.vlgmr.msra.gmra.mxu0 %v9074_v18  ;;  %5427 = vmatmul.mubr.bf16.vlgmr.msra.gmra.mxu1 %v9076_v43  ;;  %v7737_v33 = vld [vmem:[#allocation7 + $0x63c] ss:$72 sps:$4 sm:$0xff]   ;;  %v7732_v34 = vld [vmem:[#allocation7 + $0x1830] ss:$72 sps:$4 sm:$0xff]   ;;  %v7738_v38 = vld [vmem:[#allocation7 + $0x17a0] ss:$72 sps:$4 sm:$0xff]  }
  0xdd   :  { %5438 = vmatpush1.bf16.msra.mxu0 %v7660_v39  ;;  %5481 = vmatpush1.bf16.msra.mxu1 %v7663_v22  ;;  %v7741_v39 = vld [vmem:[#allocation7 + $0x5a8] ss:$72 sps:$4 sm:$0xff]   ;;  %v7746_v22 = vld [vmem:[#allocation7 + $0x1714] ss:$72 sps:$4 sm:$0xff]   ;;  %v7747_v42 = vld [vmem:[#allocation7 + $0x518] ss:$72 sps:$4 sm:$0xff]  }
  0xde   :  { %5469 = vmatprep.mubr.bf16.mxu0 %v9084_v44  ;;  %5512 = vmatprep.mubr.bf16.mxu1 %v9070_v19  ;;  %v7749_v40 = vld [vmem:[#allocation7 + $0x51c] ss:$72 sps:$4 sm:$0xff]   ;;  %v7744_v41 = vld [vmem:[#allocation7 + $0x1710] ss:$72 sps:$4 sm:$0xff]   ;;  %v7750_v45 = vld [vmem:[#allocation7 + $0x1680] ss:$72 sps:$4 sm:$0xff]  }
  0xdf   :  { %5439 = vmatprep.subr.bf16.mxu0 %v7668_v35  ;;  %5482 = vmatprep.subr.bf16.mxu1 %v7671_v48  ;;  %v7752_v11 = vld [vmem:[#allocation7 + $0x1684] ss:$72 sps:$4 sm:$0xff]  }
  0xe0   :  { %v7755_v35 = vld [vmem:[#allocation7 + $0x48c] ss:$72 sps:$4 sm:$0xff]   ;;  %v7761_v48 = vld [vmem:[#allocation7 + $0x15fc] ss:$72 sps:$4 sm:$0xff]  }
  0xe1   :  { %5440 = vmatpush1.bf16.msra.mxu0 %v7666_v46  ;;  %5483 = vmatpush1.bf16.msra.mxu1 %v7669_v47  ;;  %v7753_v46 = vld [vmem:[#allocation7 + $0x488] ss:$72 sps:$4 sm:$0xff]   ;;  %v7758_v47 = vld [vmem:[#allocation7 + $0xcfc] ss:$72 sps:$4 sm:$0xff]  }
  0xe2   :  { %5441 = vmatprep.subr.bf16.mxu0 %v7674_v49  ;;  %5484 = vmatprep.subr.bf16.mxu1 %v7677_v50  ;;  %v7756_v49 = vld [vmem:[#allocation7 + $0xcf8] ss:$72 sps:$4 sm:$0xff]  }
  0xe3   :  { %v7759_v50 = vld [vmem:[#allocation7 + $0x15f8] ss:$72 sps:$4 sm:$0xff]  }
  0xe5   :  { %5442 = vmatpush1.bf16.msra.mxu0 %v7672_v51  ;;  %5485 = vmatpush1.bf16.msra.mxu1 %v7675_v52  ;;  %v7764_v51 = vld [vmem:[#allocation7 + $0xc6c] ss:$72 sps:$4 sm:$0xff]  }
  0xe6   :  { %5443 = vmatprep.subr.bf16.mxu0 %v7680_v53  ;;  %5486 = vmatprep.subr.bf16.mxu1 %v7683_v54  ;;  %v7767_v52 = vld [vmem:[#allocation7 + $0x156c] ss:$72 sps:$4 sm:$0xff]   ;;  %v7762_v53 = vld [vmem:[#allocation7 + $0xc68] ss:$72 sps:$4 sm:$0xff]  }
  0xe7   :  { %v7765_v54 = vld [vmem:[#allocation7 + $0x1568] ss:$72 sps:$4 sm:$0xff]  }
  0xe9   :  { %5444 = vmatpush1.bf16.msra.mxu0 %v7678_v55  ;;  %5487 = vmatpush1.bf16.msra.mxu1 %v7681_v56  ;;  %v7770_v55 = vld [vmem:[#allocation7 + $0xbdc] ss:$72 sps:$4 sm:$0xff]   ;;  %v7768_v56 = vld [vmem:[#allocation7 + $0xbd8] ss:$72 sps:$4 sm:$0xff]  }
  0xea   :  { %5445 = vmatprep.subr.bf16.mxu0 %v7686_v57  ;;  %5488 = vmatprep.subr.bf16.mxu1 %v7689_v58  ;;  %v7773_v57 = vld [vmem:[#allocation7 + $0x14dc] ss:$72 sps:$4 sm:$0xff]   ;;  %v7771_v58 = vld [vmem:[#allocation7 + $0x14d8] ss:$72 sps:$4 sm:$0xff]  }
  0xed   :  { %5446 = vmatpush1.bf16.msra.mxu0 %v7684_v59  ;;  %5489 = vmatpush1.bf16.msra.mxu1 %v7687_v60  ;;  %v7776_v59 = vld [vmem:[#allocation7 + $0xb4c] ss:$72 sps:$4 sm:$0xff]  }
  0xee   :  { %5447 = vmatprep.subr.bf16.mxu0 %v7692_v61  ;;  %5490 = vmatprep.subr.bf16.mxu1 %v7695_v62  ;;  %v7779_v60 = vld [vmem:[#allocation7 + $0x144c] ss:$72 sps:$4 sm:$0xff]   ;;  %v7774_v61 = vld [vmem:[#allocation7 + $0xb48] ss:$72 sps:$4 sm:$0xff]  }
  0xef   :  { %v7777_v62 = vld [vmem:[#allocation7 + $0x1448] ss:$72 sps:$4 sm:$0xff]  }
  0xf1   :  { %5448 = vmatpush1.bf16.msra.mxu0 %v7690_v63  ;;  %5491 = vmatpush1.bf16.msra.mxu1 %v7693_v0  ;;  %v7782_v63 = vld [vmem:[#allocation7 + $0xabc] ss:$72 sps:$4 sm:$0xff]   ;;  %v7780_v0 = vld [vmem:[#allocation7 + $0xab8] ss:$72 sps:$4 sm:$0xff]  }
  0xf2   :  { %5449 = vmatprep.subr.bf16.mxu0 %v7698_v1  ;;  %5492 = vmatprep.subr.bf16.mxu1 %v7701_v2  ;;  %v7785_v1 = vld [vmem:[#allocation7 + $0x13bc] ss:$72 sps:$4 sm:$0xff]   ;;  %v7783_v2 = vld [vmem:[#allocation7 + $0x13b8] ss:$72 sps:$4 sm:$0xff]  }
  0xf5   :  { %5450 = vmatpush1.bf16.msra.mxu0 %v7696_v7  ;;  %5493 = vmatpush1.bf16.msra.mxu1 %v7699_v8  ;;  %v7788_v7 = vld [vmem:[#allocation7 + $0xa2c] ss:$72 sps:$4 sm:$0xff]   ;;  %v7786_v8 = vld [vmem:[#allocation7 + $0xa28] ss:$72 sps:$4 sm:$0xff]  }
  0xf6   :  { %5451 = vmatprep.subr.bf16.mxu0 %v7704_v9  ;;  %5494 = vmatprep.subr.bf16.mxu1 %v7707_v12  ;;  %v7791_v9 = vld [vmem:[#allocation7 + $0x132c] ss:$72 sps:$4 sm:$0xff]   ;;  %v7789_v12 = vld [vmem:[#allocation7 + $0x1328] ss:$72 sps:$4 sm:$0xff]  }
  0xf9   :  { %5452 = vmatpush1.bf16.msra.mxu0 %v7702_v14  ;;  %5495 = vmatpush1.bf16.msra.mxu1 %v7705_v15  ;;  %v7794_v14 = vld [vmem:[#allocation7 + $0x99c] ss:$72 sps:$4 sm:$0xff]   ;;  %v7792_v15 = vld [vmem:[#allocation7 + $0x998] ss:$72 sps:$4 sm:$0xff]  }
  0xfa   :  { %5453 = vmatprep.subr.bf16.mxu0 %v7710_v16  ;;  %5496 = vmatprep.subr.bf16.mxu1 %v7713_v17  ;;  %v7797_v16 = vld [vmem:[#allocation7 + $0x129c] ss:$72 sps:$4 sm:$0xff]   ;;  %v7795_v17 = vld [vmem:[#allocation7 + $0x1298] ss:$72 sps:$4 sm:$0xff]  }
  0xfd   :  { %5454 = vmatpush2.bf16.msra.mxu0 %v7708_v20  ;;  %5497 = vmatpush2.bf16.msra.mxu1 %v7711_v21  ;;  %v7800_v20 = vld [vmem:[#allocation7 + $0x90c] ss:$72 sps:$4 sm:$0xff]   ;;  %v7798_v21 = vld [vmem:[#allocation7 + $0x908] ss:$72 sps:$4 sm:$0xff]  }
  0xfe   :  { %5455 = vmatprep.subr.bf16.mxu0 %v7716_v23  ;;  %5498 = vmatprep.subr.bf16.mxu1 %v7719_v24  ;;  %v7803_v23 = vld [vmem:[#allocation7 + $0x120c] ss:$72 sps:$4 sm:$0xff]   ;;  %v7801_v24 = vld [vmem:[#allocation7 + $0x1208] ss:$72 sps:$4 sm:$0xff]  }
 0x101   :  { %5456 = vmatpush2.bf16.msra.mxu0 %v7714_v25  ;;  %5499 = vmatpush2.bf16.msra.mxu1 %v7717_v26  ;;  %v7806_v25 = vld [vmem:[#allocation7 + $0x117c] ss:$72 sps:$4 sm:$0xff]   ;;  %v7804_v26 = vld [vmem:[#allocation7 + $0x1178] ss:$72 sps:$4 sm:$0xff]  }
 0x102   :  { %5457 = vmatprep.subr.bf16.mxu0 %v7722_v28  ;;  %5500 = vmatprep.subr.bf16.mxu1 %v7725_v29  ;;  %v7809_v28 = vld [vmem:[#allocation7 + $0x1a7c] ss:$72 sps:$4 sm:$0xff]   ;;  %v7807_v29 = vld [vmem:[#allocation7 + $0x1a78] ss:$72 sps:$4 sm:$0xff]  }
 0x105   :  { %5458 = vmatpush2.bf16.msra.mxu0 %v7720_v30  ;;  %5501 = vmatpush2.bf16.msra.mxu1 %v7723_v31  ;;  %v7812_v30 = vld [vmem:[#allocation7 + $0x10ec] ss:$72 sps:$4 sm:$0xff]   ;;  %v7810_v31 = vld [vmem:[#allocation7 + $0x10e8] ss:$72 sps:$4 sm:$0xff]  }
 0x106   :  { %5459 = vmatprep.subr.bf16.mxu0 %v7728_v4  ;;  %5502 = vmatprep.subr.bf16.mxu1 %v7731_v6  ;;  %v7815_v4 = vld [vmem:[#allocation7 + $0x19ec] ss:$72 sps:$4 sm:$0xff]   ;;  %v7813_v6 = vld [vmem:[#allocation7 + $0x19e8] ss:$72 sps:$4 sm:$0xff]  }
 0x109   :  { %5460 = vmatpush2.bf16.msra.mxu0 %v7726_v32  ;;  %5503 = vmatpush2.bf16.msra.mxu1 %v7729_v3  ;;  %v7818_v32 = vld [vmem:[#allocation7 + $0x105c] ss:$72 sps:$4 sm:$0xff]   ;;  %v7816_v3 = vld [vmem:[#allocation7 + $0x1058] ss:$72 sps:$4 sm:$0xff]  }
 0x10a   :  { %5461 = vmatprep.subr.bf16.mxu0 %v7734_v5  ;;  %5504 = vmatprep.subr.bf16.mxu1 %v7737_v33  ;;  %v7821_v5 = vld [vmem:[#allocation7 + $0x195c] ss:$72 sps:$4 sm:$0xff]   ;;  %v7819_v33 = vld [vmem:[#allocation7 + $0x1958] ss:$72 sps:$4 sm:$0xff]  }
 0x10d   :  { %5462 = vmatpush2.bf16.msra.mxu0 %v7732_v34  ;;  %5505 = vmatpush2.bf16.msra.mxu1 %v7735_v13  ;;  %v7824_v34 = vld [vmem:[#allocation7 + $0xfcc] ss:$72 sps:$4 sm:$0xff]   ;;  %v7822_v13 = vld [vmem:[#allocation7 + $0xfc8] ss:$72 sps:$4 sm:$0xff]  }
 0x10e   :  { %5463 = vmatprep.subr.bf16.mxu0 %v7740_v36  ;;  %5506 = vmatprep.subr.bf16.mxu1 %v7743_v37  ;;  %v7827_v36 = vld [vmem:[#allocation7 + $0x18cc] ss:$72 sps:$4 sm:$0xff]   ;;  %v7825_v37 = vld [vmem:[#allocation7 + $0x18c8] ss:$72 sps:$4 sm:$0xff]  }
 0x111   :  { %5464 = vmatpush2.bf16.msra.mxu0 %v7738_v38  ;;  %5507 = vmatpush2.bf16.msra.mxu1 %v7741_v39  ;;  %v7830_v38 = vld [vmem:[#allocation7 + $0xf3c] ss:$72 sps:$4 sm:$0xff]   ;;  %v7828_v39 = vld [vmem:[#allocation7 + $0xf38] ss:$72 sps:$4 sm:$0xff]  }
 0x112   :  { %5465 = vmatprep.subr.bf16.mxu0 %v7746_v22  ;;  %5508 = vmatprep.subr.bf16.mxu1 %v7749_v40  ;;  %v7833_v22 = vld [vmem:[#allocation7 + $0x183c] ss:$72 sps:$4 sm:$0xff]   ;;  %v7831_v40 = vld [vmem:[#allocation7 + $0x1838] ss:$72 sps:$4 sm:$0xff]  }
 0x115   :  { %5466 = vmatpush2.bf16.msra.mxu0 %v7744_v41  ;;  %5509 = vmatpush2.bf16.msra.mxu1 %v7747_v42  ;;  %v7836_v41 = vld [vmem:[#allocation7 + $0xeac] ss:$72 sps:$4 sm:$0xff]   ;;  %v7834_v42 = vld [vmem:[#allocation7 + $0xea8] ss:$72 sps:$4 sm:$0xff]  }
 0x116   :  { %5467 = vmatprep.subr.bf16.mxu0 %v7752_v11  ;;  %5510 = vmatprep.subr.bf16.mxu1 %v7755_v35  ;;  %v7839_v11 = vld [vmem:[#allocation7 + $0x17ac] ss:$72 sps:$4 sm:$0xff]   ;;  %v7837_v35 = vld [vmem:[#allocation7 + $0x17a8] ss:$72 sps:$4 sm:$0xff]  }
 0x119   :  { %5468 = vmatpush2.bf16.msra.mxu0 %v7750_v45  ;;  %5511 = vmatpush2.bf16.msra.mxu1 %v7753_v46  ;;  %v7842_v45 = vld [vmem:[#allocation7 + $0xe1c] ss:$72 sps:$4 sm:$0xff]   ;;  %v7840_v46 = vld [vmem:[#allocation7 + $0xe18] ss:$72 sps:$4 sm:$0xff]  }
 0x11a   :  { %5523 = vmatprep.subr.bf16.mxu0 %v7758_v47  ;;  %5566 = vmatprep.subr.bf16.mxu1 %v7761_v48  ;;  %v7845_v47 = vld [vmem:[#allocation7 + $0x171c] ss:$72 sps:$4 sm:$0xff]   ;;  %v7843_v48 = vld [vmem:[#allocation7 + $0x1718] ss:$72 sps:$4 sm:$0xff]  }
 0x11c   :  { %5470 = vmatmul.mubr.bf16.vlgmr.msra.gmra.mxu0 %v9078_v27  ;;  %5513 = vmatmul.mubr.bf16.vlgmr.msra.gmra.mxu1 %v9074_v18 }
 0x11d   :  { %5524 = vmatpush1.bf16.msra.mxu0 %v7756_v49  ;;  %5555 = vmatprep.mubr.bf16.mxu0 %v9072_v10  ;;  %v7848_v49 = vld [vmem:[#allocation7 + $0xd8c] ss:$72 sps:$4 sm:$0xff]  }
 0x11e   :  { %5567 = vmatpush1.bf16.msra.mxu1 %v7759_v50  ;;  %5598 = vmatprep.mubr.bf16.mxu1 %v9084_v44  ;;  %v7846_v50 = vld [vmem:[#allocation7 + $0xd88] ss:$72 sps:$4 sm:$0xff]  }
 0x11f   :  { %5525 = vmatprep.subr.bf16.mxu0 %v7764_v51  ;;  %5568 = vmatprep.subr.bf16.mxu1 %v7767_v52  ;;  %v7851_v51 = vld [vmem:[#allocation7 + $0x168c] ss:$72 sps:$4 sm:$0xff]   ;;  %v7849_v52 = vld [vmem:[#allocation7 + $0x1688] ss:$72 sps:$4 sm:$0xff]  }
 0x121   :  { %5526 = vmatpush1.bf16.msra.mxu0 %v7762_v53  ;;  %v7854_v53 = vld [vmem:[#allocation7 + $0x404] ss:$72 sps:$4 sm:$0xff]  }
 0x122   :  { %5569 = vmatpush1.bf16.msra.mxu1 %v7765_v54  ;;  %5527 = vmatprep.subr.bf16.mxu0 %v7770_v55  ;;  %v7857_v54 = vld [vmem:[#allocation7 + $0xd04] ss:$72 sps:$4 sm:$0xff]   ;;  %v7852_v55 = vld [vmem:[#allocation7 + $0x400] ss:$72 sps:$4 sm:$0xff]  }
 0x123   :  { %5570 = vmatprep.subr.bf16.mxu1 %v7773_v57  ;;  %v7860_v57 = vld [vmem:[#allocation7 + $0x374] ss:$72 sps:$4 sm:$0xff]  }
 0x125   :  { %5528 = vmatpush1.bf16.msra.mxu0 %v7768_v56  ;;  %v7855_v56 = vld [vmem:[#allocation7 + $0xd00] ss:$72 sps:$4 sm:$0xff]  }
 0x126   :  { %5571 = vmatpush1.bf16.msra.mxu1 %v7771_v58  ;;  %5529 = vmatprep.subr.bf16.mxu0 %v7776_v59  ;;  %v7858_v58 = vld [vmem:[#allocation7 + $0x370] ss:$72 sps:$4 sm:$0xff]  }
 0x127   :  { %5572 = vmatprep.subr.bf16.mxu1 %v7779_v60  ;;  %v7861_v59 = vld [vmem:[#allocation7 + $0xc70] ss:$72 sps:$4 sm:$0xff]   ;;  %v7863_v60 = vld [vmem:[#allocation7 + $0xc74] ss:$72 sps:$4 sm:$0xff]  }
 0x129   :  { %5530 = vmatpush1.bf16.msra.mxu0 %v7774_v61  ;;  %v7866_v61 = vld [vmem:[#allocation7 + $0x2e4] ss:$72 sps:$4 sm:$0xff]  }
 0x12a   :  { %5573 = vmatpush1.bf16.msra.mxu1 %v7777_v62  ;;  %5531 = vmatprep.subr.bf16.mxu0 %v7782_v63  ;;  %v7869_v62 = vld [vmem:[#allocation7 + $0xbe4] ss:$72 sps:$4 sm:$0xff]   ;;  %v7864_v63 = vld [vmem:[#allocation7 + $0x2e0] ss:$72 sps:$4 sm:$0xff]  }
 0x12b   :  { %5574 = vmatprep.subr.bf16.mxu1 %v7785_v1  ;;  %v7872_v1 = vld [vmem:[#allocation7 + $0x254] ss:$72 sps:$4 sm:$0xff]  }
 0x12d   :  { %5532 = vmatpush1.bf16.msra.mxu0 %v7780_v0  ;;  %v7867_v0 = vld [vmem:[#allocation7 + $0xbe0] ss:$72 sps:$4 sm:$0xff]  }
 0x12e   :  { %5575 = vmatpush1.bf16.msra.mxu1 %v7783_v2  ;;  %5533 = vmatprep.subr.bf16.mxu0 %v7788_v7  ;;  %v7875_v2 = vld [vmem:[#allocation7 + $0xb54] ss:$72 sps:$4 sm:$0xff]   ;;  %v7870_v7 = vld [vmem:[#allocation7 + $0x250] ss:$72 sps:$4 sm:$0xff]  }
 0x12f   :  { %5576 = vmatprep.subr.bf16.mxu1 %v7791_v9  ;;  %v7878_v9 = vld [vmem:[#allocation7 + $0x1c4] ss:$72 sps:$4 sm:$0xff]  }
 0x131   :  { %5534 = vmatpush1.bf16.msra.mxu0 %v7786_v8  ;;  %v7873_v8 = vld [vmem:[#allocation7 + $0xb50] ss:$72 sps:$4 sm:$0xff]  }
 0x132   :  { %5577 = vmatpush1.bf16.msra.mxu1 %v7789_v12  ;;  %5535 = vmatprep.subr.bf16.mxu0 %v7794_v14  ;;  %v7881_v12 = vld [vmem:[#allocation7 + $0xac4] ss:$72 sps:$4 sm:$0xff]   ;;  %v7876_v14 = vld [vmem:[#allocation7 + $0x1c0] ss:$72 sps:$4 sm:$0xff]  }
 0x133   :  { %5578 = vmatprep.subr.bf16.mxu1 %v7797_v16  ;;  %v7884_v16 = vld [vmem:[#allocation7 + $0x134] ss:$72 sps:$4 sm:$0xff]  }
 0x135   :  { %5536 = vmatpush1.bf16.msra.mxu0 %v7792_v15  ;;  %v7879_v15 = vld [vmem:[#allocation7 + $0xac0] ss:$72 sps:$4 sm:$0xff]  }
 0x136   :  { %5579 = vmatpush1.bf16.msra.mxu1 %v7795_v17  ;;  %5537 = vmatprep.subr.bf16.mxu0 %v7800_v20  ;;  %v7882_v17 = vld [vmem:[#allocation7 + $0x130] ss:$72 sps:$4 sm:$0xff]   ;;  %v7887_v20 = vld [vmem:[#allocation7 + $0xa34] ss:$72 sps:$4 sm:$0xff]  }
 0x137   :  { %5580 = vmatprep.subr.bf16.mxu1 %v7803_v23  ;;  %v7890_v23 = vld [vmem:[#allocation7 + $0xa4] ss:$72 sps:$4 sm:$0xff]  }
 0x139   :  { %5538 = vmatpush1.bf16.msra.mxu0 %v7798_v21  ;;  %v7885_v21 = vld [vmem:[#allocation7 + $0xa30] ss:$72 sps:$4 sm:$0xff]  }
 0x13a   :  { %5581 = vmatpush1.bf16.msra.mxu1 %v7801_v24  ;;  %5539 = vmatprep.subr.bf16.mxu0 %v7806_v25  ;;  %v7888_v24 = vld [vmem:[#allocation7 + $0xa0] ss:$72 sps:$4 sm:$0xff]   ;;  %v7893_v25 = vld [vmem:[#allocation7 + $0x9a4] ss:$72 sps:$4 sm:$0xff]  }
 0x13b   :  { %5582 = vmatprep.subr.bf16.mxu1 %v7809_v28  ;;  %v7896_v28 = vld [vmem:[#allocation7 + $0x14] ss:$72 sps:$4 sm:$0xff]  }
 0x13d   :  { %5540 = vmatpush2.bf16.msra.mxu0 %v7804_v26  ;;  %v7891_v26 = vld [vmem:[#allocation7 + $0x9a0] ss:$72 sps:$4 sm:$0xff]  }
 0x13e   :  { %5583 = vmatpush2.bf16.msra.mxu1 %v7807_v29  ;;  %5541 = vmatprep.subr.bf16.mxu0 %v7812_v30  ;;  %v7894_v29 = vld [vmem:[#allocation7 + $0x10] ss:$72 sps:$4 sm:$0xff]   ;;  %v7899_v30 = vld [vmem:[#allocation7 + $0x914] ss:$72 sps:$4 sm:$0xff]  }
 0x13f   :  { %5584 = vmatprep.subr.bf16.mxu1 %v7815_v4  ;;  %v7902_v4 = vld [vmem:[#allocation7 + $0x884] ss:$72 sps:$4 sm:$0xff]  }
 0x141   :  { %5542 = vmatpush2.bf16.msra.mxu0 %v7810_v31  ;;  %v7897_v31 = vld [vmem:[#allocation7 + $0x910] ss:$72 sps:$4 sm:$0xff]  }
 0x142   :  { %5585 = vmatpush2.bf16.msra.mxu1 %v7813_v6  ;;  %5543 = vmatprep.subr.bf16.mxu0 %v7818_v32  ;;  %v7900_v6 = vld [vmem:[#allocation7 + $0x880] ss:$72 sps:$4 sm:$0xff]   ;;  %v7905_v32 = vld [vmem:[#allocation7 + $0x1184] ss:$72 sps:$4 sm:$0xff]  }
 0x143   :  { %5586 = vmatprep.subr.bf16.mxu1 %v7821_v5  ;;  %v7908_v5 = vld [vmem:[#allocation7 + $0x7f4] ss:$72 sps:$4 sm:$0xff]  }
 0x145   :  { %5544 = vmatpush2.bf16.msra.mxu0 %v7816_v3  ;;  %v7903_v3 = vld [vmem:[#allocation7 + $0x1180] ss:$72 sps:$4 sm:$0xff]  }
 0x146   :  { %5587 = vmatpush2.bf16.msra.mxu1 %v7819_v33  ;;  %5545 = vmatprep.subr.bf16.mxu0 %v7824_v34  ;;  %v7906_v33 = vld [vmem:[#allocation7 + $0x7f0] ss:$72 sps:$4 sm:$0xff]   ;;  %v7911_v34 = vld [vmem:[#allocation7 + $0x10f4] ss:$72 sps:$4 sm:$0xff]  }
 0x147   :  { %5588 = vmatprep.subr.bf16.mxu1 %v7827_v36  ;;  %v7914_v36 = vld [vmem:[#allocation7 + $0x764] ss:$72 sps:$4 sm:$0xff]  }
 0x149   :  { %5546 = vmatpush2.bf16.msra.mxu0 %v7822_v13  ;;  %v7909_v13 = vld [vmem:[#allocation7 + $0x10f0] ss:$72 sps:$4 sm:$0xff]  }
 0x14a   :  { %5589 = vmatpush2.bf16.msra.mxu1 %v7825_v37  ;;  %5547 = vmatprep.subr.bf16.mxu0 %v7830_v38  ;;  %v7912_v37 = vld [vmem:[#allocation7 + $0x760] ss:$72 sps:$4 sm:$0xff]   ;;  %v7917_v38 = vld [vmem:[#allocation7 + $0x1064] ss:$72 sps:$4 sm:$0xff]  }
 0x14b   :  { %5590 = vmatprep.subr.bf16.mxu1 %v7833_v22  ;;  %v7920_v22 = vld [vmem:[#allocation7 + $0x6d4] ss:$72 sps:$4 sm:$0xff]  }
 0x14d   :  { %5548 = vmatpush2.bf16.msra.mxu0 %v7828_v39  ;;  %v7915_v39 = vld [vmem:[#allocation7 + $0x1060] ss:$72 sps:$4 sm:$0xff]  }
 0x14e   :  { %5591 = vmatpush2.bf16.msra.mxu1 %v7831_v40  ;;  %5549 = vmatprep.subr.bf16.mxu0 %v7836_v41  ;;  %v7918_v40 = vld [vmem:[#allocation7 + $0x6d0] ss:$72 sps:$4 sm:$0xff]   ;;  %v7923_v41 = vld [vmem:[#allocation7 + $0xfd4] ss:$72 sps:$4 sm:$0xff]  }
 0x14f   :  { %5592 = vmatprep.subr.bf16.mxu1 %v7839_v11  ;;  %v7926_v11 = vld [vmem:[#allocation7 + $0x644] ss:$72 sps:$4 sm:$0xff]  }
 0x151   :  { %5550 = vmatpush2.bf16.msra.mxu0 %v7834_v42  ;;  %v7921_v42 = vld [vmem:[#allocation7 + $0xfd0] ss:$72 sps:$4 sm:$0xff]  }
 0x152   :  { %5593 = vmatpush2.bf16.msra.mxu1 %v7837_v35  ;;  %5551 = vmatprep.subr.bf16.mxu0 %v7842_v45  ;;  %v7924_v35 = vld [vmem:[#allocation7 + $0x640] ss:$72 sps:$4 sm:$0xff]   ;;  %v7929_v45 = vld [vmem:[#allocation7 + $0xf44] ss:$72 sps:$4 sm:$0xff]  }
 0x153   :  { %5594 = vmatprep.subr.bf16.mxu1 %v7845_v47  ;;  %v7932_v47 = vld [vmem:[#allocation7 + $0x5b4] ss:$72 sps:$4 sm:$0xff]  }
 0x155   :  { %5552 = vmatpush2.bf16.msra.mxu0 %v7840_v46  ;;  %v7927_v46 = vld [vmem:[#allocation7 + $0xf40] ss:$72 sps:$4 sm:$0xff]  }
 0x156   :  { %5595 = vmatpush2.bf16.msra.mxu1 %v7843_v48  ;;  %5553 = vmatprep.subr.bf16.mxu0 %v7848_v49  ;;  %v7930_v48 = vld [vmem:[#allocation7 + $0x5b0] ss:$72 sps:$4 sm:$0xff]   ;;  %v7935_v49 = vld [vmem:[#allocation7 + $0xeb4] ss:$72 sps:$4 sm:$0xff]  }
 0x157   :  { %5596 = vmatprep.subr.bf16.mxu1 %v7851_v51  ;;  %v7938_v51 = vld [vmem:[#allocation7 + $0x524] ss:$72 sps:$4 sm:$0xff]  }
 0x159   :  { %5554 = vmatpush2.bf16.msra.mxu0 %v7846_v50  ;;  %v7933_v50 = vld [vmem:[#allocation7 + $0xeb0] ss:$72 sps:$4 sm:$0xff]  }
 0x15a   :  { %5597 = vmatpush2.bf16.msra.mxu1 %v7849_v52  ;;  %5609 = vmatprep.subr.bf16.mxu0 %v7854_v53  ;;  %v7936_v52 = vld [vmem:[#allocation7 + $0x520] ss:$72 sps:$4 sm:$0xff]   ;;  %v7941_v53 = vld [vmem:[#allocation7 + $0xe24] ss:$72 sps:$4 sm:$0xff]  }
 0x15b   :  { %5652 = vmatprep.subr.bf16.mxu1 %v7857_v54  ;;  %v7939_v54 = vld [vmem:[#allocation7 + $0xe20] ss:$72 sps:$4 sm:$0xff]  }
 0x15c   :  { %5556 = vmatmul.mubr.bf16.vlgmr.msra.gmra.mxu0 %v9076_v43 }
 0x15d   :  { %5599 = vmatmul.mubr.bf16.vlgmr.msra.gmra.mxu1 %v9078_v27  ;;  %5610 = vmatpush1.bf16.msra.mxu0 %v7852_v55  ;;  %v7944_v55 = vld [vmem:[#allocation7 + $0x494] ss:$72 sps:$4 sm:$0xff]  }
 0x15e   :  { %5641 = vmatprep.mubr.bf16.mxu0 %v9070_v19  ;;  %5653 = vmatpush1.bf16.msra.mxu1 %v7855_v56  ;;  %v7942_v56 = vld [vmem:[#allocation7 + $0x490] ss:$72 sps:$4 sm:$0xff]  }
 0x15f   :  { %5684 = vmatprep.mubr.bf16.mxu1 %v9072_v10  ;;  %5611 = vmatprep.subr.bf16.mxu0 %v7860_v57  ;;  %v7947_v57 = vld [vmem:[#allocation7 + $0xd94] ss:$72 sps:$4 sm:$0xff]  }
 0x160   :  { %5654 = vmatprep.subr.bf16.mxu1 %v7863_v60  ;;  %v7953_v60 = vld [vmem:[#allocation7 + $0x40c] ss:$72 sps:$4 sm:$0xff]  }
 0x161   :  { %5612 = vmatpush1.bf16.msra.mxu0 %v7858_v58  ;;  %v7945_v58 = vld [vmem:[#allocation7 + $0xd90] ss:$72 sps:$4 sm:$0xff]  }
 0x162   :  { %5655 = vmatpush1.bf16.msra.mxu1 %v7861_v59  ;;  %5613 = vmatprep.subr.bf16.mxu0 %v7866_v61  ;;  %v7950_v59 = vld [vmem:[#allocation7 + $0x1604] ss:$72 sps:$4 sm:$0xff]   ;;  %v7948_v61 = vld [vmem:[#allocation7 + $0x1600] ss:$72 sps:$4 sm:$0xff]  }
 0x163   :  { %5656 = vmatprep.subr.bf16.mxu1 %v7869_v62  ;;  %v7951_v62 = vld [vmem:[#allocation7 + $0x408] ss:$72 sps:$4 sm:$0xff]  }
 0x165   :  { %5614 = vmatpush1.bf16.msra.mxu0 %v7864_v63  ;;  %v7956_v63 = vld [vmem:[#allocation7 + $0x1574] ss:$72 sps:$4 sm:$0xff]  }
 0x166   :  { %5657 = vmatpush1.bf16.msra.mxu1 %v7867_v0  ;;  %5615 = vmatprep.subr.bf16.mxu0 %v7872_v1  ;;  %v7954_v0 = vld [vmem:[#allocation7 + $0x1570] ss:$72 sps:$4 sm:$0xff]  }
 0x167   :  { %5658 = vmatprep.subr.bf16.mxu1 %v7875_v2  ;;  %v7957_v1 = vld [vmem:[#allocation7 + $0x378] ss:$72 sps:$4 sm:$0xff]   ;;  %v7959_v2 = vld [vmem:[#allocation7 + $0x37c] ss:$72 sps:$4 sm:$0xff]  }
 0x169   :  { %5616 = vmatpush1.bf16.msra.mxu0 %v7870_v7  ;;  %v7962_v7 = vld [vmem:[#allocation7 + $0x14e4] ss:$72 sps:$4 sm:$0xff]  }
 0x16a   :  { %5659 = vmatpush1.bf16.msra.mxu1 %v7873_v8  ;;  %5617 = vmatprep.subr.bf16.mxu0 %v7878_v9  ;;  %v7965_v8 = vld [vmem:[#allocation7 + $0x2ec] ss:$72 sps:$4 sm:$0xff]   ;;  %v7960_v9 = vld [vmem:[#allocation7 + $0x14e0] ss:$72 sps:$4 sm:$0xff]  }
 0x16b   :  { %5660 = vmatprep.subr.bf16.mxu1 %v7881_v12  ;;  %v7963_v12 = vld [vmem:[#allocation7 + $0x2e8] ss:$72 sps:$4 sm:$0xff]  }
 0x16d   :  { %5618 = vmatpush1.bf16.msra.mxu0 %v7876_v14  ;;  %v7968_v14 = vld [vmem:[#allocation7 + $0x1454] ss:$72 sps:$4 sm:$0xff]  }
 0x16e   :  { %5661 = vmatpush1.bf16.msra.mxu1 %v7879_v15  ;;  %5619 = vmatprep.subr.bf16.mxu0 %v7884_v16  ;;  %v7971_v15 = vld [vmem:[#allocation7 + $0x25c] ss:$72 sps:$4 sm:$0xff]   ;;  %v7966_v16 = vld [vmem:[#allocation7 + $0x1450] ss:$72 sps:$4 sm:$0xff]  }
 0x16f   :  { %5662 = vmatprep.subr.bf16.mxu1 %v7887_v20  ;;  %v7974_v20 = vld [vmem:[#allocation7 + $0x13c4] ss:$72 sps:$4 sm:$0xff]  }
 0x171   :  { %5620 = vmatpush1.bf16.msra.mxu0 %v7882_v17  ;;  %v7969_v17 = vld [vmem:[#allocation7 + $0x258] ss:$72 sps:$4 sm:$0xff]  }
 0x172   :  { %5663 = vmatpush1.bf16.msra.mxu1 %v7885_v21  ;;  %5621 = vmatprep.subr.bf16.mxu0 %v7890_v23  ;;  %v7977_v21 = vld [vmem:[#allocation7 + $0x1cc] ss:$72 sps:$4 sm:$0xff]   ;;  %v7972_v23 = vld [vmem:[#allocation7 + $0x13c0] ss:$72 sps:$4 sm:$0xff]  }
 0x173   :  { %5664 = vmatprep.subr.bf16.mxu1 %v7893_v25  ;;  %v7980_v25 = vld [vmem:[#allocation7 + $0x1334] ss:$72 sps:$4 sm:$0xff]  }
 0x175   :  { %5622 = vmatpush1.bf16.msra.mxu0 %v7888_v24  ;;  %v7975_v24 = vld [vmem:[#allocation7 + $0x1c8] ss:$72 sps:$4 sm:$0xff]  }
 0x176   :  { %5665 = vmatpush1.bf16.msra.mxu1 %v7891_v26  ;;  %5623 = vmatprep.subr.bf16.mxu0 %v7896_v28  ;;  %v7978_v26 = vld [vmem:[#allocation7 + $0x1330] ss:$72 sps:$4 sm:$0xff]   ;;  %v7983_v28 = vld [vmem:[#allocation7 + $0x13c] ss:$72 sps:$4 sm:$0xff]  }
 0x177   :  { %5666 = vmatprep.subr.bf16.mxu1 %v7899_v30  ;;  %v7986_v30 = vld [vmem:[#allocation7 + $0x12a4] ss:$72 sps:$4 sm:$0xff]  }
 0x179   :  { %5624 = vmatpush1.bf16.msra.mxu0 %v7894_v29  ;;  %v7981_v29 = vld [vmem:[#allocation7 + $0x138] ss:$72 sps:$4 sm:$0xff]  }
 0x17a   :  { %5667 = vmatpush1.bf16.msra.mxu1 %v7897_v31  ;;  %5625 = vmatprep.subr.bf16.mxu0 %v7902_v4  ;;  %v7984_v31 = vld [vmem:[#allocation7 + $0x12a0] ss:$72 sps:$4 sm:$0xff]   ;;  %v7989_v4 = vld [vmem:[#allocation7 + $0xac] ss:$72 sps:$4 sm:$0xff]  }
 0x17b   :  { %5668 = vmatprep.subr.bf16.mxu1 %v7905_v32  ;;  %v7992_v32 = vld [vmem:[#allocation7 + $0x1214] ss:$72 sps:$4 sm:$0xff]  }
 0x17d   :  { %5626 = vmatpush2.bf16.msra.mxu0 %v7900_v6  ;;  %v7987_v6 = vld [vmem:[#allocation7 + $0xa8] ss:$72 sps:$4 sm:$0xff]  }
 0x17e   :  { %5669 = vmatpush2.bf16.msra.mxu1 %v7903_v3  ;;  %5627 = vmatprep.subr.bf16.mxu0 %v7908_v5  ;;  %v7990_v3 = vld [vmem:[#allocation7 + $0x1210] ss:$72 sps:$4 sm:$0xff]   ;;  %v7995_v5 = vld [vmem:[#allocation7 + $0x1c] ss:$72 sps:$4 sm:$0xff]  }
 0x17f   :  { %5670 = vmatprep.subr.bf16.mxu1 %v7911_v34  ;;  %v7998_v34 = vld [vmem:[#allocation7 + $0x1a84] ss:$72 sps:$4 sm:$0xff]  }
 0x181   :  { %5628 = vmatpush2.bf16.msra.mxu0 %v7906_v33  ;;  %v7993_v33 = vld [vmem:[#allocation7 + $0x18] ss:$72 sps:$4 sm:$0xff]  }
 0x182   :  { %5671 = vmatpush2.bf16.msra.mxu1 %v7909_v13  ;;  %5629 = vmatprep.subr.bf16.mxu0 %v7914_v36  ;;  %v7996_v13 = vld [vmem:[#allocation7 + $0x1a80] ss:$72 sps:$4 sm:$0xff]   ;;  %v8001_v36 = vld [vmem:[#allocation7 + $0x88c] ss:$72 sps:$4 sm:$0xff]  }
 0x183   :  { %5672 = vmatprep.subr.bf16.mxu1 %v7917_v38  ;;  %v8004_v38 = vld [vmem:[#allocation7 + $0x19f4] ss:$72 sps:$4 sm:$0xff]  }
 0x185   :  { %5630 = vmatpush2.bf16.msra.mxu0 %v7912_v37  ;;  %v7999_v37 = vld [vmem:[#allocation7 + $0x888] ss:$72 sps:$4 sm:$0xff]  }
 0x186   :  { %5673 = vmatpush2.bf16.msra.mxu1 %v7915_v39  ;;  %5631 = vmatprep.subr.bf16.mxu0 %v7920_v22  ;;  %v8002_v39 = vld [vmem:[#allocation7 + $0x19f0] ss:$72 sps:$4 sm:$0xff]   ;;  %v8007_v22 = vld [vmem:[#allocation7 + $0x7fc] ss:$72 sps:$4 sm:$0xff]  }
 0x187   :  { %5674 = vmatprep.subr.bf16.mxu1 %v7923_v41  ;;  %v8010_v41 = vld [vmem:[#allocation7 + $0x1964] ss:$72 sps:$4 sm:$0xff]  }
 0x189   :  { %5632 = vmatpush2.bf16.msra.mxu0 %v7918_v40  ;;  %v8005_v40 = vld [vmem:[#allocation7 + $0x7f8] ss:$72 sps:$4 sm:$0xff]  }
 0x18a   :  { %5675 = vmatpush2.bf16.msra.mxu1 %v7921_v42  ;;  %5633 = vmatprep.subr.bf16.mxu0 %v7926_v11  ;;  %v8008_v42 = vld [vmem:[#allocation7 + $0x1960] ss:$72 sps:$4 sm:$0xff]   ;;  %v8013_v11 = vld [vmem:[#allocation7 + $0x76c] ss:$72 sps:$4 sm:$0xff]  }
 0x18b   :  { %5676 = vmatprep.subr.bf16.mxu1 %v7929_v45  ;;  %v8016_v45 = vld [vmem:[#allocation7 + $0x18d4] ss:$72 sps:$4 sm:$0xff]  }
 0x18d   :  { %5634 = vmatpush2.bf16.msra.mxu0 %v7924_v35  ;;  %v8011_v35 = vld [vmem:[#allocation7 + $0x768] ss:$72 sps:$4 sm:$0xff]  }
 0x18e   :  { %5677 = vmatpush2.bf16.msra.mxu1 %v7927_v46  ;;  %5635 = vmatprep.subr.bf16.mxu0 %v7932_v47  ;;  %v8014_v46 = vld [vmem:[#allocation7 + $0x18d0] ss:$72 sps:$4 sm:$0xff]   ;;  %v8019_v47 = vld [vmem:[#allocation7 + $0x6dc] ss:$72 sps:$4 sm:$0xff]  }
 0x18f   :  { %5678 = vmatprep.subr.bf16.mxu1 %v7935_v49  ;;  %v8022_v49 = vld [vmem:[#allocation7 + $0x1844] ss:$72 sps:$4 sm:$0xff]  }
 0x191   :  { %5636 = vmatpush2.bf16.msra.mxu0 %v7930_v48  ;;  %v8017_v48 = vld [vmem:[#allocation7 + $0x6d8] ss:$72 sps:$4 sm:$0xff]  }
 0x192   :  { %5679 = vmatpush2.bf16.msra.mxu1 %v7933_v50  ;;  %5637 = vmatprep.subr.bf16.mxu0 %v7938_v51  ;;  %v8020_v50 = vld [vmem:[#allocation7 + $0x1840] ss:$72 sps:$4 sm:$0xff]   ;;  %v8025_v51 = vld [vmem:[#allocation7 + $0x64c] ss:$72 sps:$4 sm:$0xff]  }
 0x193   :  { %5680 = vmatprep.subr.bf16.mxu1 %v7941_v53  ;;  %v8028_v53 = vld [vmem:[#allocation7 + $0x17b4] ss:$72 sps:$4 sm:$0xff]  }
 0x195   :  { %5638 = vmatpush2.bf16.msra.mxu0 %v7936_v52  ;;  %v8023_v52 = vld [vmem:[#allocation7 + $0x648] ss:$72 sps:$4 sm:$0xff]  }
 0x196   :  { %5681 = vmatpush2.bf16.msra.mxu1 %v7939_v54  ;;  %5639 = vmatprep.subr.bf16.mxu0 %v7944_v55  ;;  %v8026_v54 = vld [vmem:[#allocation7 + $0x17b0] ss:$72 sps:$4 sm:$0xff]   ;;  %v8031_v55 = vld [vmem:[#allocation7 + $0x5bc] ss:$72 sps:$4 sm:$0xff]  }
 0x197   :  { %5682 = vmatprep.subr.bf16.mxu1 %v7947_v57  ;;  %v8029_v57 = vld [vmem:[#allocation7 + $0x5b8] ss:$72 sps:$4 sm:$0xff]  }
 0x199   :  { %5640 = vmatpush2.bf16.msra.mxu0 %v7942_v56 }
 0x19a   :  { %5683 = vmatpush2.bf16.msra.mxu1 %v7945_v58  ;;  %5695 = vmatprep.subr.bf16.mxu0 %v7950_v59  ;;  %v8034_v58 = vld [vmem:[#allocation7 + $0x1724] ss:$72 sps:$4 sm:$0xff]   ;;  %v8032_v59 = vld [vmem:[#allocation7 + $0x1720] ss:$72 sps:$4 sm:$0xff]  }
 0x19b   :  { %5738 = vmatprep.subr.bf16.mxu1 %v7953_v60  ;;  %v8037_v60 = vld [vmem:[#allocation7 + $0x52c] ss:$72 sps:$4 sm:$0xff]  }
 0x19c   :  { %5642 = vmatmul.mubr.bf16.vlgmr.msra.gmra.mxu0 %v9074_v18  ;;  %v5385_v56 = vpop.f32.mrf.mxu0 }
 0x19d   :  { %5685 = vmatmul.mubr.bf16.vlgmr.msra.gmra.mxu1 %v9076_v43  ;;  %5696 = vmatpush1.bf16.msra.mxu0 %v7948_v61  ;;  %v5428_v61 = vpop.f32.mrf.mxu1 }
 0x19e   :  { %5727 = vmatprep.mubr.bf16.mxu0 %v9084_v44  ;;  %5739 = vmatpush1.bf16.msra.mxu1 %v7951_v62  ;;  %v5387_v62 = vpop.f32.mrf.mxu0 }
 0x19f   :  { %5770 = vmatprep.mubr.bf16.mxu1 %v9070_v19  ;;  %5697 = vmatprep.subr.bf16.mxu0 %v7956_v63  ;;  %v8035_v63 = vld [vmem:[#allocation7 + $0x528] ss:$72 sps:$4 sm:$0xff]  }
 0x1a0   :  { %5740 = vmatprep.subr.bf16.mxu1 %v7959_v2  ;;  %v8043_v2 = vld [vmem:[#allocation7 + $0x49c] ss:$72 sps:$4 sm:$0xff]  }
 0x1a1   :  { %5698 = vmatpush1.bf16.msra.mxu0 %v7954_v0  ;;  %v8040_v0 = vld [vmem:[#allocation7 + $0x1694] ss:$72 sps:$4 sm:$0xff]  }
 0x1a2   :  { %5741 = vmatpush1.bf16.msra.mxu1 %v7957_v1  ;;  %5699 = vmatprep.subr.bf16.mxu0 %v7962_v7  ;;  %v8038_v1 = vld [vmem:[#allocation7 + $0x1690] ss:$72 sps:$4 sm:$0xff]   ;;  %v5430_v7 = vpop.f32.mrf.mxu1 }
 0x1a3   :  { %5742 = vmatprep.subr.bf16.mxu1 %v7965_v8  ;;  %v5389_v8 = vpop.f32.mrf.mxu0 }
 0x1a5   :  { %5700 = vmatpush1.bf16.msra.mxu0 %v7960_v9  ;;  %v8041_v9 = vld [vmem:[#allocation7 + $0x498] ss:$72 sps:$4 sm:$0xff]  }
 0x1a6   :  { %5743 = vmatpush1.bf16.msra.mxu1 %v7963_v12  ;;  %5701 = vmatprep.subr.bf16.mxu0 %v7968_v14  ;;  %v8046_v12 = vld [vmem:[#allocation7 + $0xd0c] ss:$72 sps:$4 sm:$0xff]  }
 0x1a7   :  { %5744 = vmatprep.subr.bf16.mxu1 %v7971_v15  ;;  %v8049_v14 = vld [vmem:[#allocation7 + $0x160c] ss:$72 sps:$4 sm:$0xff]   ;;  %v8044_v15 = vld [vmem:[#allocation7 + $0xd08] ss:$72 sps:$4 sm:$0xff]  }
 0x1a9   :  { %5702 = vmatpush1.bf16.msra.mxu0 %v7966_v16  ;;  %v8047_v16 = vld [vmem:[#allocation7 + $0x1608] ss:$72 sps:$4 sm:$0xff]  }
 0x1aa   :  { %5745 = vmatpush1.bf16.msra.mxu1 %v7969_v17  ;;  %5703 = vmatprep.subr.bf16.mxu0 %v7974_v20  ;;  %v8052_v17 = vld [vmem:[#allocation7 + $0xc7c] ss:$72 sps:$4 sm:$0xff]   ;;  %v5432_v20 = vpop.f32.mrf.mxu1 }
 0x1ab   :  { %5746 = vmatprep.subr.bf16.mxu1 %v7977_v21  ;;  %v5391_v21 = vpop.f32.mrf.mxu0 }
 0x1ad   :  { %5704 = vmatpush1.bf16.msra.mxu0 %v7972_v23 }
 0x1ae   :  { %5747 = vmatpush1.bf16.msra.mxu1 %v7975_v24  ;;  %5705 = vmatprep.subr.bf16.mxu0 %v7980_v25  ;;  %v8050_v24 = vld [vmem:[#allocation7 + $0xc78] ss:$72 sps:$4 sm:$0xff]   ;;  %v8055_v25 = vld [vmem:[#allocation7 + $0x157c] ss:$72 sps:$4 sm:$0xff]  }
 0x1af   :  { %5748 = vmatprep.subr.bf16.mxu1 %v7983_v28  ;;  %v5431_v28 = vadd.f32 %v5430_v7, %v5387_v62  ;;  %v8097_v62 = vld [vmem:[#allocation7 + $0x1a8c] ss:$72 sps:$4 sm:$0xff]   ;;  %v8098_v7 = vld [vmem:[#allocation7 + $0x10f8] ss:$72 sps:$4 sm:$0xff]  }
 0x1b1   :  { %5706 = vmatpush1.bf16.msra.mxu0 %v7978_v26  ;;  %v5429_v26 = vadd.f32 %v5428_v61, %v5385_v56  ;;  %v8083_v56 = vld [vmem:[#allocation7 + $0x12a8] ss:$72 sps:$4 sm:$0xff]   ;;  %v8094_v61 = vld [vmem:[#allocation7 + $0x118c] ss:$72 sps:$4 sm:$0xff]  }
 0x1b2   :  { %5749 = vmatpush1.bf16.msra.mxu1 %v7981_v29  ;;  %5707 = vmatprep.subr.bf16.mxu0 %v7986_v30  ;;  %v8053_v29 = vld [vmem:[#allocation7 + $0x1578] ss:$72 sps:$4 sm:$0xff]   ;;  %v8058_v30 = vld [vmem:[#allocation7 + $0xbec] ss:$72 sps:$4 sm:$0xff]  }
 0x1b3   :  { %5750 = vmatprep.subr.bf16.mxu1 %v7989_v4 }
 0x1b5   :  { %5708 = vmatpush1.bf16.msra.mxu0 %v7984_v31  ;;  %v5434_v31 = vpop.f32.mrf.mxu1 }
 0x1b6   :  { %5751 = vmatpush1.bf16.msra.mxu1 %v7987_v6  ;;  %5709 = vmatprep.subr.bf16.mxu0 %v7992_v32 }
 0x1b7   :  { %5752 = vmatprep.subr.bf16.mxu1 %v7995_v5 }
 0x1b9   :  { %5710 = vmatpush1.bf16.msra.mxu0 %v7990_v3  ;;  %v8061_v3 = vld [vmem:[#allocation7 + $0x14ec] ss:$72 sps:$4 sm:$0xff]  }
 0x1ba   :  { %5753 = vmatpush1.bf16.msra.mxu1 %v7993_v33  ;;  %5711 = vmatprep.subr.bf16.mxu0 %v7998_v34  ;;  %v5433_v33 = vadd.f32 %v5432_v20, %v5389_v8  ;;  %v5435_v34 = vadd.f32 %v5434_v31, %v5391_v21  ;;  %v8101_v8 = vld [vmem:[#allocation7 + $0x19f8] ss:$72 sps:$4 sm:$0xff]  }
 0x1bb   :  { %5754 = vmatprep.subr.bf16.mxu1 %v8001_v36  ;;  %v8056_v36 = vld [vmem:[#allocation7 + $0xbe8] ss:$72 sps:$4 sm:$0xff]   ;;  %v8110_v20 = vld [vmem:[#allocation7 + $0xfd8] ss:$72 sps:$4 sm:$0xff]  }
 0x1bc   :  { %v8113_v21 = vld [vmem:[#allocation7 + $0x18d8] ss:$72 sps:$4 sm:$0xff]  }
 0x1bd   :  { %5712 = vmatpush2.bf16.msra.mxu0 %v7996_v13  ;;  %v8125_v31 = vld [vmem:[#allocation7 + $0x17b8] ss:$72 sps:$4 sm:$0xff]  }
 0x1be   :  { %5755 = vmatpush2.bf16.msra.mxu1 %v7999_v37  ;;  %5713 = vmatprep.subr.bf16.mxu0 %v8004_v38  ;;  %v8059_v38 = vld [vmem:[#allocation7 + $0x14e8] ss:$72 sps:$4 sm:$0xff]  }
 0x1bf   :  { %5756 = vmatprep.subr.bf16.mxu1 %v8007_v22 }
 0x1c1   :  { %5714 = vmatpush2.bf16.msra.mxu0 %v8002_v39  ;;  %v8064_v39 = vld [vmem:[#allocation7 + $0xb5c] ss:$72 sps:$4 sm:$0xff]  }
 0x1c2   :  { %5757 = vmatpush2.bf16.msra.mxu1 %v8005_v40  ;;  %5715 = vmatprep.subr.bf16.mxu0 %v8010_v41  ;;  %v8067_v41 = vld [vmem:[#allocation7 + $0x145c] ss:$72 sps:$4 sm:$0xff]  }
 0x1c3   :  { %5758 = vmatprep.subr.bf16.mxu1 %v8013_v11  ;;  %v8062_v11 = vld [vmem:[#allocation7 + $0xb58] ss:$72 sps:$4 sm:$0xff]  }
 0x1c5   :  { %5716 = vmatpush2.bf16.msra.mxu0 %v8008_v42 }
 0x1c6   :  { %5759 = vmatpush2.bf16.msra.mxu1 %v8011_v35  ;;  %5717 = vmatprep.subr.bf16.mxu0 %v8016_v45  ;;  %v8065_v35 = vld [vmem:[#allocation7 + $0x1458] ss:$72 sps:$4 sm:$0xff]   ;;  %v8070_v45 = vld [vmem:[#allocation7 + $0xacc] ss:$72 sps:$4 sm:$0xff]  }
 0x1c7   :  { %5760 = vmatprep.subr.bf16.mxu1 %v8019_v47  ;;  %v8068_v47 = vld [vmem:[#allocation7 + $0xac8] ss:$72 sps:$4 sm:$0xff]  }
 0x1c9   :  { %5718 = vmatpush2.bf16.msra.mxu0 %v8014_v46  ;;  %v8073_v46 = vld [vmem:[#allocation7 + $0x13cc] ss:$72 sps:$4 sm:$0xff]  }
 0x1ca   :  { %5761 = vmatpush2.bf16.msra.mxu1 %v8017_v48  ;;  %5719 = vmatprep.subr.bf16.mxu0 %v8022_v49  ;;  %v8071_v48 = vld [vmem:[#allocation7 + $0x13c8] ss:$72 sps:$4 sm:$0xff]   ;;  %v8076_v49 = vld [vmem:[#allocation7 + $0xa3c] ss:$72 sps:$4 sm:$0xff]  }
 0x1cb   :  { %5762 = vmatprep.subr.bf16.mxu1 %v8025_v51  ;;  %v8074_v51 = vld [vmem:[#allocation7 + $0xa38] ss:$72 sps:$4 sm:$0xff]  }
 0x1cd   :  { %5720 = vmatpush2.bf16.msra.mxu0 %v8020_v50  ;;  %v8079_v50 = vld [vmem:[#allocation7 + $0x133c] ss:$72 sps:$4 sm:$0xff]  }
 0x1ce   :  { %5763 = vmatpush2.bf16.msra.mxu1 %v8023_v52  ;;  %5721 = vmatprep.subr.bf16.mxu0 %v8028_v53  ;;  %v8077_v52 = vld [vmem:[#allocation7 + $0x1338] ss:$72 sps:$4 sm:$0xff]   ;;  %v8082_v53 = vld [vmem:[#allocation7 + $0x9ac] ss:$72 sps:$4 sm:$0xff]  }
 0x1cf   :  { %5764 = vmatprep.subr.bf16.mxu1 %v8031_v55  ;;  %v8080_v55 = vld [vmem:[#allocation7 + $0x9a8] ss:$72 sps:$4 sm:$0xff]  }
 0x1d1   :  { %5722 = vmatpush2.bf16.msra.mxu0 %v8026_v54  ;;  %v8085_v54 = vld [vmem:[#allocation7 + $0x12ac] ss:$72 sps:$4 sm:$0xff]  }
 0x1d2   :  { %5765 = vmatpush2.bf16.msra.mxu1 %v8029_v57  ;;  %5723 = vmatprep.subr.bf16.mxu0 %v8034_v58  ;;  %v8088_v57 = vld [vmem:[#allocation7 + $0x91c] ss:$72 sps:$4 sm:$0xff]  }
 0x1d3   :  { %5766 = vmatprep.subr.bf16.mxu1 %v8037_v60  ;;  %v8091_v58 = vld [vmem:[#allocation7 + $0x121c] ss:$72 sps:$4 sm:$0xff]   ;;  %v8089_v60 = vld [vmem:[#allocation7 + $0x1218] ss:$72 sps:$4 sm:$0xff]  }
 0x1d5   :  { %5724 = vmatpush2.bf16.msra.mxu0 %v8032_v59  ;;  %v8086_v59 = vld [vmem:[#allocation7 + $0x918] ss:$72 sps:$4 sm:$0xff]  }
 0x1d6   :  { %5767 = vmatpush2.bf16.msra.mxu1 %v8035_v63  ;;  %5725 = vmatprep.subr.bf16.mxu0 %v8040_v0  ;;  %v8092_v63 = vld [vmem:[#allocation7 + $0x1188] ss:$72 sps:$4 sm:$0xff]  }
 0x1d7   :  { %5768 = vmatprep.subr.bf16.mxu1 %v8043_v2  ;;  %v8095_v0 = vld [vmem:[#allocation7 + $0x1a88] ss:$72 sps:$4 sm:$0xff]   ;;  %v8103_v2 = vld [vmem:[#allocation7 + $0x19fc] ss:$72 sps:$4 sm:$0xff]  }
 0x1d9   :  { %5726 = vmatpush2.bf16.msra.mxu0 %v8038_v1  ;;  %v8100_v1 = vld [vmem:[#allocation7 + $0x10fc] ss:$72 sps:$4 sm:$0xff]  }
 0x1da   :  { %5769 = vmatpush2.bf16.msra.mxu1 %v8041_v9  ;;  %5781 = vmatprep.subr.bf16.mxu0 %v8046_v12  ;;  %v8106_v9 = vld [vmem:[#allocation7 + $0x106c] ss:$72 sps:$4 sm:$0xff]  }
 0x1db   :  { %5824 = vmatprep.subr.bf16.mxu1 %v8049_v14  ;;  %v8109_v12 = vld [vmem:[#allocation7 + $0x196c] ss:$72 sps:$4 sm:$0xff]   ;;  %v8104_v14 = vld [vmem:[#allocation7 + $0x1068] ss:$72 sps:$4 sm:$0xff]  }
 0x1dc   :  { %v5471_v23 = vpop.f32.mrf.mxu0  ;;  %5728 = vmatmul.mubr.bf16.vlgmr.msra.gmra.mxu0 %v9078_v27 }
 0x1dd   :  { %5771 = vmatmul.mubr.bf16.vlgmr.msra.gmra.mxu1 %v9074_v18  ;;  %5782 = vmatpush1.bf16.msra.mxu0 %v8044_v15  ;;  %v5472_v6 = vadd.f32 %v5471_v23, %v5429_v26  ;;  %v8107_v15 = vld [vmem:[#allocation7 + $0x1968] ss:$72 sps:$4 sm:$0xff]   ;;  %v8118_v23 = vld [vmem:[#allocation7 + $0xf4c] ss:$72 sps:$4 sm:$0xff]  }
 0x1de   :  { %5813 = vmatprep.mubr.bf16.mxu0 %v9072_v10  ;;  %5825 = vmatpush1.bf16.msra.mxu1 %v8047_v16  ;;  %v5473_v4 = vpop.f32.mrf.mxu0  ;;  %v8112_v16 = vld [vmem:[#allocation7 + $0xfdc] ss:$72 sps:$4 sm:$0xff]   ;;  %v8119_v26 = vld [vmem:[#allocation7 + $0x1848] ss:$72 sps:$4 sm:$0xff]  }
 0x1df   :  { %5856 = vmatprep.mubr.bf16.mxu1 %v9084_v44  ;;  %v5474_v32 = vadd.f32 %v5473_v4, %v5431_v28  ;;  %5783 = vmatprep.subr.bf16.mxu0 %v8052_v17  ;;  %v8115_v17 = vld [vmem:[#allocation7 + $0x18dc] ss:$72 sps:$4 sm:$0xff]   ;;  %v8130_v4 = vld [vmem:[#allocation7 + $0xe2c] ss:$72 sps:$4 sm:$0xff]  }
 0x1e0   :  { %v5475_v5 = vpop.f32.mrf.mxu0  ;;  %5826 = vmatprep.subr.bf16.mxu1 %v8055_v25  ;;  %v8116_v25 = vld [vmem:[#allocation7 + $0xf48] ss:$72 sps:$4 sm:$0xff]   ;;  %v8124_v28 = vld [vmem:[#allocation7 + $0xebc] ss:$72 sps:$4 sm:$0xff]  }
 0x1e1   :  { %v7538_v13 = vpack.c.bf16 %v5474_v32, %v5472_v6  ;;  %5784 = vmatpush1.bf16.msra.mxu0 %v8050_v24  ;;  %v5476_v22 = vadd.f32 %v5475_v5, %v5433_v33  ;;  %v8121_v24 = vld [vmem:[#allocation7 + $0x184c] ss:$72 sps:$4 sm:$0xff]   ;;  %v5514_v6 = vpop.f32.mrf.mxu1  ;;  %v8131_v5 = vld [vmem:[#allocation7 + $0x1728] ss:$72 sps:$4 sm:$0xff]   ;;  %v8136_v33 = vld [vmem:[#allocation7 + $0xd9c] ss:$72 sps:$4 sm:$0xff]  }
 0x1e2   :  { %5827 = vmatpush1.bf16.msra.mxu1 %v8053_v29  ;;  %v5477_v37 = vpop.f32.mrf.mxu0  ;;  %5785 = vmatprep.subr.bf16.mxu0 %v8058_v30  ;;  %v8127_v29 = vld [vmem:[#allocation7 + $0x17bc] ss:$72 sps:$4 sm:$0xff]   ;;  %v8122_v30 = vld [vmem:[#allocation7 + $0xeb8] ss:$72 sps:$4 sm:$0xff]   ;;  %v8133_v32 = vld [vmem:[#allocation7 + $0x172c] ss:$72 sps:$4 sm:$0xff]  }
 0x1e3   :  { %6620 = vst [vmem:[#allocation8] sm:$0xff] %v7538_v13  ;;  %v5478_v40 = vadd.f32 %v5477_v37, %v5435_v34  ;;  %5828 = vmatprep.subr.bf16.mxu1 %v8061_v3  ;;  %v8128_v3 = vld [vmem:[#allocation7 + $0xe28] ss:$72 sps:$4 sm:$0xff]   ;;  %v5516_v34 = vpop.f32.mrf.mxu1  ;;  %v8139_v13 = vld [vmem:[#allocation7 + $0x169c] ss:$72 sps:$4 sm:$0xff]  }
 0x1e4   :  { %v8137_v37 = vld [vmem:[#allocation7 + $0x1698] ss:$72 sps:$4 sm:$0xff]  }
 0x1e5   :  { %v7547_v42 = vpack.c.bf16 %v5478_v40, %v5476_v22  ;;  %5786 = vmatpush1.bf16.msra.mxu0 %v8056_v36  ;;  %v8134_v36 = vld [vmem:[#allocation7 + $0xd98] ss:$72 sps:$4 sm:$0xff]   ;;  %v8145_v22 = vld [vmem:[#allocation7 + $0xd14] ss:$72 sps:$4 sm:$0xff]  }
 0x1e6   :  { %5829 = vmatpush1.bf16.msra.mxu1 %v8059_v38  ;;  %5787 = vmatprep.subr.bf16.mxu0 %v8064_v39  ;;  %v8142_v38 = vld [vmem:[#allocation7 + $0x414] ss:$72 sps:$4 sm:$0xff]   ;;  %v5518_v39 = vpop.f32.mrf.mxu1  ;;  %v8140_v40 = vld [vmem:[#allocation7 + $0x410] ss:$72 sps:$4 sm:$0xff]  }
 0x1e7   :  { %6629 = vst [vmem:[#allocation8 + $0x48] sm:$0xff] %v7547_v42  ;;  %5830 = vmatprep.subr.bf16.mxu1 %v8067_v41  ;;  %v8143_v41 = vld [vmem:[#allocation7 + $0xd10] ss:$72 sps:$4 sm:$0xff]  }
 0x1e8   :  { %v5520_v42 = vpop.f32.mrf.mxu1 }
 0x1e9   :  { %5788 = vmatpush1.bf16.msra.mxu0 %v8062_v11  ;;  %v8148_v11 = vld [vmem:[#allocation7 + $0x384] ss:$72 sps:$4 sm:$0xff]  }
 0x1ea   :  { %5831 = vmatpush1.bf16.msra.mxu1 %v8065_v35  ;;  %5789 = vmatprep.subr.bf16.mxu0 %v8070_v45  ;;  %v8151_v45 = vld [vmem:[#allocation7 + $0xc84] ss:$72 sps:$4 sm:$0xff]  }
 0x1eb   :  { %5832 = vmatprep.subr.bf16.mxu1 %v8073_v46 }
 0x1ed   :  { %5790 = vmatpush1.bf16.msra.mxu0 %v8068_v47 }
 0x1ee   :  { %5833 = vmatpush1.bf16.msra.mxu1 %v8071_v48  ;;  %5791 = vmatprep.subr.bf16.mxu0 %v8076_v49  ;;  %v8146_v48 = vld [vmem:[#allocation7 + $0x380] ss:$72 sps:$4 sm:$0xff]  }
 0x1ef   :  { %5834 = vmatprep.subr.bf16.mxu1 %v8079_v50  ;;  %v8149_v50 = vld [vmem:[#allocation7 + $0xc80] ss:$72 sps:$4 sm:$0xff]  }
 0x1f1   :  { %5792 = vmatpush1.bf16.msra.mxu0 %v8074_v51  ;;  %v8154_v51 = vld [vmem:[#allocation7 + $0x2f4] ss:$72 sps:$4 sm:$0xff]  }
 0x1f2   :  { %5835 = vmatpush1.bf16.msra.mxu1 %v8077_v52  ;;  %5793 = vmatprep.subr.bf16.mxu0 %v8082_v53 }
 0x1f3   :  { %5836 = vmatprep.subr.bf16.mxu1 %v8085_v54  ;;  %v8157_v54 = vld [vmem:[#allocation7 + $0xbf4] ss:$72 sps:$4 sm:$0xff]  }
 0x1f5   :  { %5794 = vmatpush1.bf16.msra.mxu0 %v8080_v55 }
 0x1f6   :  { %5837 = vmatpush1.bf16.msra.mxu1 %v8083_v56  ;;  %5795 = vmatprep.subr.bf16.mxu0 %v8088_v57 }
 0x1f7   :  { %5838 = vmatprep.subr.bf16.mxu1 %v8091_v58 }
 0x1f9   :  { %5796 = vmatpush1.bf16.msra.mxu0 %v8086_v59 }
 0x1fa   :  { %5839 = vmatpush1.bf16.msra.mxu1 %v8089_v60  ;;  %5797 = vmatprep.subr.bf16.mxu0 %v8094_v61  ;;  %v8152_v60 = vld [vmem:[#allocation7 + $0x2f0] ss:$72 sps:$4 sm:$0xff]  }
 0x1fb   :  { %5840 = vmatprep.subr.bf16.mxu1 %v8097_v62  ;;  %v8155_v62 = vld [vmem:[#allocation7 + $0xbf0] ss:$72 sps:$4 sm:$0xff]  }
 0x1fd   :  { %5798 = vmatpush2.bf16.msra.mxu0 %v8092_v63  ;;  %v8160_v63 = vld [vmem:[#allocation7 + $0x264] ss:$72 sps:$4 sm:$0xff]  }
 0x1fe   :  { %5841 = vmatpush2.bf16.msra.mxu1 %v8095_v0  ;;  %5799 = vmatprep.subr.bf16.mxu0 %v8100_v1 }
 0x1ff   :  { %5842 = vmatprep.subr.bf16.mxu1 %v8103_v2  ;;  %v8163_v2 = vld [vmem:[#allocation7 + $0xb64] ss:$72 sps:$4 sm:$0xff]  }
 0x201   :  { %5800 = vmatpush2.bf16.msra.mxu0 %v8098_v7 }
 0x202   :  { %5843 = vmatpush2.bf16.msra.mxu1 %v8101_v8  ;;  %5801 = vmatprep.subr.bf16.mxu0 %v8106_v9 }
 0x203   :  { %5844 = vmatprep.subr.bf16.mxu1 %v8109_v12  ;;  %v8158_v12 = vld [vmem:[#allocation7 + $0x260] ss:$72 sps:$4 sm:$0xff]  }
 0x205   :  { %5802 = vmatpush2.bf16.msra.mxu0 %v8104_v14  ;;  %v8161_v14 = vld [vmem:[#allocation7 + $0xb60] ss:$72 sps:$4 sm:$0xff]  }
 0x206   :  { %5845 = vmatpush2.bf16.msra.mxu1 %v8107_v15  ;;  %5803 = vmatprep.subr.bf16.mxu0 %v8112_v16  ;;  %v8166_v15 = vld [vmem:[#allocation7 + $0x1d4] ss:$72 sps:$4 sm:$0xff]  }
 0x207   :  { %5846 = vmatprep.subr.bf16.mxu1 %v8115_v17  ;;  %v8169_v17 = vld [vmem:[#allocation7 + $0xad4] ss:$72 sps:$4 sm:$0xff]  }
 0x209   :  { %5804 = vmatpush2.bf16.msra.mxu0 %v8110_v20  ;;  %v8164_v20 = vld [vmem:[#allocation7 + $0x1d0] ss:$72 sps:$4 sm:$0xff]  }
 0x20a   :  { %5847 = vmatpush2.bf16.msra.mxu1 %v8113_v21  ;;  %5805 = vmatprep.subr.bf16.mxu0 %v8118_v23  ;;  %v8167_v21 = vld [vmem:[#allocation7 + $0xad0] ss:$72 sps:$4 sm:$0xff]   ;;  %v8172_v23 = vld [vmem:[#allocation7 + $0x144] ss:$72 sps:$4 sm:$0xff]  }
 0x20b   :  { %5848 = vmatprep.subr.bf16.mxu1 %v8121_v24  ;;  %v8175_v24 = vld [vmem:[#allocation7 + $0xa44] ss:$72 sps:$4 sm:$0xff]  }
 0x20d   :  { %5806 = vmatpush2.bf16.msra.mxu0 %v8116_v25  ;;  %v8170_v25 = vld [vmem:[#allocation7 + $0x140] ss:$72 sps:$4 sm:$0xff]  }
 0x20e   :  { %5849 = vmatpush2.bf16.msra.mxu1 %v8119_v26  ;;  %5807 = vmatprep.subr.bf16.mxu0 %v8124_v28  ;;  %v8173_v26 = vld [vmem:[#allocation7 + $0xa40] ss:$72 sps:$4 sm:$0xff]   ;;  %v8178_v28 = vld [vmem:[#allocation7 + $0xb4] ss:$72 sps:$4 sm:$0xff]  }
 0x20f   :  { %5850 = vmatprep.subr.bf16.mxu1 %v8127_v29  ;;  %v8181_v29 = vld [vmem:[#allocation7 + $0x9b4] ss:$72 sps:$4 sm:$0xff]  }
 0x211   :  { %5808 = vmatpush2.bf16.msra.mxu0 %v8122_v30  ;;  %v8176_v30 = vld [vmem:[#allocation7 + $0xb0] ss:$72 sps:$4 sm:$0xff]  }
 0x212   :  { %5851 = vmatpush2.bf16.msra.mxu1 %v8125_v31  ;;  %5809 = vmatprep.subr.bf16.mxu0 %v8130_v4  ;;  %v8179_v31 = vld [vmem:[#allocation7 + $0x9b0] ss:$72 sps:$4 sm:$0xff]   ;;  %v8184_v4 = vld [vmem:[#allocation7 + $0x24] ss:$72 sps:$4 sm:$0xff]  }
 0x213   :  { %5852 = vmatprep.subr.bf16.mxu1 %v8133_v32  ;;  %v8182_v32 = vld [vmem:[#allocation7 + $0x20] ss:$72 sps:$4 sm:$0xff]  }
 0x215   :  { %5810 = vmatpush2.bf16.msra.mxu0 %v8128_v3  ;;  %v8185_v3 = vld [vmem:[#allocation7 + $0x920] ss:$72 sps:$4 sm:$0xff]  }
 0x216   :  { %5853 = vmatpush2.bf16.msra.mxu1 %v8131_v5  ;;  %5811 = vmatprep.subr.bf16.mxu0 %v8136_v33  ;;  %v8190_v5 = vld [vmem:[#allocation7 + $0x894] ss:$72 sps:$4 sm:$0xff]  }
 0x217   :  { %5854 = vmatprep.subr.bf16.mxu1 %v8139_v13  ;;  %v8193_v33 = vld [vmem:[#allocation7 + $0x1194] ss:$72 sps:$4 sm:$0xff]   ;;  %v8191_v13 = vld [vmem:[#allocation7 + $0x1190] ss:$72 sps:$4 sm:$0xff]  }
 0x219   :  { %5812 = vmatpush2.bf16.msra.mxu0 %v8134_v36  ;;  %v8196_v36 = vld [vmem:[#allocation7 + $0x804] ss:$72 sps:$4 sm:$0xff]  }
 0x21a   :  { %5855 = vmatpush2.bf16.msra.mxu1 %v8137_v37  ;;  %5867 = vmatprep.subr.bf16.mxu0 %v8142_v38  ;;  %v8199_v37 = vld [vmem:[#allocation7 + $0x1104] ss:$72 sps:$4 sm:$0xff]   ;;  %v8194_v38 = vld [vmem:[#allocation7 + $0x800] ss:$72 sps:$4 sm:$0xff]  }
 0x21b   :  { %5910 = vmatprep.subr.bf16.mxu1 %v8145_v22  ;;  %v8202_v22 = vld [vmem:[#allocation7 + $0x774] ss:$72 sps:$4 sm:$0xff]  }
 0x21c   :  { %v5557_v35 = vpop.f32.mrf.mxu0  ;;  %5814 = vmatmul.mubr.bf16.vlgmr.msra.gmra.mxu0 %v9076_v43 }
 0x21d   :  { %v5558_v46 = vadd.f32 %v5557_v35, %v5514_v6  ;;  %v5600_v47 = vpop.f32.mrf.mxu1  ;;  %5857 = vmatmul.mubr.bf16.vlgmr.msra.gmra.mxu1 %v9078_v27  ;;  %5868 = vmatpush1.bf16.msra.mxu0 %v8140_v40  ;;  %v8187_v6 = vld [vmem:[#allocation7 + $0x924] ss:$72 sps:$4 sm:$0xff]   ;;  %v8205_v40 = vld [vmem:[#allocation7 + $0x1074] ss:$72 sps:$4 sm:$0xff]  }
 0x21e   :  { %5899 = vmatprep.mubr.bf16.mxu0 %v9070_v19  ;;  %5911 = vmatpush1.bf16.msra.mxu1 %v8143_v41  ;;  %v5559_v49 = vpop.f32.mrf.mxu0  ;;  %v8200_v41 = vld [vmem:[#allocation7 + $0x770] ss:$72 sps:$4 sm:$0xff]   ;;  %v8211_v35 = vld [vmem:[#allocation7 + $0xfe4] ss:$72 sps:$4 sm:$0xff]  }
 0x21f   :  { %5942 = vmatprep.mubr.bf16.mxu1 %v9072_v10  ;;  %v5560_v52 = vadd.f32 %v5559_v49, %v5516_v34  ;;  %v5602_v53 = vpop.f32.mrf.mxu1  ;;  %5869 = vmatprep.subr.bf16.mxu0 %v8148_v11  ;;  %v5601_v56 = vadd.f32 %v5600_v47, %v5558_v46  ;;  %v8188_v34 = vld [vmem:[#allocation7 + $0x890] ss:$72 sps:$4 sm:$0xff]   ;;  %v8208_v11 = vld [vmem:[#allocation7 + $0x6e4] ss:$72 sps:$4 sm:$0xff]   ;;  %v8209_v46 = vld [vmem:[#allocation7 + $0xfe0] ss:$72 sps:$4 sm:$0xff]  }
 0x220   :  { %v5561_v55 = vpop.f32.mrf.mxu0  ;;  %5912 = vmatprep.subr.bf16.mxu1 %v8151_v45  ;;  %v8206_v45 = vld [vmem:[#allocation7 + $0x6e0] ss:$72 sps:$4 sm:$0xff]   ;;  %v8214_v47 = vld [vmem:[#allocation7 + $0x654] ss:$72 sps:$4 sm:$0xff]   ;;  %v8212_v49 = vld [vmem:[#allocation7 + $0x650] ss:$72 sps:$4 sm:$0xff]  }
 0x221   :  { %v5603_v57 = vadd.f32 %v5602_v53, %v5560_v52  ;;  %v5562_v58 = vadd.f32 %v5561_v55, %v5518_v39  ;;  %v5604_v59 = vpop.f32.mrf.mxu1  ;;  %5870 = vmatpush1.bf16.msra.mxu0 %v8146_v48  ;;  %v8197_v39 = vld [vmem:[#allocation7 + $0x1100] ss:$72 sps:$4 sm:$0xff]   ;;  %v8217_v48 = vld [vmem:[#allocation7 + $0xf54] ss:$72 sps:$4 sm:$0xff]   ;;  %v8223_v52 = vld [vmem:[#allocation7 + $0xec4] ss:$72 sps:$4 sm:$0xff]  }
 0x222   :  { %5913 = vmatpush1.bf16.msra.mxu1 %v8149_v50  ;;  %v5563_v61 = vpop.f32.mrf.mxu0  ;;  %5871 = vmatprep.subr.bf16.mxu0 %v8154_v51  ;;  %v8215_v50 = vld [vmem:[#allocation7 + $0xf50] ss:$72 sps:$4 sm:$0xff]   ;;  %v8220_v51 = vld [vmem:[#allocation7 + $0x5c4] ss:$72 sps:$4 sm:$0xff]   ;;  %v8218_v53 = vld [vmem:[#allocation7 + $0x5c0] ss:$72 sps:$4 sm:$0xff]  }
 0x223   :  { %v7539_v0 = vpack.c.bf16 %v5603_v57, %v5601_v56  ;;  %v5564_v1 = vadd.f32 %v5563_v61, %v5520_v42  ;;  %5914 = vmatprep.subr.bf16.mxu1 %v8157_v54  ;;  %v5606_v7 = vpop.f32.mrf.mxu1  ;;  %v5605_v8 = vadd.f32 %v5604_v59, %v5562_v58  ;;  %v8203_v42 = vld [vmem:[#allocation7 + $0x1070] ss:$72 sps:$4 sm:$0xff]   ;;  %v8221_v54 = vld [vmem:[#allocation7 + $0xec0] ss:$72 sps:$4 sm:$0xff]   ;;  %v8226_v55 = vld [vmem:[#allocation7 + $0x534] ss:$72 sps:$4 sm:$0xff]  }
 0x224   :  { %v8229_v56 = vld [vmem:[#allocation7 + $0xe34] ss:$72 sps:$4 sm:$0xff]   ;;  %v8224_v57 = vld [vmem:[#allocation7 + $0x530] ss:$72 sps:$4 sm:$0xff]   ;;  %v8232_v59 = vld [vmem:[#allocation7 + $0x4a4] ss:$72 sps:$4 sm:$0xff]  }
 0x225   :  { %6621 = vst [vmem:[#allocation8 + $0x8] sm:$0xff] %v7539_v0  ;;  %v5607_v9 = vadd.f32 %v5606_v7, %v5564_v1  ;;  %5872 = vmatpush1.bf16.msra.mxu0 %v8152_v60  ;;  %v8227_v58 = vld [vmem:[#allocation7 + $0xe30] ss:$72 sps:$4 sm:$0xff]   ;;  %v8235_v60 = vld [vmem:[#allocation7 + $0xda4] ss:$72 sps:$4 sm:$0xff]  }
 0x226   :  { %5915 = vmatpush1.bf16.msra.mxu1 %v8155_v62  ;;  %5873 = vmatprep.subr.bf16.mxu0 %v8160_v63  ;;  %v8230_v61 = vld [vmem:[#allocation7 + $0x4a0] ss:$72 sps:$4 sm:$0xff]   ;;  %v8238_v63 = vld [vmem:[#allocation7 + $0x1614] ss:$72 sps:$4 sm:$0xff]   ;;  %v8236_v1 = vld [vmem:[#allocation7 + $0x1610] ss:$72 sps:$4 sm:$0xff]  }
 0x227   :  { %v7548_v16 = vpack.c.bf16 %v5607_v9, %v5605_v8  ;;  %5916 = vmatprep.subr.bf16.mxu1 %v8163_v2  ;;  %v8233_v62 = vld [vmem:[#allocation7 + $0xda0] ss:$72 sps:$4 sm:$0xff]   ;;  %v8241_v0 = vld [vmem:[#allocation7 + $0x41c] ss:$72 sps:$4 sm:$0xff]   ;;  %v8247_v8 = vld [vmem:[#allocation7 + $0x38c] ss:$72 sps:$4 sm:$0xff]  }
 0x228   :  { %v8239_v2 = vld [vmem:[#allocation7 + $0x418] ss:$72 sps:$4 sm:$0xff]   ;;  %v8244_v7 = vld [vmem:[#allocation7 + $0x1584] ss:$72 sps:$4 sm:$0xff]  }
 0x229   :  { %6630 = vst [vmem:[#allocation8 + $0x50] sm:$0xff] %v7548_v16  ;;  %5874 = vmatpush1.bf16.msra.mxu0 %v8158_v12  ;;  %v8242_v9 = vld [vmem:[#allocation7 + $0x1580] ss:$72 sps:$4 sm:$0xff]   ;;  %v8248_v16 = vld [vmem:[#allocation7 + $0x14f0] ss:$72 sps:$4 sm:$0xff]  }
 0x22a   :  { %5917 = vmatpush1.bf16.msra.mxu1 %v8161_v14  ;;  %5875 = vmatprep.subr.bf16.mxu0 %v8166_v15  ;;  %v8245_v12 = vld [vmem:[#allocation7 + $0x388] ss:$72 sps:$4 sm:$0xff]   ;;  %v8250_v14 = vld [vmem:[#allocation7 + $0x14f4] ss:$72 sps:$4 sm:$0xff]  }
 0x22b   :  { %5918 = vmatprep.subr.bf16.mxu1 %v8169_v17  ;;  %v8253_v15 = vld [vmem:[#allocation7 + $0x2fc] ss:$72 sps:$4 sm:$0xff]   ;;  %v8251_v17 = vld [vmem:[#allocation7 + $0x2f8] ss:$72 sps:$4 sm:$0xff]  }
 0x22d   :  { %5876 = vmatpush1.bf16.msra.mxu0 %v8164_v20  ;;  %v8256_v20 = vld [vmem:[#allocation7 + $0x1464] ss:$72 sps:$4 sm:$0xff]  }
 0x22e   :  { %5919 = vmatpush1.bf16.msra.mxu1 %v8167_v21  ;;  %5877 = vmatprep.subr.bf16.mxu0 %v8172_v23  ;;  %v8259_v21 = vld [vmem:[#allocation7 + $0x26c] ss:$72 sps:$4 sm:$0xff]   ;;  %v8254_v23 = vld [vmem:[#allocation7 + $0x1460] ss:$72 sps:$4 sm:$0xff]  }
 0x22f   :  { %5920 = vmatprep.subr.bf16.mxu1 %v8175_v24  ;;  %v8257_v24 = vld [vmem:[#allocation7 + $0x268] ss:$72 sps:$4 sm:$0xff]  }
 0x231   :  { %5878 = vmatpush1.bf16.msra.mxu0 %v8170_v25  ;;  %v8262_v25 = vld [vmem:[#allocation7 + $0x13d4] ss:$72 sps:$4 sm:$0xff]  }
 0x232   :  { %5921 = vmatpush1.bf16.msra.mxu1 %v8173_v26  ;;  %5879 = vmatprep.subr.bf16.mxu0 %v8178_v28  ;;  %v8265_v26 = vld [vmem:[#allocation7 + $0x1dc] ss:$72 sps:$4 sm:$0xff]   ;;  %v8260_v28 = vld [vmem:[#allocation7 + $0x13d0] ss:$72 sps:$4 sm:$0xff]  }
 0x233   :  { %5922 = vmatprep.subr.bf16.mxu1 %v8181_v29  ;;  %v8263_v29 = vld [vmem:[#allocation7 + $0x1d8] ss:$72 sps:$4 sm:$0xff]  }
 0x235   :  { %5880 = vmatpush1.bf16.msra.mxu0 %v8176_v30  ;;  %v8268_v30 = vld [vmem:[#allocation7 + $0x1344] ss:$72 sps:$4 sm:$0xff]  }
 0x236   :  { %5923 = vmatpush1.bf16.msra.mxu1 %v8179_v31  ;;  %5881 = vmatprep.subr.bf16.mxu0 %v8184_v4  ;;  %v8271_v31 = vld [vmem:[#allocation7 + $0x14c] ss:$72 sps:$4 sm:$0xff]   ;;  %v8266_v4 = vld [vmem:[#allocation7 + $0x1340] ss:$72 sps:$4 sm:$0xff]  }
 0x237   :  { %5924 = vmatprep.subr.bf16.mxu1 %v8187_v6  ;;  %v8269_v6 = vld [vmem:[#allocation7 + $0x148] ss:$72 sps:$4 sm:$0xff]  }
 0x239   :  { %5882 = vmatpush1.bf16.msra.mxu0 %v8182_v32  ;;  %v8274_v32 = vld [vmem:[#allocation7 + $0x12b4] ss:$72 sps:$4 sm:$0xff]  }
 0x23a   :  { %5925 = vmatpush1.bf16.msra.mxu1 %v8185_v3  ;;  %5883 = vmatprep.subr.bf16.mxu0 %v8190_v5  ;;  %v8277_v3 = vld [vmem:[#allocation7 + $0xbc] ss:$72 sps:$4 sm:$0xff]   ;;  %v8272_v5 = vld [vmem:[#allocation7 + $0x12b0] ss:$72 sps:$4 sm:$0xff]  }
 0x23b   :  { %5926 = vmatprep.subr.bf16.mxu1 %v8193_v33  ;;  %v8275_v33 = vld [vmem:[#allocation7 + $0xb8] ss:$72 sps:$4 sm:$0xff]  }
 0x23d   :  { %5884 = vmatpush2.bf16.msra.mxu0 %v8188_v34  ;;  %v8280_v34 = vld [vmem:[#allocation7 + $0x1224] ss:$72 sps:$4 sm:$0xff]  }
 0x23e   :  { %5927 = vmatpush2.bf16.msra.mxu1 %v8191_v13  ;;  %5885 = vmatprep.subr.bf16.mxu0 %v8196_v36  ;;  %v8283_v13 = vld [vmem:[#allocation7 + $0x2c] ss:$72 sps:$4 sm:$0xff]   ;;  %v8278_v36 = vld [vmem:[#allocation7 + $0x1220] ss:$72 sps:$4 sm:$0xff]  }
 0x23f   :  { %5928 = vmatprep.subr.bf16.mxu1 %v8199_v37  ;;  %v8281_v37 = vld [vmem:[#allocation7 + $0x28] ss:$72 sps:$4 sm:$0xff]  }
 0x241   :  { %5886 = vmatpush2.bf16.msra.mxu0 %v8194_v38  ;;  %v8286_v38 = vld [vmem:[#allocation7 + $0x1a94] ss:$72 sps:$4 sm:$0xff]  }
 0x242   :  { %5929 = vmatpush2.bf16.msra.mxu1 %v8197_v39  ;;  %5887 = vmatprep.subr.bf16.mxu0 %v8202_v22  ;;  %v8289_v39 = vld [vmem:[#allocation7 + $0x89c] ss:$72 sps:$4 sm:$0xff]   ;;  %v8284_v22 = vld [vmem:[#allocation7 + $0x1a90] ss:$72 sps:$4 sm:$0xff]  }
 0x243   :  { %5930 = vmatprep.subr.bf16.mxu1 %v8205_v40  ;;  %v8287_v40 = vld [vmem:[#allocation7 + $0x898] ss:$72 sps:$4 sm:$0xff]  }
 0x245   :  { %5888 = vmatpush2.bf16.msra.mxu0 %v8200_v41  ;;  %v8292_v41 = vld [vmem:[#allocation7 + $0x1a04] ss:$72 sps:$4 sm:$0xff]  }
 0x246   :  { %5931 = vmatpush2.bf16.msra.mxu1 %v8203_v42  ;;  %5889 = vmatprep.subr.bf16.mxu0 %v8208_v11  ;;  %v8295_v42 = vld [vmem:[#allocation7 + $0x80c] ss:$72 sps:$4 sm:$0xff]   ;;  %v8290_v11 = vld [vmem:[#allocation7 + $0x1a00] ss:$72 sps:$4 sm:$0xff]  }
 0x247   :  { %5932 = vmatprep.subr.bf16.mxu1 %v8211_v35  ;;  %v8293_v35 = vld [vmem:[#allocation7 + $0x808] ss:$72 sps:$4 sm:$0xff]  }
 0x249   :  { %5890 = vmatpush2.bf16.msra.mxu0 %v8206_v45  ;;  %v8298_v45 = vld [vmem:[#allocation7 + $0x1974] ss:$72 sps:$4 sm:$0xff]  }
 0x24a   :  { %5933 = vmatpush2.bf16.msra.mxu1 %v8209_v46  ;;  %5891 = vmatprep.subr.bf16.mxu0 %v8214_v47  ;;  %v8301_v46 = vld [vmem:[#allocation7 + $0x77c] ss:$72 sps:$4 sm:$0xff]   ;;  %v8296_v47 = vld [vmem:[#allocation7 + $0x1970] ss:$72 sps:$4 sm:$0xff]  }
 0x24b   :  { %5934 = vmatprep.subr.bf16.mxu1 %v8217_v48  ;;  %v8299_v48 = vld [vmem:[#allocation7 + $0x778] ss:$72 sps:$4 sm:$0xff]  }
 0x24d   :  { %5892 = vmatpush2.bf16.msra.mxu0 %v8212_v49  ;;  %v8304_v49 = vld [vmem:[#allocation7 + $0x18e4] ss:$72 sps:$4 sm:$0xff]  }
 0x24e   :  { %5935 = vmatpush2.bf16.msra.mxu1 %v8215_v50  ;;  %5893 = vmatprep.subr.bf16.mxu0 %v8220_v51  ;;  %v8307_v50 = vld [vmem:[#allocation7 + $0x6ec] ss:$72 sps:$4 sm:$0xff]   ;;  %v8302_v51 = vld [vmem:[#allocation7 + $0x18e0] ss:$72 sps:$4 sm:$0xff]  }
 0x24f   :  { %5936 = vmatprep.subr.bf16.mxu1 %v8223_v52  ;;  %v8305_v52 = vld [vmem:[#allocation7 + $0x6e8] ss:$72 sps:$4 sm:$0xff]  }
 0x251   :  { %5894 = vmatpush2.bf16.msra.mxu0 %v8218_v53  ;;  %v8310_v53 = vld [vmem:[#allocation7 + $0x1854] ss:$72 sps:$4 sm:$0xff]  }
 0x252   :  { %5937 = vmatpush2.bf16.msra.mxu1 %v8221_v54  ;;  %5895 = vmatprep.subr.bf16.mxu0 %v8226_v55  ;;  %v8313_v54 = vld [vmem:[#allocation7 + $0x65c] ss:$72 sps:$4 sm:$0xff]   ;;  %v8308_v55 = vld [vmem:[#allocation7 + $0x1850] ss:$72 sps:$4 sm:$0xff]  }
 0x253   :  { %5938 = vmatprep.subr.bf16.mxu1 %v8229_v56  ;;  %v8311_v56 = vld [vmem:[#allocation7 + $0x658] ss:$72 sps:$4 sm:$0xff]  }
 0x255   :  { %5896 = vmatpush2.bf16.msra.mxu0 %v8224_v57  ;;  %v8316_v57 = vld [vmem:[#allocation7 + $0x17c4] ss:$72 sps:$4 sm:$0xff]  }
 0x256   :  { %5939 = vmatpush2.bf16.msra.mxu1 %v8227_v58  ;;  %5897 = vmatprep.subr.bf16.mxu0 %v8232_v59  ;;  %v8319_v58 = vld [vmem:[#allocation7 + $0x5cc] ss:$72 sps:$4 sm:$0xff]   ;;  %v8314_v59 = vld [vmem:[#allocation7 + $0x17c0] ss:$72 sps:$4 sm:$0xff]  }
 0x257   :  { %5940 = vmatprep.subr.bf16.mxu1 %v8235_v60 }
 0x259   :  { %5898 = vmatpush2.bf16.msra.mxu0 %v8230_v61  ;;  %v8317_v61 = vld [vmem:[#allocation7 + $0x5c8] ss:$72 sps:$4 sm:$0xff]  }
 0x25a   :  { %5941 = vmatpush2.bf16.msra.mxu1 %v8233_v62  ;;  %5953 = vmatprep.subr.bf16.mxu0 %v8238_v63  ;;  %v8322_v62 = vld [vmem:[#allocation7 + $0x1734] ss:$72 sps:$4 sm:$0xff]  }
 0x25b   :  { %5996 = vmatprep.subr.bf16.mxu1 %v8241_v0  ;;  %v8325_v63 = vld [vmem:[#allocation7 + $0x53c] ss:$72 sps:$4 sm:$0xff]   ;;  %v8320_v0 = vld [vmem:[#allocation7 + $0x1730] ss:$72 sps:$4 sm:$0xff]  }
 0x25c   :  { %5900 = vmatmul.mubr.bf16.vlgmr.msra.gmra.mxu0 %v9074_v18  ;;  %v5643_v60 = vpop.f32.mrf.mxu0 }
 0x25d   :  { %5943 = vmatmul.mubr.bf16.vlgmr.msra.gmra.mxu1 %v9076_v43  ;;  %5954 = vmatpush1.bf16.msra.mxu0 %v8236_v1  ;;  %v5686_v1 = vpop.f32.mrf.mxu1 }
 0x25e   :  { %5985 = vmatprep.mubr.bf16.mxu0 %v9084_v44  ;;  %5997 = vmatpush1.bf16.msra.mxu1 %v8239_v2  ;;  %v5645_v2 = vpop.f32.mrf.mxu0 }
 0x25f   :  { %6028 = vmatprep.mubr.bf16.mxu1 %v9070_v19  ;;  %5955 = vmatprep.subr.bf16.mxu0 %v8244_v7  ;;  %v8323_v7 = vld [vmem:[#allocation7 + $0x538] ss:$72 sps:$4 sm:$0xff]  }
 0x260   :  { %5998 = vmatprep.subr.bf16.mxu1 %v8247_v8  ;;  %v8328_v8 = vld [vmem:[#allocation7 + $0x16a4] ss:$72 sps:$4 sm:$0xff]  }
 0x261   :  { %5956 = vmatpush1.bf16.msra.mxu0 %v8242_v9  ;;  %v8331_v9 = vld [vmem:[#allocation7 + $0x4ac] ss:$72 sps:$4 sm:$0xff]  }
 0x262   :  { %5999 = vmatpush1.bf16.msra.mxu1 %v8245_v12  ;;  %5957 = vmatprep.subr.bf16.mxu0 %v8250_v14  ;;  %v8326_v12 = vld [vmem:[#allocation7 + $0x16a0] ss:$72 sps:$4 sm:$0xff]   ;;  %v5688_v14 = vpop.f32.mrf.mxu1 }
 0x263   :  { %6000 = vmatprep.subr.bf16.mxu1 %v8253_v15  ;;  %v5647_v15 = vpop.f32.mrf.mxu0 }
 0x265   :  { %5958 = vmatpush1.bf16.msra.mxu0 %v8248_v16  ;;  %v8329_v16 = vld [vmem:[#allocation7 + $0x4a8] ss:$72 sps:$4 sm:$0xff]  }
 0x266   :  { %6001 = vmatpush1.bf16.msra.mxu1 %v8251_v17  ;;  %5959 = vmatprep.subr.bf16.mxu0 %v8256_v20  ;;  %v8334_v17 = vld [vmem:[#allocation7 + $0xd1c] ss:$72 sps:$4 sm:$0xff]  }
 0x267   :  { %6002 = vmatprep.subr.bf16.mxu1 %v8259_v21  ;;  %v8337_v20 = vld [vmem:[#allocation7 + $0x161c] ss:$72 sps:$4 sm:$0xff]   ;;  %v8332_v21 = vld [vmem:[#allocation7 + $0xd18] ss:$72 sps:$4 sm:$0xff]  }
 0x269   :  { %5960 = vmatpush1.bf16.msra.mxu0 %v8254_v23  ;;  %v5690_v23 = vpop.f32.mrf.mxu1 }
 0x26a   :  { %6003 = vmatpush1.bf16.msra.mxu1 %v8257_v24  ;;  %5961 = vmatprep.subr.bf16.mxu0 %v8262_v25  ;;  %v5649_v24 = vpop.f32.mrf.mxu0  ;;  %v8335_v25 = vld [vmem:[#allocation7 + $0x1618] ss:$72 sps:$4 sm:$0xff]  }
 0x26b   :  { %6004 = vmatprep.subr.bf16.mxu1 %v8265_v26  ;;  %v8340_v26 = vld [vmem:[#allocation7 + $0xc8c] ss:$72 sps:$4 sm:$0xff]  }
 0x26d   :  { %5962 = vmatpush1.bf16.msra.mxu0 %v8260_v28 }
 0x26e   :  { %6005 = vmatpush1.bf16.msra.mxu1 %v8263_v29  ;;  %5963 = vmatprep.subr.bf16.mxu0 %v8268_v30  ;;  %v8343_v29 = vld [vmem:[#allocation7 + $0x158c] ss:$72 sps:$4 sm:$0xff]   ;;  %v5687_v30 = vadd.f32 %v5686_v1, %v5643_v60  ;;  %v8371_v60 = vld [vmem:[#allocation7 + $0x12b8] ss:$72 sps:$4 sm:$0xff]   ;;  %v8382_v1 = vld [vmem:[#allocation7 + $0x119c] ss:$72 sps:$4 sm:$0xff]  }
 0x26f   :  { %6006 = vmatprep.subr.bf16.mxu1 %v8271_v31  ;;  %v5689_v31 = vadd.f32 %v5688_v14, %v5645_v2  ;;  %v8385_v2 = vld [vmem:[#allocation7 + $0x1a9c] ss:$72 sps:$4 sm:$0xff]   ;;  %v8386_v14 = vld [vmem:[#allocation7 + $0x1108] ss:$72 sps:$4 sm:$0xff]  }
 0x271   :  { %5964 = vmatpush1.bf16.msra.mxu0 %v8266_v4  ;;  %v8338_v4 = vld [vmem:[#allocation7 + $0xc88] ss:$72 sps:$4 sm:$0xff]  }
 0x272   :  { %6007 = vmatpush1.bf16.msra.mxu1 %v8269_v6  ;;  %5965 = vmatprep.subr.bf16.mxu0 %v8274_v32  ;;  %v5692_v6 = vpop.f32.mrf.mxu1 }
 0x273   :  { %6008 = vmatprep.subr.bf16.mxu1 %v8277_v3  ;;  %v8341_v3 = vld [vmem:[#allocation7 + $0x1588] ss:$72 sps:$4 sm:$0xff]  }
 0x275   :  { %5966 = vmatpush1.bf16.msra.mxu0 %v8272_v5  ;;  %v8346_v5 = vld [vmem:[#allocation7 + $0xbfc] ss:$72 sps:$4 sm:$0xff]  }
 0x276   :  { %6009 = vmatpush1.bf16.msra.mxu1 %v8275_v33  ;;  %5967 = vmatprep.subr.bf16.mxu0 %v8280_v34 }
 0x277   :  { %6010 = vmatprep.subr.bf16.mxu1 %v8283_v13  ;;  %v8349_v13 = vld [vmem:[#allocation7 + $0x14fc] ss:$72 sps:$4 sm:$0xff]  }
 0x279   :  { %5968 = vmatpush1.bf16.msra.mxu0 %v8278_v36 }
 0x27a   :  { %6011 = vmatpush1.bf16.msra.mxu1 %v8281_v37  ;;  %5969 = vmatprep.subr.bf16.mxu0 %v8286_v38  ;;  %v5691_v37 = vadd.f32 %v5690_v23, %v5647_v15  ;;  %v5693_v38 = vadd.f32 %v5692_v6, %v5649_v24  ;;  %v8389_v15 = vld [vmem:[#allocation7 + $0x1a08] ss:$72 sps:$4 sm:$0xff]   ;;  %v8400_v23 = vld [vmem:[#allocation7 + $0xfec] ss:$72 sps:$4 sm:$0xff]  }
 0x27b   :  { %6012 = vmatprep.subr.bf16.mxu1 %v8289_v39  ;;  %v8403_v24 = vld [vmem:[#allocation7 + $0x18ec] ss:$72 sps:$4 sm:$0xff]  }
 0x27c   :  { %v8415_v6 = vld [vmem:[#allocation7 + $0x17cc] ss:$72 sps:$4 sm:$0xff]  }
 0x27d   :  { %5970 = vmatpush2.bf16.msra.mxu0 %v8284_v22  ;;  %v8344_v22 = vld [vmem:[#allocation7 + $0xbf8] ss:$72 sps:$4 sm:$0xff]  }
 0x27e   :  { %6013 = vmatpush2.bf16.msra.mxu1 %v8287_v40  ;;  %5971 = vmatprep.subr.bf16.mxu0 %v8292_v41  ;;  %v8347_v41 = vld [vmem:[#allocation7 + $0x14f8] ss:$72 sps:$4 sm:$0xff]  }
 0x27f   :  { %6014 = vmatprep.subr.bf16.mxu1 %v8295_v42  ;;  %v8352_v42 = vld [vmem:[#allocation7 + $0xb6c] ss:$72 sps:$4 sm:$0xff]  }
 0x281   :  { %5972 = vmatpush2.bf16.msra.mxu0 %v8290_v11 }
 0x282   :  { %6015 = vmatpush2.bf16.msra.mxu1 %v8293_v35  ;;  %5973 = vmatprep.subr.bf16.mxu0 %v8298_v45  ;;  %v8355_v45 = vld [vmem:[#allocation7 + $0x146c] ss:$72 sps:$4 sm:$0xff]  }
 0x283   :  { %6016 = vmatprep.subr.bf16.mxu1 %v8301_v46 }
 0x285   :  { %5974 = vmatpush2.bf16.msra.mxu0 %v8296_v47  ;;  %v8350_v47 = vld [vmem:[#allocation7 + $0xb68] ss:$72 sps:$4 sm:$0xff]  }
 0x286   :  { %6017 = vmatpush2.bf16.msra.mxu1 %v8299_v48  ;;  %5975 = vmatprep.subr.bf16.mxu0 %v8304_v49  ;;  %v8353_v48 = vld [vmem:[#allocation7 + $0x1468] ss:$72 sps:$4 sm:$0xff]   ;;  %v8358_v49 = vld [vmem:[#allocation7 + $0xadc] ss:$72 sps:$4 sm:$0xff]  }
 0x287   :  { %6018 = vmatprep.subr.bf16.mxu1 %v8307_v50  ;;  %v8361_v50 = vld [vmem:[#allocation7 + $0x13dc] ss:$72 sps:$4 sm:$0xff]  }
 0x289   :  { %5976 = vmatpush2.bf16.msra.mxu0 %v8302_v51  ;;  %v8356_v51 = vld [vmem:[#allocation7 + $0xad8] ss:$72 sps:$4 sm:$0xff]  }
 0x28a   :  { %6019 = vmatpush2.bf16.msra.mxu1 %v8305_v52  ;;  %5977 = vmatprep.subr.bf16.mxu0 %v8310_v53  ;;  %v8359_v52 = vld [vmem:[#allocation7 + $0x13d8] ss:$72 sps:$4 sm:$0xff]   ;;  %v8364_v53 = vld [vmem:[#allocation7 + $0xa4c] ss:$72 sps:$4 sm:$0xff]  }
 0x28b   :  { %6020 = vmatprep.subr.bf16.mxu1 %v8313_v54  ;;  %v8367_v54 = vld [vmem:[#allocation7 + $0x134c] ss:$72 sps:$4 sm:$0xff]  }
 0x28d   :  { %5978 = vmatpush2.bf16.msra.mxu0 %v8308_v55  ;;  %v8362_v55 = vld [vmem:[#allocation7 + $0xa48] ss:$72 sps:$4 sm:$0xff]  }
 0x28e   :  { %6021 = vmatpush2.bf16.msra.mxu1 %v8311_v56  ;;  %5979 = vmatprep.subr.bf16.mxu0 %v8316_v57  ;;  %v8365_v56 = vld [vmem:[#allocation7 + $0x1348] ss:$72 sps:$4 sm:$0xff]   ;;  %v8370_v57 = vld [vmem:[#allocation7 + $0x9bc] ss:$72 sps:$4 sm:$0xff]  }
 0x28f   :  { %6022 = vmatprep.subr.bf16.mxu1 %v8319_v58  ;;  %v8373_v58 = vld [vmem:[#allocation7 + $0x12bc] ss:$72 sps:$4 sm:$0xff]  }
 0x291   :  { %5980 = vmatpush2.bf16.msra.mxu0 %v8314_v59  ;;  %v8368_v59 = vld [vmem:[#allocation7 + $0x9b8] ss:$72 sps:$4 sm:$0xff]  }
 0x292   :  { %6023 = vmatpush2.bf16.msra.mxu1 %v8317_v61  ;;  %5981 = vmatprep.subr.bf16.mxu0 %v8322_v62  ;;  %v8376_v61 = vld [vmem:[#allocation7 + $0x92c] ss:$72 sps:$4 sm:$0xff]  }
 0x293   :  { %6024 = vmatprep.subr.bf16.mxu1 %v8325_v63  ;;  %v8379_v62 = vld [vmem:[#allocation7 + $0x122c] ss:$72 sps:$4 sm:$0xff]   ;;  %v8374_v63 = vld [vmem:[#allocation7 + $0x928] ss:$72 sps:$4 sm:$0xff]  }
 0x295   :  { %5982 = vmatpush2.bf16.msra.mxu0 %v8320_v0  ;;  %v8377_v0 = vld [vmem:[#allocation7 + $0x1228] ss:$72 sps:$4 sm:$0xff]  }
 0x296   :  { %6025 = vmatpush2.bf16.msra.mxu1 %v8323_v7  ;;  %5983 = vmatprep.subr.bf16.mxu0 %v8328_v8  ;;  %v8380_v7 = vld [vmem:[#allocation7 + $0x1198] ss:$72 sps:$4 sm:$0xff]  }
 0x297   :  { %6026 = vmatprep.subr.bf16.mxu1 %v8331_v9  ;;  %v8383_v8 = vld [vmem:[#allocation7 + $0x1a98] ss:$72 sps:$4 sm:$0xff]   ;;  %v8388_v9 = vld [vmem:[#allocation7 + $0x110c] ss:$72 sps:$4 sm:$0xff]  }
 0x299   :  { %5984 = vmatpush2.bf16.msra.mxu0 %v8326_v12  ;;  %v8391_v12 = vld [vmem:[#allocation7 + $0x1a0c] ss:$72 sps:$4 sm:$0xff]  }
 0x29a   :  { %6027 = vmatpush2.bf16.msra.mxu1 %v8329_v16  ;;  %6039 = vmatprep.subr.bf16.mxu0 %v8334_v17  ;;  %v8394_v16 = vld [vmem:[#allocation7 + $0x107c] ss:$72 sps:$4 sm:$0xff]  }
 0x29b   :  { %6082 = vmatprep.subr.bf16.mxu1 %v8337_v20  ;;  %v8397_v17 = vld [vmem:[#allocation7 + $0x197c] ss:$72 sps:$4 sm:$0xff]   ;;  %v8392_v20 = vld [vmem:[#allocation7 + $0x1078] ss:$72 sps:$4 sm:$0xff]  }
 0x29c   :  { %v5729_v28 = vpop.f32.mrf.mxu0  ;;  %5986 = vmatmul.mubr.bf16.vlgmr.msra.gmra.mxu0 %v9078_v27 }
 0x29d   :  { %6029 = vmatmul.mubr.bf16.vlgmr.msra.gmra.mxu1 %v9074_v18  ;;  %6040 = vmatpush1.bf16.msra.mxu0 %v8332_v21  ;;  %v5730_v33 = vadd.f32 %v5729_v28, %v5687_v30  ;;  %v8395_v21 = vld [vmem:[#allocation7 + $0x1978] ss:$72 sps:$4 sm:$0xff]   ;;  %v8406_v28 = vld [vmem:[#allocation7 + $0xf5c] ss:$72 sps:$4 sm:$0xff]  }
 0x29e   :  { %6071 = vmatprep.mubr.bf16.mxu0 %v9072_v10  ;;  %6083 = vmatpush1.bf16.msra.mxu1 %v8335_v25  ;;  %v5731_v32 = vpop.f32.mrf.mxu0  ;;  %v8398_v25 = vld [vmem:[#allocation7 + $0xfe8] ss:$72 sps:$4 sm:$0xff]   ;;  %v8404_v30 = vld [vmem:[#allocation7 + $0xf58] ss:$72 sps:$4 sm:$0xff]  }
 0x29f   :  { %6114 = vmatprep.mubr.bf16.mxu1 %v9084_v44  ;;  %v5732_v34 = vadd.f32 %v5731_v32, %v5689_v31  ;;  %6041 = vmatprep.subr.bf16.mxu0 %v8340_v26  ;;  %v8401_v26 = vld [vmem:[#allocation7 + $0x18e8] ss:$72 sps:$4 sm:$0xff]   ;;  %v8407_v31 = vld [vmem:[#allocation7 + $0x1858] ss:$72 sps:$4 sm:$0xff]  }
 0x2a0   :  { %v5733_v36 = vpop.f32.mrf.mxu0  ;;  %6084 = vmatprep.subr.bf16.mxu1 %v8343_v29  ;;  %v8409_v29 = vld [vmem:[#allocation7 + $0x185c] ss:$72 sps:$4 sm:$0xff]   ;;  %v8410_v32 = vld [vmem:[#allocation7 + $0xec8] ss:$72 sps:$4 sm:$0xff]  }
 0x2a1   :  { %v7540_v39 = vpack.c.bf16 %v5732_v34, %v5730_v33  ;;  %6042 = vmatpush1.bf16.msra.mxu0 %v8338_v4  ;;  %v5734_v11 = vadd.f32 %v5733_v36, %v5691_v37  ;;  %v8412_v4 = vld [vmem:[#allocation7 + $0xecc] ss:$72 sps:$4 sm:$0xff]   ;;  %v5772_v33 = vpop.f32.mrf.mxu1  ;;  %v8421_v34 = vld [vmem:[#allocation7 + $0x173c] ss:$72 sps:$4 sm:$0xff]   ;;  %v8419_v36 = vld [vmem:[#allocation7 + $0x1738] ss:$72 sps:$4 sm:$0xff]  }
 0x2a2   :  { %6085 = vmatpush1.bf16.msra.mxu1 %v8341_v3  ;;  %v5735_v40 = vpop.f32.mrf.mxu0  ;;  %6043 = vmatprep.subr.bf16.mxu0 %v8346_v5  ;;  %v8413_v3 = vld [vmem:[#allocation7 + $0x17c8] ss:$72 sps:$4 sm:$0xff]   ;;  %v8418_v5 = vld [vmem:[#allocation7 + $0xe3c] ss:$72 sps:$4 sm:$0xff]   ;;  %v8424_v37 = vld [vmem:[#allocation7 + $0xdac] ss:$72 sps:$4 sm:$0xff]  }
 0x2a3   :  { %6622 = vst [vmem:[#allocation8 + $0x10] sm:$0xff] %v7540_v39  ;;  %v5736_v35 = vadd.f32 %v5735_v40, %v5693_v38  ;;  %6086 = vmatprep.subr.bf16.mxu1 %v8349_v13  ;;  %v8416_v13 = vld [vmem:[#allocation7 + $0xe38] ss:$72 sps:$4 sm:$0xff]   ;;  %v5774_v38 = vpop.f32.mrf.mxu1  ;;  %v8427_v39 = vld [vmem:[#allocation7 + $0x16ac] ss:$72 sps:$4 sm:$0xff]  }
 0x2a4   :  { %v8425_v40 = vld [vmem:[#allocation7 + $0x16a8] ss:$72 sps:$4 sm:$0xff]  }
 0x2a5   :  { %v7549_v46 = vpack.c.bf16 %v5736_v35, %v5734_v11  ;;  %6044 = vmatpush1.bf16.msra.mxu0 %v8344_v22  ;;  %v8422_v22 = vld [vmem:[#allocation7 + $0xda8] ss:$72 sps:$4 sm:$0xff]   ;;  %v8433_v11 = vld [vmem:[#allocation7 + $0xd24] ss:$72 sps:$4 sm:$0xff]  }
 0x2a6   :  { %6087 = vmatpush1.bf16.msra.mxu1 %v8347_v41  ;;  %6045 = vmatprep.subr.bf16.mxu0 %v8352_v42  ;;  %v8430_v41 = vld [vmem:[#allocation7 + $0x424] ss:$72 sps:$4 sm:$0xff]   ;;  %v5776_v42 = vpop.f32.mrf.mxu1  ;;  %v8428_v35 = vld [vmem:[#allocation7 + $0x420] ss:$72 sps:$4 sm:$0xff]  }
 0x2a7   :  { %6631 = vst [vmem:[#allocation8 + $0x58] sm:$0xff] %v7549_v46  ;;  %6088 = vmatprep.subr.bf16.mxu1 %v8355_v45  ;;  %v8431_v45 = vld [vmem:[#allocation7 + $0xd20] ss:$72 sps:$4 sm:$0xff]  }
 0x2a8   :  { %v5778_v46 = vpop.f32.mrf.mxu1 }
 0x2a9   :  { %6046 = vmatpush1.bf16.msra.mxu0 %v8350_v47  ;;  %v8436_v47 = vld [vmem:[#allocation7 + $0x394] ss:$72 sps:$4 sm:$0xff]  }
 0x2aa   :  { %6089 = vmatpush1.bf16.msra.mxu1 %v8353_v48  ;;  %6047 = vmatprep.subr.bf16.mxu0 %v8358_v49  ;;  %v8439_v49 = vld [vmem:[#allocation7 + $0xc94] ss:$72 sps:$4 sm:$0xff]  }
 0x2ab   :  { %6090 = vmatprep.subr.bf16.mxu1 %v8361_v50 }
 0x2ad   :  { %6048 = vmatpush1.bf16.msra.mxu0 %v8356_v51 }
 0x2ae   :  { %6091 = vmatpush1.bf16.msra.mxu1 %v8359_v52  ;;  %6049 = vmatprep.subr.bf16.mxu0 %v8364_v53  ;;  %v8434_v52 = vld [vmem:[#allocation7 + $0x390] ss:$72 sps:$4 sm:$0xff]  }
 0x2af   :  { %6092 = vmatprep.subr.bf16.mxu1 %v8367_v54  ;;  %v8437_v54 = vld [vmem:[#allocation7 + $0xc90] ss:$72 sps:$4 sm:$0xff]  }
 0x2b1   :  { %6050 = vmatpush1.bf16.msra.mxu0 %v8362_v55  ;;  %v8442_v55 = vld [vmem:[#allocation7 + $0x304] ss:$72 sps:$4 sm:$0xff]  }
 0x2b2   :  { %6093 = vmatpush1.bf16.msra.mxu1 %v8365_v56  ;;  %6051 = vmatprep.subr.bf16.mxu0 %v8370_v57 }
 0x2b3   :  { %6094 = vmatprep.subr.bf16.mxu1 %v8373_v58  ;;  %v8445_v58 = vld [vmem:[#allocation7 + $0xc04] ss:$72 sps:$4 sm:$0xff]  }
 0x2b5   :  { %6052 = vmatpush1.bf16.msra.mxu0 %v8368_v59 }
 0x2b6   :  { %6095 = vmatpush1.bf16.msra.mxu1 %v8371_v60  ;;  %6053 = vmatprep.subr.bf16.mxu0 %v8376_v61 }
 0x2b7   :  { %6096 = vmatprep.subr.bf16.mxu1 %v8379_v62 }
 0x2b9   :  { %6054 = vmatpush1.bf16.msra.mxu0 %v8374_v63 }
 0x2ba   :  { %6097 = vmatpush1.bf16.msra.mxu1 %v8377_v0  ;;  %6055 = vmatprep.subr.bf16.mxu0 %v8382_v1  ;;  %v8440_v0 = vld [vmem:[#allocation7 + $0x300] ss:$72 sps:$4 sm:$0xff]  }
 0x2bb   :  { %6098 = vmatprep.subr.bf16.mxu1 %v8385_v2  ;;  %v8443_v2 = vld [vmem:[#allocation7 + $0xc00] ss:$72 sps:$4 sm:$0xff]  }
 0x2bd   :  { %6056 = vmatpush2.bf16.msra.mxu0 %v8380_v7  ;;  %v8448_v7 = vld [vmem:[#allocation7 + $0x274] ss:$72 sps:$4 sm:$0xff]  }
 0x2be   :  { %6099 = vmatpush2.bf16.msra.mxu1 %v8383_v8  ;;  %6057 = vmatprep.subr.bf16.mxu0 %v8388_v9 }
 0x2bf   :  { %6100 = vmatprep.subr.bf16.mxu1 %v8391_v12  ;;  %v8451_v12 = vld [vmem:[#allocation7 + $0xb74] ss:$72 sps:$4 sm:$0xff]  }
 0x2c1   :  { %6058 = vmatpush2.bf16.msra.mxu0 %v8386_v14 }
 0x2c2   :  { %6101 = vmatpush2.bf16.msra.mxu1 %v8389_v15  ;;  %6059 = vmatprep.subr.bf16.mxu0 %v8394_v16 }
 0x2c3   :  { %6102 = vmatprep.subr.bf16.mxu1 %v8397_v17  ;;  %v8446_v17 = vld [vmem:[#allocation7 + $0x270] ss:$72 sps:$4 sm:$0xff]  }
 0x2c5   :  { %6060 = vmatpush2.bf16.msra.mxu0 %v8392_v20  ;;  %v8449_v20 = vld [vmem:[#allocation7 + $0xb70] ss:$72 sps:$4 sm:$0xff]  }
 0x2c6   :  { %6103 = vmatpush2.bf16.msra.mxu1 %v8395_v21  ;;  %6061 = vmatprep.subr.bf16.mxu0 %v8400_v23  ;;  %v8454_v21 = vld [vmem:[#allocation7 + $0x1e4] ss:$72 sps:$4 sm:$0xff]  }
 0x2c7   :  { %6104 = vmatprep.subr.bf16.mxu1 %v8403_v24  ;;  %v8457_v24 = vld [vmem:[#allocation7 + $0xae4] ss:$72 sps:$4 sm:$0xff]  }
 0x2c9   :  { %6062 = vmatpush2.bf16.msra.mxu0 %v8398_v25  ;;  %v8452_v25 = vld [vmem:[#allocation7 + $0x1e0] ss:$72 sps:$4 sm:$0xff]  }
 0x2ca   :  { %6105 = vmatpush2.bf16.msra.mxu1 %v8401_v26  ;;  %6063 = vmatprep.subr.bf16.mxu0 %v8406_v28  ;;  %v8455_v26 = vld [vmem:[#allocation7 + $0xae0] ss:$72 sps:$4 sm:$0xff]   ;;  %v8460_v28 = vld [vmem:[#allocation7 + $0x154] ss:$72 sps:$4 sm:$0xff]  }
 0x2cb   :  { %6106 = vmatprep.subr.bf16.mxu1 %v8409_v29  ;;  %v8463_v29 = vld [vmem:[#allocation7 + $0xa54] ss:$72 sps:$4 sm:$0xff]  }
 0x2cd   :  { %6064 = vmatpush2.bf16.msra.mxu0 %v8404_v30  ;;  %v8458_v30 = vld [vmem:[#allocation7 + $0x150] ss:$72 sps:$4 sm:$0xff]  }
 0x2ce   :  { %6107 = vmatpush2.bf16.msra.mxu1 %v8407_v31  ;;  %6065 = vmatprep.subr.bf16.mxu0 %v8412_v4  ;;  %v8461_v31 = vld [vmem:[#allocation7 + $0xa50] ss:$72 sps:$4 sm:$0xff]   ;;  %v8466_v4 = vld [vmem:[#allocation7 + $0xc4] ss:$72 sps:$4 sm:$0xff]  }
 0x2cf   :  { %6108 = vmatprep.subr.bf16.mxu1 %v8415_v6  ;;  %v8469_v6 = vld [vmem:[#allocation7 + $0x9c4] ss:$72 sps:$4 sm:$0xff]  }
 0x2d1   :  { %6066 = vmatpush2.bf16.msra.mxu0 %v8410_v32  ;;  %v8464_v32 = vld [vmem:[#allocation7 + $0xc0] ss:$72 sps:$4 sm:$0xff]  }
 0x2d2   :  { %6109 = vmatpush2.bf16.msra.mxu1 %v8413_v3  ;;  %6067 = vmatprep.subr.bf16.mxu0 %v8418_v5  ;;  %v8467_v3 = vld [vmem:[#allocation7 + $0x9c0] ss:$72 sps:$4 sm:$0xff]   ;;  %v8472_v5 = vld [vmem:[#allocation7 + $0x34] ss:$72 sps:$4 sm:$0xff]  }
 0x2d3   :  { %6110 = vmatprep.subr.bf16.mxu1 %v8421_v34  ;;  %v8470_v34 = vld [vmem:[#allocation7 + $0x30] ss:$72 sps:$4 sm:$0xff]  }
 0x2d5   :  { %6068 = vmatpush2.bf16.msra.mxu0 %v8416_v13  ;;  %v8473_v13 = vld [vmem:[#allocation7 + $0x930] ss:$72 sps:$4 sm:$0xff]  }
 0x2d6   :  { %6111 = vmatpush2.bf16.msra.mxu1 %v8419_v36  ;;  %6069 = vmatprep.subr.bf16.mxu0 %v8424_v37  ;;  %v8478_v36 = vld [vmem:[#allocation7 + $0x8a4] ss:$72 sps:$4 sm:$0xff]  }
 0x2d7   :  { %6112 = vmatprep.subr.bf16.mxu1 %v8427_v39  ;;  %v8481_v37 = vld [vmem:[#allocation7 + $0x11a4] ss:$72 sps:$4 sm:$0xff]   ;;  %v8479_v39 = vld [vmem:[#allocation7 + $0x11a0] ss:$72 sps:$4 sm:$0xff]  }
 0x2d9   :  { %6070 = vmatpush2.bf16.msra.mxu0 %v8422_v22  ;;  %v8484_v22 = vld [vmem:[#allocation7 + $0x814] ss:$72 sps:$4 sm:$0xff]  }
 0x2da   :  { %6113 = vmatpush2.bf16.msra.mxu1 %v8425_v40  ;;  %6125 = vmatprep.subr.bf16.mxu0 %v8430_v41  ;;  %v8487_v40 = vld [vmem:[#allocation7 + $0x1114] ss:$72 sps:$4 sm:$0xff]   ;;  %v8482_v41 = vld [vmem:[#allocation7 + $0x810] ss:$72 sps:$4 sm:$0xff]  }
 0x2db   :  { %6168 = vmatprep.subr.bf16.mxu1 %v8433_v11  ;;  %v8490_v11 = vld [vmem:[#allocation7 + $0x784] ss:$72 sps:$4 sm:$0xff]  }
 0x2dc   :  { %v5815_v48 = vpop.f32.mrf.mxu0  ;;  %6072 = vmatmul.mubr.bf16.vlgmr.msra.gmra.mxu0 %v9076_v43 }
 0x2dd   :  { %v5816_v50 = vadd.f32 %v5815_v48, %v5772_v33  ;;  %v5858_v51 = vpop.f32.mrf.mxu1  ;;  %6115 = vmatmul.mubr.bf16.vlgmr.msra.gmra.mxu1 %v9078_v27  ;;  %6126 = vmatpush1.bf16.msra.mxu0 %v8428_v35  ;;  %v8475_v33 = vld [vmem:[#allocation7 + $0x934] ss:$72 sps:$4 sm:$0xff]   ;;  %v8493_v35 = vld [vmem:[#allocation7 + $0x1084] ss:$72 sps:$4 sm:$0xff]  }
 0x2de   :  { %6157 = vmatprep.mubr.bf16.mxu0 %v9070_v19  ;;  %6169 = vmatpush1.bf16.msra.mxu1 %v8431_v45  ;;  %v5817_v53 = vpop.f32.mrf.mxu0  ;;  %v8488_v45 = vld [vmem:[#allocation7 + $0x780] ss:$72 sps:$4 sm:$0xff]   ;;  %v8499_v48 = vld [vmem:[#allocation7 + $0xff4] ss:$72 sps:$4 sm:$0xff]  }
 0x2df   :  { %6200 = vmatprep.mubr.bf16.mxu1 %v9072_v10  ;;  %v5818_v56 = vadd.f32 %v5817_v53, %v5774_v38  ;;  %v5860_v57 = vpop.f32.mrf.mxu1  ;;  %6127 = vmatprep.subr.bf16.mxu0 %v8436_v47  ;;  %v5859_v60 = vadd.f32 %v5858_v51, %v5816_v50  ;;  %v8476_v38 = vld [vmem:[#allocation7 + $0x8a0] ss:$72 sps:$4 sm:$0xff]   ;;  %v8496_v47 = vld [vmem:[#allocation7 + $0x6f4] ss:$72 sps:$4 sm:$0xff]   ;;  %v8497_v50 = vld [vmem:[#allocation7 + $0xff0] ss:$72 sps:$4 sm:$0xff]  }
 0x2e0   :  { %v5819_v59 = vpop.f32.mrf.mxu0  ;;  %6170 = vmatprep.subr.bf16.mxu1 %v8439_v49  ;;  %v8494_v49 = vld [vmem:[#allocation7 + $0x6f0] ss:$72 sps:$4 sm:$0xff]   ;;  %v8502_v51 = vld [vmem:[#allocation7 + $0x664] ss:$72 sps:$4 sm:$0xff]   ;;  %v8500_v53 = vld [vmem:[#allocation7 + $0x660] ss:$72 sps:$4 sm:$0xff]  }
 0x2e1   :  { %v5861_v61 = vadd.f32 %v5860_v57, %v5818_v56  ;;  %v5820_v62 = vadd.f32 %v5819_v59, %v5776_v42  ;;  %v5862_v63 = vpop.f32.mrf.mxu1  ;;  %6128 = vmatpush1.bf16.msra.mxu0 %v8434_v52  ;;  %v8485_v42 = vld [vmem:[#allocation7 + $0x1110] ss:$72 sps:$4 sm:$0xff]   ;;  %v8505_v52 = vld [vmem:[#allocation7 + $0xf64] ss:$72 sps:$4 sm:$0xff]   ;;  %v8511_v56 = vld [vmem:[#allocation7 + $0xed4] ss:$72 sps:$4 sm:$0xff]  }
 0x2e2   :  { %6171 = vmatpush1.bf16.msra.mxu1 %v8437_v54  ;;  %v5821_v1 = vpop.f32.mrf.mxu0  ;;  %6129 = vmatprep.subr.bf16.mxu0 %v8442_v55  ;;  %v8503_v54 = vld [vmem:[#allocation7 + $0xf60] ss:$72 sps:$4 sm:$0xff]   ;;  %v8508_v55 = vld [vmem:[#allocation7 + $0x5d4] ss:$72 sps:$4 sm:$0xff]   ;;  %v8506_v57 = vld [vmem:[#allocation7 + $0x5d0] ss:$72 sps:$4 sm:$0xff]  }
 0x2e3   :  { %v7541_v8 = vpack.c.bf16 %v5861_v61, %v5859_v60  ;;  %v5822_v9 = vadd.f32 %v5821_v1, %v5778_v46  ;;  %6172 = vmatprep.subr.bf16.mxu1 %v8445_v58  ;;  %v5864_v14 = vpop.f32.mrf.mxu1  ;;  %v5863_v15 = vadd.f32 %v5862_v63, %v5820_v62  ;;  %v8491_v46 = vld [vmem:[#allocation7 + $0x1080] ss:$72 sps:$4 sm:$0xff]   ;;  %v8509_v58 = vld [vmem:[#allocation7 + $0xed0] ss:$72 sps:$4 sm:$0xff]   ;;  %v8514_v59 = vld [vmem:[#allocation7 + $0x544] ss:$72 sps:$4 sm:$0xff]  }
 0x2e4   :  { %v8517_v60 = vld [vmem:[#allocation7 + $0xe44] ss:$72 sps:$4 sm:$0xff]   ;;  %v8512_v61 = vld [vmem:[#allocation7 + $0x540] ss:$72 sps:$4 sm:$0xff]   ;;  %v8520_v63 = vld [vmem:[#allocation7 + $0x4b4] ss:$72 sps:$4 sm:$0xff]  }
 0x2e5   :  { %6623 = vst [vmem:[#allocation8 + $0x18] sm:$0xff] %v7541_v8  ;;  %v5865_v16 = vadd.f32 %v5864_v14, %v5822_v9  ;;  %6130 = vmatpush1.bf16.msra.mxu0 %v8440_v0  ;;  %v8515_v62 = vld [vmem:[#allocation7 + $0xe40] ss:$72 sps:$4 sm:$0xff]   ;;  %v8523_v0 = vld [vmem:[#allocation7 + $0xdb4] ss:$72 sps:$4 sm:$0xff]  }
 0x2e6   :  { %6173 = vmatpush1.bf16.msra.mxu1 %v8443_v2  ;;  %6131 = vmatprep.subr.bf16.mxu0 %v8448_v7  ;;  %v8518_v1 = vld [vmem:[#allocation7 + $0x4b0] ss:$72 sps:$4 sm:$0xff]   ;;  %v8526_v7 = vld [vmem:[#allocation7 + $0x1624] ss:$72 sps:$4 sm:$0xff]   ;;  %v8524_v9 = vld [vmem:[#allocation7 + $0x1620] ss:$72 sps:$4 sm:$0xff]  }
 0x2e7   :  { %v7550_v23 = vpack.c.bf16 %v5865_v16, %v5863_v15  ;;  %6174 = vmatprep.subr.bf16.mxu1 %v8451_v12  ;;  %v8521_v2 = vld [vmem:[#allocation7 + $0xdb0] ss:$72 sps:$4 sm:$0xff]   ;;  %v8529_v8 = vld [vmem:[#allocation7 + $0x42c] ss:$72 sps:$4 sm:$0xff]   ;;  %v8535_v15 = vld [vmem:[#allocation7 + $0x39c] ss:$72 sps:$4 sm:$0xff]  }
 0x2e8   :  { %v8527_v12 = vld [vmem:[#allocation7 + $0x428] ss:$72 sps:$4 sm:$0xff]   ;;  %v8532_v14 = vld [vmem:[#allocation7 + $0x1594] ss:$72 sps:$4 sm:$0xff]  }
 0x2e9   :  { %6632 = vst [vmem:[#allocation8 + $0x60] sm:$0xff] %v7550_v23  ;;  %6132 = vmatpush1.bf16.msra.mxu0 %v8446_v17  ;;  %v8530_v16 = vld [vmem:[#allocation7 + $0x1590] ss:$72 sps:$4 sm:$0xff]   ;;  %v8536_v23 = vld [vmem:[#allocation7 + $0x1500] ss:$72 sps:$4 sm:$0xff]  }
 0x2ea   :  { %6175 = vmatpush1.bf16.msra.mxu1 %v8449_v20  ;;  %6133 = vmatprep.subr.bf16.mxu0 %v8454_v21  ;;  %v8533_v17 = vld [vmem:[#allocation7 + $0x398] ss:$72 sps:$4 sm:$0xff]   ;;  %v8538_v20 = vld [vmem:[#allocation7 + $0x1504] ss:$72 sps:$4 sm:$0xff]  }
 0x2eb   :  { %6176 = vmatprep.subr.bf16.mxu1 %v8457_v24  ;;  %v8541_v21 = vld [vmem:[#allocation7 + $0x30c] ss:$72 sps:$4 sm:$0xff]   ;;  %v8539_v24 = vld [vmem:[#allocation7 + $0x308] ss:$72 sps:$4 sm:$0xff]  }
 0x2ed   :  { %6134 = vmatpush1.bf16.msra.mxu0 %v8452_v25  ;;  %v8544_v25 = vld [vmem:[#allocation7 + $0x1474] ss:$72 sps:$4 sm:$0xff]  }
 0x2ee   :  { %6177 = vmatpush1.bf16.msra.mxu1 %v8455_v26  ;;  %6135 = vmatprep.subr.bf16.mxu0 %v8460_v28  ;;  %v8547_v26 = vld [vmem:[#allocation7 + $0x27c] ss:$72 sps:$4 sm:$0xff]   ;;  %v8542_v28 = vld [vmem:[#allocation7 + $0x1470] ss:$72 sps:$4 sm:$0xff]  }
 0x2ef   :  { %6178 = vmatprep.subr.bf16.mxu1 %v8463_v29  ;;  %v8545_v29 = vld [vmem:[#allocation7 + $0x278] ss:$72 sps:$4 sm:$0xff]  }
 0x2f1   :  { %6136 = vmatpush1.bf16.msra.mxu0 %v8458_v30  ;;  %v8550_v30 = vld [vmem:[#allocation7 + $0x13e4] ss:$72 sps:$4 sm:$0xff]  }
 0x2f2   :  { %6179 = vmatpush1.bf16.msra.mxu1 %v8461_v31  ;;  %6137 = vmatprep.subr.bf16.mxu0 %v8466_v4  ;;  %v8553_v31 = vld [vmem:[#allocation7 + $0x1ec] ss:$72 sps:$4 sm:$0xff]   ;;  %v8548_v4 = vld [vmem:[#allocation7 + $0x13e0] ss:$72 sps:$4 sm:$0xff]  }
 0x2f3   :  { %6180 = vmatprep.subr.bf16.mxu1 %v8469_v6  ;;  %v8551_v6 = vld [vmem:[#allocation7 + $0x1e8] ss:$72 sps:$4 sm:$0xff]  }
 0x2f5   :  { %6138 = vmatpush1.bf16.msra.mxu0 %v8464_v32  ;;  %v8556_v32 = vld [vmem:[#allocation7 + $0x1354] ss:$72 sps:$4 sm:$0xff]  }
 0x2f6   :  { %6181 = vmatpush1.bf16.msra.mxu1 %v8467_v3  ;;  %6139 = vmatprep.subr.bf16.mxu0 %v8472_v5  ;;  %v8559_v3 = vld [vmem:[#allocation7 + $0x15c] ss:$72 sps:$4 sm:$0xff]   ;;  %v8554_v5 = vld [vmem:[#allocation7 + $0x1350] ss:$72 sps:$4 sm:$0xff]  }
 0x2f7   :  { %6182 = vmatprep.subr.bf16.mxu1 %v8475_v33  ;;  %v8557_v33 = vld [vmem:[#allocation7 + $0x158] ss:$72 sps:$4 sm:$0xff]  }
 0x2f9   :  { %6140 = vmatpush1.bf16.msra.mxu0 %v8470_v34  ;;  %v8562_v34 = vld [vmem:[#allocation7 + $0x12c4] ss:$72 sps:$4 sm:$0xff]  }
 0x2fa   :  { %6183 = vmatpush1.bf16.msra.mxu1 %v8473_v13  ;;  %6141 = vmatprep.subr.bf16.mxu0 %v8478_v36  ;;  %v8565_v13 = vld [vmem:[#allocation7 + $0xcc] ss:$72 sps:$4 sm:$0xff]   ;;  %v8560_v36 = vld [vmem:[#allocation7 + $0x12c0] ss:$72 sps:$4 sm:$0xff]  }
 0x2fb   :  { %6184 = vmatprep.subr.bf16.mxu1 %v8481_v37  ;;  %v8563_v37 = vld [vmem:[#allocation7 + $0xc8] ss:$72 sps:$4 sm:$0xff]  }
 0x2fd   :  { %6142 = vmatpush2.bf16.msra.mxu0 %v8476_v38  ;;  %v8568_v38 = vld [vmem:[#allocation7 + $0x1234] ss:$72 sps:$4 sm:$0xff]  }
 0x2fe   :  { %6185 = vmatpush2.bf16.msra.mxu1 %v8479_v39  ;;  %6143 = vmatprep.subr.bf16.mxu0 %v8484_v22  ;;  %v8571_v39 = vld [vmem:[#allocation7 + $0x3c] ss:$72 sps:$4 sm:$0xff]   ;;  %v8566_v22 = vld [vmem:[#allocation7 + $0x1230] ss:$72 sps:$4 sm:$0xff]  }
 0x2ff   :  { %6186 = vmatprep.subr.bf16.mxu1 %v8487_v40  ;;  %v8569_v40 = vld [vmem:[#allocation7 + $0x38] ss:$72 sps:$4 sm:$0xff]  }
 0x301   :  { %6144 = vmatpush2.bf16.msra.mxu0 %v8482_v41  ;;  %v8574_v41 = vld [vmem:[#allocation7 + $0x1aa4] ss:$72 sps:$4 sm:$0xff]  }
 0x302   :  { %6187 = vmatpush2.bf16.msra.mxu1 %v8485_v42  ;;  %6145 = vmatprep.subr.bf16.mxu0 %v8490_v11  ;;  %v8577_v42 = vld [vmem:[#allocation7 + $0x8ac] ss:$72 sps:$4 sm:$0xff]   ;;  %v8572_v11 = vld [vmem:[#allocation7 + $0x1aa0] ss:$72 sps:$4 sm:$0xff]  }
 0x303   :  { %6188 = vmatprep.subr.bf16.mxu1 %v8493_v35  ;;  %v8575_v35 = vld [vmem:[#allocation7 + $0x8a8] ss:$72 sps:$4 sm:$0xff]  }
 0x305   :  { %6146 = vmatpush2.bf16.msra.mxu0 %v8488_v45  ;;  %v8580_v45 = vld [vmem:[#allocation7 + $0x1a14] ss:$72 sps:$4 sm:$0xff]  }
 0x306   :  { %6189 = vmatpush2.bf16.msra.mxu1 %v8491_v46  ;;  %6147 = vmatprep.subr.bf16.mxu0 %v8496_v47  ;;  %v8583_v46 = vld [vmem:[#allocation7 + $0x81c] ss:$72 sps:$4 sm:$0xff]   ;;  %v8578_v47 = vld [vmem:[#allocation7 + $0x1a10] ss:$72 sps:$4 sm:$0xff]  }
 0x307   :  { %6190 = vmatprep.subr.bf16.mxu1 %v8499_v48  ;;  %v8581_v48 = vld [vmem:[#allocation7 + $0x818] ss:$72 sps:$4 sm:$0xff]  }
 0x309   :  { %6148 = vmatpush2.bf16.msra.mxu0 %v8494_v49  ;;  %v8586_v49 = vld [vmem:[#allocation7 + $0x1984] ss:$72 sps:$4 sm:$0xff]  }
 0x30a   :  { %6191 = vmatpush2.bf16.msra.mxu1 %v8497_v50  ;;  %6149 = vmatprep.subr.bf16.mxu0 %v8502_v51  ;;  %v8589_v50 = vld [vmem:[#allocation7 + $0x78c] ss:$72 sps:$4 sm:$0xff]   ;;  %v8584_v51 = vld [vmem:[#allocation7 + $0x1980] ss:$72 sps:$4 sm:$0xff]  }
 0x30b   :  { %6192 = vmatprep.subr.bf16.mxu1 %v8505_v52  ;;  %v8587_v52 = vld [vmem:[#allocation7 + $0x788] ss:$72 sps:$4 sm:$0xff]  }
 0x30d   :  { %6150 = vmatpush2.bf16.msra.mxu0 %v8500_v53  ;;  %v8592_v53 = vld [vmem:[#allocation7 + $0x18f4] ss:$72 sps:$4 sm:$0xff]  }
 0x30e   :  { %6193 = vmatpush2.bf16.msra.mxu1 %v8503_v54  ;;  %6151 = vmatprep.subr.bf16.mxu0 %v8508_v55  ;;  %v8595_v54 = vld [vmem:[#allocation7 + $0x6fc] ss:$72 sps:$4 sm:$0xff]   ;;  %v8590_v55 = vld [vmem:[#allocation7 + $0x18f0] ss:$72 sps:$4 sm:$0xff]  }
 0x30f   :  { %6194 = vmatprep.subr.bf16.mxu1 %v8511_v56  ;;  %v8593_v56 = vld [vmem:[#allocation7 + $0x6f8] ss:$72 sps:$4 sm:$0xff]  }
 0x311   :  { %6152 = vmatpush2.bf16.msra.mxu0 %v8506_v57  ;;  %v8598_v57 = vld [vmem:[#allocation7 + $0x1864] ss:$72 sps:$4 sm:$0xff]  }
 0x312   :  { %6195 = vmatpush2.bf16.msra.mxu1 %v8509_v58  ;;  %6153 = vmatprep.subr.bf16.mxu0 %v8514_v59  ;;  %v8601_v58 = vld [vmem:[#allocation7 + $0x66c] ss:$72 sps:$4 sm:$0xff]   ;;  %v8596_v59 = vld [vmem:[#allocation7 + $0x1860] ss:$72 sps:$4 sm:$0xff]  }
 0x313   :  { %6196 = vmatprep.subr.bf16.mxu1 %v8517_v60  ;;  %v8599_v60 = vld [vmem:[#allocation7 + $0x668] ss:$72 sps:$4 sm:$0xff]  }
 0x315   :  { %6154 = vmatpush2.bf16.msra.mxu0 %v8512_v61  ;;  %v8604_v61 = vld [vmem:[#allocation7 + $0x17d4] ss:$72 sps:$4 sm:$0xff]  }
 0x316   :  { %6197 = vmatpush2.bf16.msra.mxu1 %v8515_v62  ;;  %6155 = vmatprep.subr.bf16.mxu0 %v8520_v63  ;;  %v8607_v62 = vld [vmem:[#allocation7 + $0x5dc] ss:$72 sps:$4 sm:$0xff]   ;;  %v8602_v63 = vld [vmem:[#allocation7 + $0x17d0] ss:$72 sps:$4 sm:$0xff]  }
 0x317   :  { %6198 = vmatprep.subr.bf16.mxu1 %v8523_v0 }
 0x319   :  { %6156 = vmatpush2.bf16.msra.mxu0 %v8518_v1  ;;  %v8605_v1 = vld [vmem:[#allocation7 + $0x5d8] ss:$72 sps:$4 sm:$0xff]  }
 0x31a   :  { %6199 = vmatpush2.bf16.msra.mxu1 %v8521_v2  ;;  %6211 = vmatprep.subr.bf16.mxu0 %v8526_v7  ;;  %v8610_v2 = vld [vmem:[#allocation7 + $0x1744] ss:$72 sps:$4 sm:$0xff]  }
 0x31b   :  { %6254 = vmatprep.subr.bf16.mxu1 %v8529_v8  ;;  %v8613_v7 = vld [vmem:[#allocation7 + $0x54c] ss:$72 sps:$4 sm:$0xff]   ;;  %v8608_v8 = vld [vmem:[#allocation7 + $0x1740] ss:$72 sps:$4 sm:$0xff]  }
 0x31c   :  { %6158 = vmatmul.mubr.bf16.vlgmr.msra.gmra.mxu0 %v9074_v18  ;;  %v5901_v0 = vpop.f32.mrf.mxu0 }
 0x31d   :  { %6201 = vmatmul.mubr.bf16.vlgmr.msra.gmra.mxu1 %v9076_v43  ;;  %6212 = vmatpush1.bf16.msra.mxu0 %v8524_v9  ;;  %v5944_v9 = vpop.f32.mrf.mxu1 }
 0x31e   :  { %6243 = vmatprep.mubr.bf16.mxu0 %v9084_v44  ;;  %6255 = vmatpush1.bf16.msra.mxu1 %v8527_v12  ;;  %v5903_v12 = vpop.f32.mrf.mxu0 }
 0x31f   :  { %6286 = vmatprep.mubr.bf16.mxu1 %v9070_v19  ;;  %6213 = vmatprep.subr.bf16.mxu0 %v8532_v14  ;;  %v8611_v14 = vld [vmem:[#allocation7 + $0x548] ss:$72 sps:$4 sm:$0xff]  }
 0x320   :  { %6256 = vmatprep.subr.bf16.mxu1 %v8535_v15  ;;  %v8616_v15 = vld [vmem:[#allocation7 + $0x16b4] ss:$72 sps:$4 sm:$0xff]  }
 0x321   :  { %6214 = vmatpush1.bf16.msra.mxu0 %v8530_v16  ;;  %v8619_v16 = vld [vmem:[#allocation7 + $0x4bc] ss:$72 sps:$4 sm:$0xff]  }
 0x322   :  { %6257 = vmatpush1.bf16.msra.mxu1 %v8533_v17  ;;  %6215 = vmatprep.subr.bf16.mxu0 %v8538_v20  ;;  %v8614_v17 = vld [vmem:[#allocation7 + $0x16b0] ss:$72 sps:$4 sm:$0xff]   ;;  %v5946_v20 = vpop.f32.mrf.mxu1 }
 0x323   :  { %6258 = vmatprep.subr.bf16.mxu1 %v8541_v21  ;;  %v5905_v21 = vpop.f32.mrf.mxu0 }
 0x325   :  { %6216 = vmatpush1.bf16.msra.mxu0 %v8536_v23  ;;  %v8617_v23 = vld [vmem:[#allocation7 + $0x4b8] ss:$72 sps:$4 sm:$0xff]  }
 0x326   :  { %6259 = vmatpush1.bf16.msra.mxu1 %v8539_v24  ;;  %6217 = vmatprep.subr.bf16.mxu0 %v8544_v25  ;;  %v8622_v24 = vld [vmem:[#allocation7 + $0xd2c] ss:$72 sps:$4 sm:$0xff]  }
 0x327   :  { %6260 = vmatprep.subr.bf16.mxu1 %v8547_v26  ;;  %v8625_v25 = vld [vmem:[#allocation7 + $0x162c] ss:$72 sps:$4 sm:$0xff]   ;;  %v8620_v26 = vld [vmem:[#allocation7 + $0xd28] ss:$72 sps:$4 sm:$0xff]  }
 0x329   :  { %6218 = vmatpush1.bf16.msra.mxu0 %v8542_v28  ;;  %v5948_v28 = vpop.f32.mrf.mxu1 }
 0x32a   :  { %6261 = vmatpush1.bf16.msra.mxu1 %v8545_v29  ;;  %6219 = vmatprep.subr.bf16.mxu0 %v8550_v30  ;;  %v5907_v29 = vpop.f32.mrf.mxu0  ;;  %v8623_v30 = vld [vmem:[#allocation7 + $0x1628] ss:$72 sps:$4 sm:$0xff]  }
 0x32b   :  { %6262 = vmatprep.subr.bf16.mxu1 %v8553_v31  ;;  %v8628_v31 = vld [vmem:[#allocation7 + $0xc9c] ss:$72 sps:$4 sm:$0xff]  }
 0x32d   :  { %6220 = vmatpush1.bf16.msra.mxu0 %v8548_v4 }
 0x32e   :  { %6263 = vmatpush1.bf16.msra.mxu1 %v8551_v6  ;;  %6221 = vmatprep.subr.bf16.mxu0 %v8556_v32  ;;  %v8631_v6 = vld [vmem:[#allocation7 + $0x159c] ss:$72 sps:$4 sm:$0xff]   ;;  %v5945_v32 = vadd.f32 %v5944_v9, %v5901_v0  ;;  %v8659_v0 = vld [vmem:[#allocation7 + $0x12c8] ss:$72 sps:$4 sm:$0xff]   ;;  %v8670_v9 = vld [vmem:[#allocation7 + $0x11ac] ss:$72 sps:$4 sm:$0xff]  }
 0x32f   :  { %6264 = vmatprep.subr.bf16.mxu1 %v8559_v3  ;;  %v5947_v3 = vadd.f32 %v5946_v20, %v5903_v12  ;;  %v8673_v12 = vld [vmem:[#allocation7 + $0x1aac] ss:$72 sps:$4 sm:$0xff]   ;;  %v8674_v20 = vld [vmem:[#allocation7 + $0x1118] ss:$72 sps:$4 sm:$0xff]  }
 0x331   :  { %6222 = vmatpush1.bf16.msra.mxu0 %v8554_v5  ;;  %v8626_v5 = vld [vmem:[#allocation7 + $0xc98] ss:$72 sps:$4 sm:$0xff]  }
 0x332   :  { %6265 = vmatpush1.bf16.msra.mxu1 %v8557_v33  ;;  %6223 = vmatprep.subr.bf16.mxu0 %v8562_v34  ;;  %v5950_v33 = vpop.f32.mrf.mxu1 }
 0x333   :  { %6266 = vmatprep.subr.bf16.mxu1 %v8565_v13  ;;  %v8629_v13 = vld [vmem:[#allocation7 + $0x1598] ss:$72 sps:$4 sm:$0xff]  }
 0x335   :  { %6224 = vmatpush1.bf16.msra.mxu0 %v8560_v36  ;;  %v8634_v36 = vld [vmem:[#allocation7 + $0xc0c] ss:$72 sps:$4 sm:$0xff]  }
 0x336   :  { %6267 = vmatpush1.bf16.msra.mxu1 %v8563_v37  ;;  %6225 = vmatprep.subr.bf16.mxu0 %v8568_v38 }
 0x337   :  { %6268 = vmatprep.subr.bf16.mxu1 %v8571_v39  ;;  %v8637_v39 = vld [vmem:[#allocation7 + $0x150c] ss:$72 sps:$4 sm:$0xff]  }
 0x339   :  { %6226 = vmatpush1.bf16.msra.mxu0 %v8566_v22 }
 0x33a   :  { %6269 = vmatpush1.bf16.msra.mxu1 %v8569_v40  ;;  %6227 = vmatprep.subr.bf16.mxu0 %v8574_v41  ;;  %v5949_v40 = vadd.f32 %v5948_v28, %v5905_v21  ;;  %v5951_v41 = vadd.f32 %v5950_v33, %v5907_v29  ;;  %v8677_v21 = vld [vmem:[#allocation7 + $0x1a18] ss:$72 sps:$4 sm:$0xff]   ;;  %v8688_v28 = vld [vmem:[#allocation7 + $0xffc] ss:$72 sps:$4 sm:$0xff]  }
 0x33b   :  { %6270 = vmatprep.subr.bf16.mxu1 %v8577_v42  ;;  %v8691_v29 = vld [vmem:[#allocation7 + $0x18fc] ss:$72 sps:$4 sm:$0xff]  }
 0x33c   :  { %v8703_v33 = vld [vmem:[#allocation7 + $0x17dc] ss:$72 sps:$4 sm:$0xff]  }
 0x33d   :  { %6228 = vmatpush2.bf16.msra.mxu0 %v8572_v11  ;;  %v8632_v11 = vld [vmem:[#allocation7 + $0xc08] ss:$72 sps:$4 sm:$0xff]  }
 0x33e   :  { %6271 = vmatpush2.bf16.msra.mxu1 %v8575_v35  ;;  %6229 = vmatprep.subr.bf16.mxu0 %v8580_v45  ;;  %v8635_v45 = vld [vmem:[#allocation7 + $0x1508] ss:$72 sps:$4 sm:$0xff]  }
 0x33f   :  { %6272 = vmatprep.subr.bf16.mxu1 %v8583_v46  ;;  %v8640_v46 = vld [vmem:[#allocation7 + $0xb7c] ss:$72 sps:$4 sm:$0xff]  }
 0x341   :  { %6230 = vmatpush2.bf16.msra.mxu0 %v8578_v47 }
 0x342   :  { %6273 = vmatpush2.bf16.msra.mxu1 %v8581_v48  ;;  %6231 = vmatprep.subr.bf16.mxu0 %v8586_v49  ;;  %v8643_v49 = vld [vmem:[#allocation7 + $0x147c] ss:$72 sps:$4 sm:$0xff]  }
 0x343   :  { %6274 = vmatprep.subr.bf16.mxu1 %v8589_v50 }
 0x345   :  { %6232 = vmatpush2.bf16.msra.mxu0 %v8584_v51  ;;  %v8638_v51 = vld [vmem:[#allocation7 + $0xb78] ss:$72 sps:$4 sm:$0xff]  }
 0x346   :  { %6275 = vmatpush2.bf16.msra.mxu1 %v8587_v52  ;;  %6233 = vmatprep.subr.bf16.mxu0 %v8592_v53  ;;  %v8641_v52 = vld [vmem:[#allocation7 + $0x1478] ss:$72 sps:$4 sm:$0xff]   ;;  %v8646_v53 = vld [vmem:[#allocation7 + $0xaec] ss:$72 sps:$4 sm:$0xff]  }
 0x347   :  { %6276 = vmatprep.subr.bf16.mxu1 %v8595_v54  ;;  %v8649_v54 = vld [vmem:[#allocation7 + $0x13ec] ss:$72 sps:$4 sm:$0xff]  }
 0x349   :  { %6234 = vmatpush2.bf16.msra.mxu0 %v8590_v55  ;;  %v8644_v55 = vld [vmem:[#allocation7 + $0xae8] ss:$72 sps:$4 sm:$0xff]  }
 0x34a   :  { %6277 = vmatpush2.bf16.msra.mxu1 %v8593_v56  ;;  %6235 = vmatprep.subr.bf16.mxu0 %v8598_v57  ;;  %v8647_v56 = vld [vmem:[#allocation7 + $0x13e8] ss:$72 sps:$4 sm:$0xff]   ;;  %v8652_v57 = vld [vmem:[#allocation7 + $0xa5c] ss:$72 sps:$4 sm:$0xff]  }
 0x34b   :  { %6278 = vmatprep.subr.bf16.mxu1 %v8601_v58  ;;  %v8655_v58 = vld [vmem:[#allocation7 + $0x135c] ss:$72 sps:$4 sm:$0xff]  }
 0x34d   :  { %6236 = vmatpush2.bf16.msra.mxu0 %v8596_v59  ;;  %v8650_v59 = vld [vmem:[#allocation7 + $0xa58] ss:$72 sps:$4 sm:$0xff]  }
 0x34e   :  { %6279 = vmatpush2.bf16.msra.mxu1 %v8599_v60  ;;  %6237 = vmatprep.subr.bf16.mxu0 %v8604_v61  ;;  %v8653_v60 = vld [vmem:[#allocation7 + $0x1358] ss:$72 sps:$4 sm:$0xff]   ;;  %v8658_v61 = vld [vmem:[#allocation7 + $0x9cc] ss:$72 sps:$4 sm:$0xff]  }
 0x34f   :  { %6280 = vmatprep.subr.bf16.mxu1 %v8607_v62  ;;  %v8661_v62 = vld [vmem:[#allocation7 + $0x12cc] ss:$72 sps:$4 sm:$0xff]  }
 0x351   :  { %6238 = vmatpush2.bf16.msra.mxu0 %v8602_v63  ;;  %v8656_v63 = vld [vmem:[#allocation7 + $0x9c8] ss:$72 sps:$4 sm:$0xff]  }
 0x352   :  { %6281 = vmatpush2.bf16.msra.mxu1 %v8605_v1  ;;  %6239 = vmatprep.subr.bf16.mxu0 %v8610_v2  ;;  %v8664_v1 = vld [vmem:[#allocation7 + $0x93c] ss:$72 sps:$4 sm:$0xff]  }
 0x353   :  { %6282 = vmatprep.subr.bf16.mxu1 %v8613_v7  ;;  %v8667_v2 = vld [vmem:[#allocation7 + $0x123c] ss:$72 sps:$4 sm:$0xff]   ;;  %v8662_v7 = vld [vmem:[#allocation7 + $0x938] ss:$72 sps:$4 sm:$0xff]  }
 0x355   :  { %6240 = vmatpush2.bf16.msra.mxu0 %v8608_v8  ;;  %v8665_v8 = vld [vmem:[#allocation7 + $0x1238] ss:$72 sps:$4 sm:$0xff]  }
 0x356   :  { %6283 = vmatpush2.bf16.msra.mxu1 %v8611_v14  ;;  %6241 = vmatprep.subr.bf16.mxu0 %v8616_v15  ;;  %v8668_v14 = vld [vmem:[#allocation7 + $0x11a8] ss:$72 sps:$4 sm:$0xff]  }
 0x357   :  { %6284 = vmatprep.subr.bf16.mxu1 %v8619_v16  ;;  %v8671_v15 = vld [vmem:[#allocation7 + $0x1aa8] ss:$72 sps:$4 sm:$0xff]   ;;  %v8676_v16 = vld [vmem:[#allocation7 + $0x111c] ss:$72 sps:$4 sm:$0xff]  }
 0x359   :  { %6242 = vmatpush2.bf16.msra.mxu0 %v8614_v17  ;;  %v8679_v17 = vld [vmem:[#allocation7 + $0x1a1c] ss:$72 sps:$4 sm:$0xff]  }
 0x35a   :  { %6285 = vmatpush2.bf16.msra.mxu1 %v8617_v23  ;;  %6297 = vmatprep.subr.bf16.mxu0 %v8622_v24  ;;  %v8682_v23 = vld [vmem:[#allocation7 + $0x108c] ss:$72 sps:$4 sm:$0xff]  }
 0x35b   :  { %6340 = vmatprep.subr.bf16.mxu1 %v8625_v25  ;;  %v8685_v24 = vld [vmem:[#allocation7 + $0x198c] ss:$72 sps:$4 sm:$0xff]   ;;  %v8680_v25 = vld [vmem:[#allocation7 + $0x1088] ss:$72 sps:$4 sm:$0xff]  }
 0x35c   :  { %v5987_v4 = vpop.f32.mrf.mxu0  ;;  %6244 = vmatmul.mubr.bf16.vlgmr.msra.gmra.mxu0 %v9078_v27 }
 0x35d   :  { %6287 = vmatmul.mubr.bf16.vlgmr.msra.gmra.mxu1 %v9074_v18  ;;  %6298 = vmatpush1.bf16.msra.mxu0 %v8620_v26  ;;  %v5988_v37 = vadd.f32 %v5987_v4, %v5945_v32  ;;  %v8683_v26 = vld [vmem:[#allocation7 + $0x1988] ss:$72 sps:$4 sm:$0xff]   ;;  %v8694_v4 = vld [vmem:[#allocation7 + $0xf6c] ss:$72 sps:$4 sm:$0xff]  }
 0x35e   :  { %6329 = vmatprep.mubr.bf16.mxu0 %v9072_v10  ;;  %6341 = vmatpush1.bf16.msra.mxu1 %v8623_v30  ;;  %v5989_v34 = vpop.f32.mrf.mxu0  ;;  %v8686_v30 = vld [vmem:[#allocation7 + $0xff8] ss:$72 sps:$4 sm:$0xff]   ;;  %v8692_v32 = vld [vmem:[#allocation7 + $0xf68] ss:$72 sps:$4 sm:$0xff]  }
 0x35f   :  { %6372 = vmatprep.mubr.bf16.mxu1 %v9084_v44  ;;  %v5990_v38 = vadd.f32 %v5989_v34, %v5947_v3  ;;  %6299 = vmatprep.subr.bf16.mxu0 %v8628_v31  ;;  %v8689_v31 = vld [vmem:[#allocation7 + $0x18f8] ss:$72 sps:$4 sm:$0xff]   ;;  %v8695_v3 = vld [vmem:[#allocation7 + $0x1868] ss:$72 sps:$4 sm:$0xff]  }
 0x360   :  { %v5991_v22 = vpop.f32.mrf.mxu0  ;;  %6342 = vmatprep.subr.bf16.mxu1 %v8631_v6  ;;  %v8697_v6 = vld [vmem:[#allocation7 + $0x186c] ss:$72 sps:$4 sm:$0xff]   ;;  %v8698_v34 = vld [vmem:[#allocation7 + $0xed8] ss:$72 sps:$4 sm:$0xff]  }
 0x361   :  { %v7542_v42 = vpack.c.bf16 %v5990_v38, %v5988_v37  ;;  %6300 = vmatpush1.bf16.msra.mxu0 %v8626_v5  ;;  %v5992_v47 = vadd.f32 %v5991_v22, %v5949_v40  ;;  %v8700_v5 = vld [vmem:[#allocation7 + $0xedc] ss:$72 sps:$4 sm:$0xff]   ;;  %v6030_v37 = vpop.f32.mrf.mxu1  ;;  %v8709_v38 = vld [vmem:[#allocation7 + $0x174c] ss:$72 sps:$4 sm:$0xff]   ;;  %v8707_v22 = vld [vmem:[#allocation7 + $0x1748] ss:$72 sps:$4 sm:$0xff]  }
 0x362   :  { %6343 = vmatpush1.bf16.msra.mxu1 %v8629_v13  ;;  %v5993_v35 = vpop.f32.mrf.mxu0  ;;  %6301 = vmatprep.subr.bf16.mxu0 %v8634_v36  ;;  %v8701_v13 = vld [vmem:[#allocation7 + $0x17d8] ss:$72 sps:$4 sm:$0xff]   ;;  %v8706_v36 = vld [vmem:[#allocation7 + $0xe4c] ss:$72 sps:$4 sm:$0xff]   ;;  %v8712_v40 = vld [vmem:[#allocation7 + $0xdbc] ss:$72 sps:$4 sm:$0xff]  }
 0x363   :  { %6624 = vst [vmem:[#allocation8 + $0x20] sm:$0xff] %v7542_v42  ;;  %v5994_v48 = vadd.f32 %v5993_v35, %v5951_v41  ;;  %6344 = vmatprep.subr.bf16.mxu1 %v8637_v39  ;;  %v8704_v39 = vld [vmem:[#allocation7 + $0xe48] ss:$72 sps:$4 sm:$0xff]   ;;  %v6032_v41 = vpop.f32.mrf.mxu1  ;;  %v8715_v42 = vld [vmem:[#allocation7 + $0x16bc] ss:$72 sps:$4 sm:$0xff]  }
 0x364   :  { %v8713_v35 = vld [vmem:[#allocation7 + $0x16b8] ss:$72 sps:$4 sm:$0xff]  }
 0x365   :  { %v7551_v50 = vpack.c.bf16 %v5994_v48, %v5992_v47  ;;  %6302 = vmatpush1.bf16.msra.mxu0 %v8632_v11  ;;  %v8710_v11 = vld [vmem:[#allocation7 + $0xdb8] ss:$72 sps:$4 sm:$0xff]   ;;  %v8721_v47 = vld [vmem:[#allocation7 + $0xd34] ss:$72 sps:$4 sm:$0xff]  }
 0x366   :  { %6345 = vmatpush1.bf16.msra.mxu1 %v8635_v45  ;;  %6303 = vmatprep.subr.bf16.mxu0 %v8640_v46  ;;  %v8718_v45 = vld [vmem:[#allocation7 + $0x434] ss:$72 sps:$4 sm:$0xff]   ;;  %v6034_v46 = vpop.f32.mrf.mxu1  ;;  %v8716_v48 = vld [vmem:[#allocation7 + $0x430] ss:$72 sps:$4 sm:$0xff]  }
 0x367   :  { %6633 = vst [vmem:[#allocation8 + $0x68] sm:$0xff] %v7551_v50  ;;  %6346 = vmatprep.subr.bf16.mxu1 %v8643_v49  ;;  %v8719_v49 = vld [vmem:[#allocation7 + $0xd30] ss:$72 sps:$4 sm:$0xff]  }
 0x368   :  { %v6036_v50 = vpop.f32.mrf.mxu1 }
 0x369   :  { %6304 = vmatpush1.bf16.msra.mxu0 %v8638_v51  ;;  %v8724_v51 = vld [vmem:[#allocation7 + $0x3a4] ss:$72 sps:$4 sm:$0xff]  }
 0x36a   :  { %6347 = vmatpush1.bf16.msra.mxu1 %v8641_v52  ;;  %6305 = vmatprep.subr.bf16.mxu0 %v8646_v53  ;;  %v8727_v53 = vld [vmem:[#allocation7 + $0xca4] ss:$72 sps:$4 sm:$0xff]  }
 0x36b   :  { %6348 = vmatprep.subr.bf16.mxu1 %v8649_v54 }
 0x36d   :  { %6306 = vmatpush1.bf16.msra.mxu0 %v8644_v55 }
 0x36e   :  { %6349 = vmatpush1.bf16.msra.mxu1 %v8647_v56  ;;  %6307 = vmatprep.subr.bf16.mxu0 %v8652_v57  ;;  %v8722_v56 = vld [vmem:[#allocation7 + $0x3a0] ss:$72 sps:$4 sm:$0xff]  }
 0x36f   :  { %6350 = vmatprep.subr.bf16.mxu1 %v8655_v58  ;;  %v8725_v58 = vld [vmem:[#allocation7 + $0xca0] ss:$72 sps:$4 sm:$0xff]  }
 0x371   :  { %6308 = vmatpush1.bf16.msra.mxu0 %v8650_v59  ;;  %v8730_v59 = vld [vmem:[#allocation7 + $0x314] ss:$72 sps:$4 sm:$0xff]  }
 0x372   :  { %6351 = vmatpush1.bf16.msra.mxu1 %v8653_v60  ;;  %6309 = vmatprep.subr.bf16.mxu0 %v8658_v61 }
 0x373   :  { %6352 = vmatprep.subr.bf16.mxu1 %v8661_v62  ;;  %v8733_v62 = vld [vmem:[#allocation7 + $0xc14] ss:$72 sps:$4 sm:$0xff]  }
 0x375   :  { %6310 = vmatpush1.bf16.msra.mxu0 %v8656_v63 }
 0x376   :  { %6353 = vmatpush1.bf16.msra.mxu1 %v8659_v0  ;;  %6311 = vmatprep.subr.bf16.mxu0 %v8664_v1 }
 0x377   :  { %6354 = vmatprep.subr.bf16.mxu1 %v8667_v2 }
 0x379   :  { %6312 = vmatpush1.bf16.msra.mxu0 %v8662_v7 }
 0x37a   :  { %6355 = vmatpush1.bf16.msra.mxu1 %v8665_v8  ;;  %6313 = vmatprep.subr.bf16.mxu0 %v8670_v9  ;;  %v8728_v8 = vld [vmem:[#allocation7 + $0x310] ss:$72 sps:$4 sm:$0xff]  }
 0x37b   :  { %6356 = vmatprep.subr.bf16.mxu1 %v8673_v12  ;;  %v8731_v9 = vld [vmem:[#allocation7 + $0xc10] ss:$72 sps:$4 sm:$0xff]   ;;  %v8736_v12 = vld [vmem:[#allocation7 + $0x284] ss:$72 sps:$4 sm:$0xff]  }
 0x37d   :  { %6314 = vmatpush2.bf16.msra.mxu0 %v8668_v14 }
 0x37e   :  { %6357 = vmatpush2.bf16.msra.mxu1 %v8671_v15  ;;  %6315 = vmatprep.subr.bf16.mxu0 %v8676_v16 }
 0x37f   :  { %6358 = vmatprep.subr.bf16.mxu1 %v8679_v17 }
 0x381   :  { %6316 = vmatpush2.bf16.msra.mxu0 %v8674_v20 }
 0x382   :  { %6359 = vmatpush2.bf16.msra.mxu1 %v8677_v21  ;;  %6317 = vmatprep.subr.bf16.mxu0 %v8682_v23  ;;  %v8734_v21 = vld [vmem:[#allocation7 + $0x280] ss:$72 sps:$4 sm:$0xff]  }
 0x383   :  { %6360 = vmatprep.subr.bf16.mxu1 %v8685_v24  ;;  %v8737_v23 = vld [vmem:[#allocation7 + $0xb80] ss:$72 sps:$4 sm:$0xff]   ;;  %v8742_v24 = vld [vmem:[#allocation7 + $0x1f4] ss:$72 sps:$4 sm:$0xff]  }
 0x385   :  { %6318 = vmatpush2.bf16.msra.mxu0 %v8680_v25 }
 0x386   :  { %6361 = vmatpush2.bf16.msra.mxu1 %v8683_v26  ;;  %6319 = vmatprep.subr.bf16.mxu0 %v8688_v28  ;;  %v8745_v26 = vld [vmem:[#allocation7 + $0xaf4] ss:$72 sps:$4 sm:$0xff]   ;;  %v8740_v28 = vld [vmem:[#allocation7 + $0x1f0] ss:$72 sps:$4 sm:$0xff]  }
 0x387   :  { %6362 = vmatprep.subr.bf16.mxu1 %v8691_v29  ;;  %v8743_v29 = vld [vmem:[#allocation7 + $0xaf0] ss:$72 sps:$4 sm:$0xff]  }
 0x389   :  { %6320 = vmatpush2.bf16.msra.mxu0 %v8686_v30  ;;  %v8748_v30 = vld [vmem:[#allocation7 + $0x164] ss:$72 sps:$4 sm:$0xff]  }
 0x38a   :  { %6363 = vmatpush2.bf16.msra.mxu1 %v8689_v31  ;;  %6321 = vmatprep.subr.bf16.mxu0 %v8694_v4  ;;  %v8751_v31 = vld [vmem:[#allocation7 + $0xa64] ss:$72 sps:$4 sm:$0xff]   ;;  %v8746_v4 = vld [vmem:[#allocation7 + $0x160] ss:$72 sps:$4 sm:$0xff]  }
 0x38b   :  { %6364 = vmatprep.subr.bf16.mxu1 %v8697_v6  ;;  %v8749_v6 = vld [vmem:[#allocation7 + $0xa60] ss:$72 sps:$4 sm:$0xff]  }
 0x38d   :  { %6322 = vmatpush2.bf16.msra.mxu0 %v8692_v32  ;;  %v8754_v32 = vld [vmem:[#allocation7 + $0xd4] ss:$72 sps:$4 sm:$0xff]  }
 0x38e   :  { %6365 = vmatpush2.bf16.msra.mxu1 %v8695_v3  ;;  %6323 = vmatprep.subr.bf16.mxu0 %v8700_v5  ;;  %v8757_v3 = vld [vmem:[#allocation7 + $0x9d4] ss:$72 sps:$4 sm:$0xff]   ;;  %v8752_v5 = vld [vmem:[#allocation7 + $0xd0] ss:$72 sps:$4 sm:$0xff]  }
 0x38f   :  { %6366 = vmatprep.subr.bf16.mxu1 %v8703_v33  ;;  %v8755_v33 = vld [vmem:[#allocation7 + $0x9d0] ss:$72 sps:$4 sm:$0xff]  }
 0x391   :  { %6324 = vmatpush2.bf16.msra.mxu0 %v8698_v34  ;;  %v8760_v34 = vld [vmem:[#allocation7 + $0x44] ss:$72 sps:$4 sm:$0xff]  }
 0x392   :  { %6367 = vmatpush2.bf16.msra.mxu1 %v8701_v13  ;;  %6325 = vmatprep.subr.bf16.mxu0 %v8706_v36  ;;  %v8763_v13 = vld [vmem:[#allocation7 + $0x944] ss:$72 sps:$4 sm:$0xff]   ;;  %v8758_v36 = vld [vmem:[#allocation7 + $0x40] ss:$72 sps:$4 sm:$0xff]  }
 0x393   :  { %6368 = vmatprep.subr.bf16.mxu1 %v8709_v38  ;;  %v8766_v38 = vld [vmem:[#allocation7 + $0x8b4] ss:$72 sps:$4 sm:$0xff]  }
 0x395   :  { %6326 = vmatpush2.bf16.msra.mxu0 %v8704_v39  ;;  %v8769_v39 = vld [vmem:[#allocation7 + $0x11b4] ss:$72 sps:$4 sm:$0xff]  }
 0x396   :  { %6369 = vmatpush2.bf16.msra.mxu1 %v8707_v22  ;;  %6327 = vmatprep.subr.bf16.mxu0 %v8712_v40  ;;  %v8764_v22 = vld [vmem:[#allocation7 + $0x8b0] ss:$72 sps:$4 sm:$0xff]  }
 0x397   :  { %6370 = vmatprep.subr.bf16.mxu1 %v8715_v42  ;;  %v8767_v40 = vld [vmem:[#allocation7 + $0x11b0] ss:$72 sps:$4 sm:$0xff]   ;;  %v8775_v42 = vld [vmem:[#allocation7 + $0x1124] ss:$72 sps:$4 sm:$0xff]  }
 0x399   :  { %6328 = vmatpush2.bf16.msra.mxu0 %v8710_v11  ;;  %v8770_v11 = vld [vmem:[#allocation7 + $0x820] ss:$72 sps:$4 sm:$0xff]  }
 0x39a   :  { %6371 = vmatpush2.bf16.msra.mxu1 %v8713_v35  ;;  %6383 = vmatprep.subr.bf16.mxu0 %v8718_v45  ;;  %v8773_v35 = vld [vmem:[#allocation7 + $0x1120] ss:$72 sps:$4 sm:$0xff]   ;;  %v8778_v45 = vld [vmem:[#allocation7 + $0x794] ss:$72 sps:$4 sm:$0xff]  }
 0x39b   :  { %6426 = vmatprep.subr.bf16.mxu1 %v8721_v47  ;;  %v8776_v47 = vld [vmem:[#allocation7 + $0x790] ss:$72 sps:$4 sm:$0xff]  }
 0x39c   :  { %v6073_v52 = vpop.f32.mrf.mxu0  ;;  %6330 = vmatmul.mubr.bf16.vlgmr.msra.gmra.mxu0 %v9076_v43 }
 0x39d   :  { %v6074_v54 = vadd.f32 %v6073_v52, %v6030_v37  ;;  %v6116_v55 = vpop.f32.mrf.mxu1  ;;  %6373 = vmatmul.mubr.bf16.vlgmr.msra.gmra.mxu1 %v9078_v27  ;;  %6384 = vmatpush1.bf16.msra.mxu0 %v8716_v48  ;;  %v8761_v37 = vld [vmem:[#allocation7 + $0x940] ss:$72 sps:$4 sm:$0xff]   ;;  %v8779_v48 = vld [vmem:[#allocation7 + $0x1090] ss:$72 sps:$4 sm:$0xff]  }
 0x39e   :  { %6415 = vmatprep.mubr.bf16.mxu0 %v9070_v19  ;;  %6427 = vmatpush1.bf16.msra.mxu1 %v8719_v49  ;;  %v6075_v57 = vpop.f32.mrf.mxu0  ;;  %v8784_v49 = vld [vmem:[#allocation7 + $0x704] ss:$72 sps:$4 sm:$0xff]   ;;  %v8785_v52 = vld [vmem:[#allocation7 + $0x1000] ss:$72 sps:$4 sm:$0xff]  }
 0x39f   :  { %6458 = vmatprep.mubr.bf16.mxu1 %v9072_v10  ;;  %v6076_v60 = vadd.f32 %v6075_v57, %v6032_v41  ;;  %v6118_v61 = vpop.f32.mrf.mxu1  ;;  %6385 = vmatprep.subr.bf16.mxu0 %v8724_v51  ;;  %v6117_v0 = vadd.f32 %v6116_v55, %v6074_v54  ;;  %v8739_v10 = vld [vmem:[#allocation7 + $0xb84] ss:$72 sps:$4 sm:$0xff]   ;;  %v8782_v51 = vld [vmem:[#allocation7 + $0x700] ss:$72 sps:$4 sm:$0xff]   ;;  %v8793_v54 = vld [vmem:[#allocation7 + $0xf74] ss:$72 sps:$4 sm:$0xff]  }
 0x3a0   :  { %v6077_v63 = vpop.f32.mrf.mxu0  ;;  %6428 = vmatprep.subr.bf16.mxu1 %v8727_v53  ;;  %v8772_v41 = vld [vmem:[#allocation7 + $0x824] ss:$72 sps:$4 sm:$0xff]   ;;  %v8790_v53 = vld [vmem:[#allocation7 + $0x674] ss:$72 sps:$4 sm:$0xff]   ;;  %v8788_v55 = vld [vmem:[#allocation7 + $0x670] ss:$72 sps:$4 sm:$0xff]  }
 0x3a1   :  { %v6119_v1 = vadd.f32 %v6118_v61, %v6076_v60  ;;  %v6078_v2 = vadd.f32 %v6077_v63, %v6034_v46  ;;  %v6120_v7 = vpop.f32.mrf.mxu1  ;;  %6386 = vmatpush1.bf16.msra.mxu0 %v8722_v56  ;;  %v8781_v46 = vld [vmem:[#allocation7 + $0x1094] ss:$72 sps:$4 sm:$0xff]   ;;  %v8791_v56 = vld [vmem:[#allocation7 + $0xf70] ss:$72 sps:$4 sm:$0xff]   ;;  %v8796_v57 = vld [vmem:[#allocation7 + $0x5e4] ss:$72 sps:$4 sm:$0xff]  }
 0x3a2   :  { %6429 = vmatpush1.bf16.msra.mxu1 %v8725_v58  ;;  %v6079_v19 = vpop.f32.mrf.mxu0  ;;  %6387 = vmatprep.subr.bf16.mxu0 %v8730_v59  ;;  %v8799_v58 = vld [vmem:[#allocation7 + $0xee4] ss:$72 sps:$4 sm:$0xff]   ;;  %v8794_v59 = vld [vmem:[#allocation7 + $0x5e0] ss:$72 sps:$4 sm:$0xff]   ;;  %v8802_v61 = vld [vmem:[#allocation7 + $0x554] ss:$72 sps:$4 sm:$0xff]  }
 0x3a3   :  { %v7543_v14 = vpack.c.bf16 %v6119_v1, %v6117_v0  ;;  %v6080_v15 = vadd.f32 %v6079_v19, %v6036_v50  ;;  %6430 = vmatprep.subr.bf16.mxu1 %v8733_v62  ;;  %v6122_v16 = vpop.f32.mrf.mxu1  ;;  %v6121_v17 = vadd.f32 %v6120_v7, %v6078_v2  ;;  %v8787_v50 = vld [vmem:[#allocation7 + $0x1004] ss:$72 sps:$4 sm:$0xff]   ;;  %v8797_v60 = vld [vmem:[#allocation7 + $0xee0] ss:$72 sps:$4 sm:$0xff]   ;;  %v8805_v62 = vld [vmem:[#allocation7 + $0xe54] ss:$72 sps:$4 sm:$0xff]  }
 0x3a4   :  { %v8800_v63 = vld [vmem:[#allocation7 + $0x550] ss:$72 sps:$4 sm:$0xff]   ;;  %v8808_v1 = vld [vmem:[#allocation7 + $0x4c4] ss:$72 sps:$4 sm:$0xff]   ;;  %v8806_v7 = vld [vmem:[#allocation7 + $0x4c0] ss:$72 sps:$4 sm:$0xff]  }
 0x3a5   :  { %6625 = vst [vmem:[#allocation8 + $0x28] sm:$0xff] %v7543_v14  ;;  %v6123_v20 = vadd.f32 %v6122_v16, %v6080_v15  ;;  %6388 = vmatpush1.bf16.msra.mxu0 %v8728_v8  ;;  %v8803_v0 = vld [vmem:[#allocation7 + $0xe50] ss:$72 sps:$4 sm:$0xff]   ;;  %v8811_v2 = vld [vmem:[#allocation7 + $0xdc4] ss:$72 sps:$4 sm:$0xff]  }
 0x3a6   :  { %6431 = vmatpush1.bf16.msra.mxu1 %v8731_v9  ;;  %6389 = vmatprep.subr.bf16.mxu0 %v8736_v12  ;;  %v8809_v8 = vld [vmem:[#allocation7 + $0xdc0] ss:$72 sps:$4 sm:$0xff]   ;;  %v8814_v19 = vld [vmem:[#allocation7 + $0x1634] ss:$72 sps:$4 sm:$0xff]   ;;  %v8812_v9 = vld [vmem:[#allocation7 + $0x1630] ss:$72 sps:$4 sm:$0xff]  }
 0x3a7   :  { %v7552_v25 = vpack.c.bf16 %v6123_v20, %v6121_v17  ;;  %6432 = vmatprep.subr.bf16.mxu1 %v8739_v10  ;;  %v8817_v12 = vld [vmem:[#allocation7 + $0x15a4] ss:$72 sps:$4 sm:$0xff]   ;;  %v8815_v14 = vld [vmem:[#allocation7 + $0x15a0] ss:$72 sps:$4 sm:$0xff]   ;;  %v8820_v15 = vld [vmem:[#allocation7 + $0x1514] ss:$72 sps:$4 sm:$0xff]  }
 0x3a8   :  { %v8818_v10 = vld [vmem:[#allocation7 + $0x1510] ss:$72 sps:$4 sm:$0xff]   ;;  %v8823_v16 = vld [vmem:[#allocation7 + $0x1484] ss:$72 sps:$4 sm:$0xff]   ;;  %v8821_v17 = vld [vmem:[#allocation7 + $0x1480] ss:$72 sps:$4 sm:$0xff]  }
 0x3a9   :  { %6634 = vst [vmem:[#allocation8 + $0x70] sm:$0xff] %v7552_v25  ;;  %6390 = vmatpush1.bf16.msra.mxu0 %v8734_v21  ;;  %v8826_v20 = vld [vmem:[#allocation7 + $0x13f4] ss:$72 sps:$4 sm:$0xff]   ;;  %v8824_v21 = vld [vmem:[#allocation7 + $0x13f0] ss:$72 sps:$4 sm:$0xff]  }
 0x3aa   :  { %6433 = vmatpush1.bf16.msra.mxu1 %v8737_v23  ;;  %6391 = vmatprep.subr.bf16.mxu0 %v8742_v24  ;;  %v8832_v23 = vld [vmem:[#allocation7 + $0x12d4] ss:$72 sps:$4 sm:$0xff]   ;;  %v8835_v24 = vld [vmem:[#allocation7 + $0x1244] ss:$72 sps:$4 sm:$0xff]   ;;  %v8833_v25 = vld [vmem:[#allocation7 + $0x1240] ss:$72 sps:$4 sm:$0xff]  }
 0x3ab   :  { %6434 = vmatprep.subr.bf16.mxu1 %v8745_v26  ;;  %v8838_v26 = vld [vmem:[#allocation7 + $0x1ab4] ss:$72 sps:$4 sm:$0xff]  }
 0x3ad   :  { %6392 = vmatpush1.bf16.msra.mxu0 %v8740_v28  ;;  %v8836_v28 = vld [vmem:[#allocation7 + $0x1ab0] ss:$72 sps:$4 sm:$0xff]  }
 0x3ae   :  { %6435 = vmatpush1.bf16.msra.mxu1 %v8743_v29  ;;  %6393 = vmatprep.subr.bf16.mxu0 %v8748_v30  ;;  %v8841_v29 = vld [vmem:[#allocation7 + $0x1a24] ss:$72 sps:$4 sm:$0xff]   ;;  %v8839_v30 = vld [vmem:[#allocation7 + $0x1a20] ss:$72 sps:$4 sm:$0xff]  }
 0x3af   :  { %6436 = vmatprep.subr.bf16.mxu1 %v8751_v31  ;;  %v8844_v31 = vld [vmem:[#allocation7 + $0x1994] ss:$72 sps:$4 sm:$0xff]  }
 0x3b1   :  { %6394 = vmatpush1.bf16.msra.mxu0 %v8746_v4  ;;  %v8842_v4 = vld [vmem:[#allocation7 + $0x1990] ss:$72 sps:$4 sm:$0xff]  }
 0x3b2   :  { %6437 = vmatpush1.bf16.msra.mxu1 %v8749_v6  ;;  %6395 = vmatprep.subr.bf16.mxu0 %v8754_v32  ;;  %v8847_v6 = vld [vmem:[#allocation7 + $0x1904] ss:$72 sps:$4 sm:$0xff]   ;;  %v8845_v32 = vld [vmem:[#allocation7 + $0x1900] ss:$72 sps:$4 sm:$0xff]  }
 0x3b3   :  { %6438 = vmatprep.subr.bf16.mxu1 %v8757_v3  ;;  %v8850_v3 = vld [vmem:[#allocation7 + $0x1874] ss:$72 sps:$4 sm:$0xff]  }
 0x3b5   :  { %6396 = vmatpush1.bf16.msra.mxu0 %v8752_v5  ;;  %v8848_v5 = vld [vmem:[#allocation7 + $0x1870] ss:$72 sps:$4 sm:$0xff]  }
 0x3b6   :  { %6439 = vmatpush1.bf16.msra.mxu1 %v8755_v33  ;;  %6397 = vmatprep.subr.bf16.mxu0 %v8760_v34  ;;  %v8853_v33 = vld [vmem:[#allocation7 + $0x17e4] ss:$72 sps:$4 sm:$0xff]   ;;  %v8851_v34 = vld [vmem:[#allocation7 + $0x17e0] ss:$72 sps:$4 sm:$0xff]  }
 0x3b7   :  { %6440 = vmatprep.subr.bf16.mxu1 %v8763_v13 }
 0x3b9   :  { %6398 = vmatpush1.bf16.msra.mxu0 %v8758_v36  ;;  %v8856_v36 = vld [vmem:[#allocation7 + $0x1754] ss:$72 sps:$4 sm:$0xff]  }
 0x3ba   :  { %6441 = vmatpush1.bf16.msra.mxu1 %v8761_v37  ;;  %6399 = vmatprep.subr.bf16.mxu0 %v8766_v38  ;;  %v8854_v37 = vld [vmem:[#allocation7 + $0x1750] ss:$72 sps:$4 sm:$0xff]  }
 0x3bb   :  { %6442 = vmatprep.subr.bf16.mxu1 %v8769_v39 }
 0x3bd   :  { %6400 = vmatpush2.bf16.msra.mxu0 %v8764_v22  ;;  %v8859_v22 = vld [vmem:[#allocation7 + $0x16c4] ss:$72 sps:$4 sm:$0xff]  }
 0x3be   :  { %6443 = vmatpush2.bf16.msra.mxu1 %v8767_v40  ;;  %6401 = vmatprep.subr.bf16.mxu0 %v8772_v41  ;;  %v8857_v40 = vld [vmem:[#allocation7 + $0x16c0] ss:$72 sps:$4 sm:$0xff]  }
 0x3bf   :  { %6444 = vmatprep.subr.bf16.mxu1 %v8775_v42 }
 0x3c1   :  { %6402 = vmatpush2.bf16.msra.mxu0 %v8770_v11 }
 0x3c2   :  { %6445 = vmatpush2.bf16.msra.mxu1 %v8773_v35  ;;  %6403 = vmatprep.subr.bf16.mxu0 %v8778_v45 }
 0x3c3   :  { %6446 = vmatprep.subr.bf16.mxu1 %v8781_v46 }
 0x3c5   :  { %6404 = vmatpush2.bf16.msra.mxu0 %v8776_v47 }
 0x3c6   :  { %6447 = vmatpush2.bf16.msra.mxu1 %v8779_v48  ;;  %6405 = vmatprep.subr.bf16.mxu0 %v8784_v49 }
 0x3c7   :  { %6448 = vmatprep.subr.bf16.mxu1 %v8787_v50 }
 0x3c9   :  { %6406 = vmatpush2.bf16.msra.mxu0 %v8782_v51 }
 0x3ca   :  { %6449 = vmatpush2.bf16.msra.mxu1 %v8785_v52  ;;  %6407 = vmatprep.subr.bf16.mxu0 %v8790_v53 }
 0x3cb   :  { %6450 = vmatprep.subr.bf16.mxu1 %v8793_v54 }
 0x3cd   :  { %6408 = vmatpush2.bf16.msra.mxu0 %v8788_v55 }
 0x3ce   :  { %6451 = vmatpush2.bf16.msra.mxu1 %v8791_v56  ;;  %6409 = vmatprep.subr.bf16.mxu0 %v8796_v57 }
 0x3cf   :  { %6452 = vmatprep.subr.bf16.mxu1 %v8799_v58 }
 0x3d1   :  { %6410 = vmatpush2.bf16.msra.mxu0 %v8794_v59 }
 0x3d2   :  { %6453 = vmatpush2.bf16.msra.mxu1 %v8797_v60  ;;  %6411 = vmatprep.subr.bf16.mxu0 %v8802_v61 }
 0x3d3   :  { %6454 = vmatprep.subr.bf16.mxu1 %v8805_v62 }
 0x3d5   :  { %6412 = vmatpush2.bf16.msra.mxu0 %v8800_v63 }
 0x3d6   :  { %6455 = vmatpush2.bf16.msra.mxu1 %v8803_v0  ;;  %6413 = vmatprep.subr.bf16.mxu0 %v8808_v1 }
 0x3d7   :  { %6456 = vmatprep.subr.bf16.mxu1 %v8811_v2 }
 0x3d9   :  { %6414 = vmatpush2.bf16.msra.mxu0 %v8806_v7 }
 0x3da   :  { %6457 = vmatpush2.bf16.msra.mxu1 %v8809_v8  ;;  %6469 = vmatprep.subr.bf16.mxu0 %v8814_v19 }
 0x3dc   :  { %6416 = vmatmul.mubr.bf16.vlgmr.msra.gmra.mxu0 %v9074_v18  ;;  %v8829_v18 = vld [vmem:[#allocation7 + $0x1364] ss:$72 sps:$4 sm:$0xff]   ;;  %v6159_v13 = vpop.f32.mrf.mxu0 }
 0x3dd   :  { %6459 = vmatmul.mubr.bf16.vlgmr.msra.gmra.mxu1 %v9076_v43  ;;  %6470 = vmatpush1.bf16.msra.mxu0 %v8812_v9  ;;  %v8827_v43 = vld [vmem:[#allocation7 + $0x1360] ss:$72 sps:$4 sm:$0xff]   ;;  %v6202_v38 = vpop.f32.mrf.mxu1 }
 0x3de   :  { %6501 = vmatprep.mubr.bf16.mxu0 %v9084_v44  ;;  %6471 = vmatprep.subr.bf16.mxu0 %v8817_v12  ;;  %v8830_v44 = vld [vmem:[#allocation7 + $0x12d0] ss:$72 sps:$4 sm:$0xff]   ;;  %v6161_v39 = vpop.f32.mrf.mxu0  ;;  %v6203_v46 = vadd.f32 %v6202_v38, %v6159_v13 }
 0x3df   :  { %v6204_v41 = vpop.f32.mrf.mxu1 }
 0x3e0   :  { %v6163_v42 = vpop.f32.mrf.mxu0  ;;  %v6205_v47 = vadd.f32 %v6204_v41, %v6161_v39 }
 0x3e1   :  { %6472 = vmatpush1.bf16.msra.mxu0 %v8815_v14  ;;  %v6206_v11 = vpop.f32.mrf.mxu1 }
 0x3e2   :  { %6473 = vmatprep.subr.bf16.mxu0 %v8820_v15  ;;  %v6165_v35 = vpop.f32.mrf.mxu0  ;;  %v6207_v53 = vadd.f32 %v6206_v11, %v6163_v42 }
 0x3e3   :  { %v6208_v48 = vpop.f32.mrf.mxu1 }
 0x3e4   :  { %v6209_v54 = vadd.f32 %v6208_v48, %v6165_v35 }
 0x3e5   :  { %6474 = vmatpush1.bf16.msra.mxu0 %v8818_v10 }
 0x3e6   :  { %6475 = vmatprep.subr.bf16.mxu0 %v8823_v16 }
 0x3e9   :  { %6476 = vmatpush1.bf16.msra.mxu0 %v8821_v17 }
 0x3ea   :  { %6477 = vmatprep.subr.bf16.mxu0 %v8826_v20 }
 0x3ed   :  { %6478 = vmatpush1.bf16.msra.mxu0 %v8824_v21 }
 0x3ee   :  { %6479 = vmatprep.subr.bf16.mxu0 %v8829_v18 }
 0x3f1   :  { %6480 = vmatpush1.bf16.msra.mxu0 %v8827_v43 }
 0x3f2   :  { %6481 = vmatprep.subr.bf16.mxu0 %v8832_v23 }
 0x3f5   :  { %6482 = vmatpush1.bf16.msra.mxu0 %v8830_v44 }
 0x3f6   :  { %6483 = vmatprep.subr.bf16.mxu0 %v8835_v24 }
 0x3f9   :  { %6484 = vmatpush1.bf16.msra.mxu0 %v8833_v25 }
 0x3fa   :  { %6485 = vmatprep.subr.bf16.mxu0 %v8838_v26 }
 0x3fd   :  { %6486 = vmatpush2.bf16.msra.mxu0 %v8836_v28 }
 0x3fe   :  { %6487 = vmatprep.subr.bf16.mxu0 %v8841_v29 }
 0x401   :  { %6488 = vmatpush2.bf16.msra.mxu0 %v8839_v30 }
 0x402   :  { %6489 = vmatprep.subr.bf16.mxu0 %v8844_v31 }
 0x405   :  { %6490 = vmatpush2.bf16.msra.mxu0 %v8842_v4 }
 0x406   :  { %6491 = vmatprep.subr.bf16.mxu0 %v8847_v6 }
 0x409   :  { %6492 = vmatpush2.bf16.msra.mxu0 %v8845_v32 }
 0x40a   :  { %6493 = vmatprep.subr.bf16.mxu0 %v8850_v3 }
 0x40d   :  { %6494 = vmatpush2.bf16.msra.mxu0 %v8848_v5 }
 0x40e   :  { %6495 = vmatprep.subr.bf16.mxu0 %v8853_v33 }
 0x411   :  { %6496 = vmatpush2.bf16.msra.mxu0 %v8851_v34 }
 0x412   :  { %6497 = vmatprep.subr.bf16.mxu0 %v8856_v36 }
 0x415   :  { %6498 = vmatpush2.bf16.msra.mxu0 %v8854_v37 }
 0x416   :  { %6499 = vmatprep.subr.bf16.mxu0 %v8859_v22 }
 0x419   :  { %6500 = vmatpush2.bf16.msra.mxu0 %v8857_v40 }
 0x41c   :  { %v6245_v45 = vpop.f32.mrf.mxu0  ;;  %6502 = vmatmul.mubr.bf16.vlgmr.msra.gmra.mxu0 %v9078_v27 }
 0x41d   :  { %v6246_v50 = vadd.f32 %v6245_v45, %v6203_v46  ;;  %v6288_v60 = vpop.f32.mrf.mxu1 }
 0x41e   :  { %v6247_v49 = vpop.f32.mrf.mxu0 }
 0x41f   :  { %v6248_v51 = vadd.f32 %v6247_v49, %v6205_v47  ;;  %v6290_v61 = vpop.f32.mrf.mxu1 }
 0x420   :  { %v6249_v52 = vpop.f32.mrf.mxu0 }
 0x421   :  { %v7544_v55 = vpack.c.bf16 %v6248_v51, %v6246_v50  ;;  %v6250_v57 = vadd.f32 %v6249_v52, %v6207_v53  ;;  %v6292_v62 = vpop.f32.mrf.mxu1 }
 0x422   :  { %v6251_v56 = vpop.f32.mrf.mxu0 }
 0x423   :  { %6626 = vst [vmem:[#allocation8 + $0x30] sm:$0xff] %v7544_v55  ;;  %v6252_v58 = vadd.f32 %v6251_v56, %v6209_v54  ;;  %v6294_v27 = vpop.f32.mrf.mxu1 }
 0x425   :  { %v7553_v59 = vpack.c.bf16 %v6252_v58, %v6250_v57 }
 0x427   :  { %6635 = vst [vmem:[#allocation8 + $0x78] sm:$0xff] %v7553_v59 }
 0x45c   :  { %v6331_v63 = vpop.f32.mrf.mxu0 }
 0x45d   :  { %v6332_v0 = vadd.f32 %v6331_v63, %v6288_v60  ;;  %v6374_v1 = vpop.f32.mrf.mxu1 }
 0x45e   :  { %v6333_v2 = vpop.f32.mrf.mxu0 }
 0x45f   :  { %v6334_v7 = vadd.f32 %v6333_v2, %v6290_v61  ;;  %v6376_v8 = vpop.f32.mrf.mxu1  ;;  %v6375_v9 = vadd.f32 %v6374_v1, %v6332_v0 }
 0x460   :  { %v6335_v19 = vpop.f32.mrf.mxu0 }
 0x461   :  { %v6377_v12 = vadd.f32 %v6376_v8, %v6334_v7  ;;  %v6336_v14 = vadd.f32 %v6335_v19, %v6292_v62  ;;  %v6378_v15 = vpop.f32.mrf.mxu1 }
 0x462   :  { %v6337_v10 = vpop.f32.mrf.mxu0 }
 0x463   :  { %v7545_v16 = vpack.c.bf16 %v6377_v12, %v6375_v9  ;;  %v6338_v17 = vadd.f32 %v6337_v10, %v6294_v27  ;;  %v6380_v20 = vpop.f32.mrf.mxu1  ;;  %v6379_v21 = vadd.f32 %v6378_v15, %v6336_v14 }
 0x465   :  { %6627 = vst [vmem:[#allocation8 + $0x38] sm:$0xff] %v7545_v16  ;;  %v6381_v18 = vadd.f32 %v6380_v20, %v6338_v17 }
 0x467   :  { %v7554_v43 = vpack.c.bf16 %v6381_v18, %v6379_v21 }
 0x469   :  { %6636 = vst [vmem:[#allocation8 + $0x80] sm:$0xff] %v7554_v43 }
 0x49c   :  { %v6417_v23 = vpop.f32.mrf.mxu0 }
 0x49d   :  { %v6460_v44 = vpop.f32.mrf.mxu1 }
 0x49e   :  { %v6419_v24 = vpop.f32.mrf.mxu0  ;;  %v6461_v31 = vadd.f32 %v6460_v44, %v6417_v23 }
 0x49f   :  { %v6462_v25 = vpop.f32.mrf.mxu1 }
 0x4a0   :  { %v6421_v26 = vpop.f32.mrf.mxu0  ;;  %v6463_v4 = vadd.f32 %v6462_v25, %v6419_v24 }
 0x4a1   :  { %v6464_v28 = vpop.f32.mrf.mxu1 }
 0x4a2   :  { %v6423_v29 = vpop.f32.mrf.mxu0  ;;  %v6465_v34 = vadd.f32 %v6464_v28, %v6421_v26 }
 0x4a3   :  { %v6466_v6 = vpop.f32.mrf.mxu1 }
 0x4a4   :  { %v6467_v13 = vadd.f32 %v6466_v6, %v6423_v29 }
 0x4dc   :  { %v6503_v30 = vpop.f32.mrf.mxu0 }
 0x4dd   :  { %v6504_v3 = vadd.f32 %v6503_v30, %v6461_v31 }
 0x4de   :  { %v6505_v32 = vpop.f32.mrf.mxu0 }
 0x4df   :  { %v6506_v5 = vadd.f32 %v6505_v32, %v6463_v4 }
 0x4e0   :  { %v6507_v33 = vpop.f32.mrf.mxu0 }
 0x4e1   :  { %v7546_v36 = vpack.c.bf16 %v6506_v5, %v6504_v3  ;;  %v6508_v38 = vadd.f32 %v6507_v33, %v6465_v34 }
 0x4e2   :  { %v6509_v37 = vpop.f32.mrf.mxu0 }
 0x4e3   :  { %6628 = vst [vmem:[#allocation8 + $0x40] sm:$0xff] %v7546_v36  ;;  %v6510_v39 = vadd.f32 %v6509_v37, %v6467_v13 }
 0x4e5   :  { %v7555_v22 = vpack.c.bf16 %v6510_v39, %v6508_v38 }
 0x4e7   :  { %6637 = vst [vmem:[#allocation8 + $0x88] sm:$0xff] %v7555_v22 }
 0x4e8   :  { %8935 = shalt.err (!%p8932_p5)
}
 0x4e9   :  { %6649 = dma.vmem_to_hbm [thread:$0]  %s6644_s2, 2304, %s9145_s3, [#allocation4], %s8955_s1, %s8955_s1, %s8956_s27  }
 0x4ea   :  { %8948 = dma.done.wait [#allocation4], 2304  }
 0x4eb   :  { %8949 = vsyncadd [#allocation4], 4294964992 }
 0x4ec   :  { %6653 = vsyncpa [#allocation3], 1 }
 0x4ed   :  { %6654 = vsyncpa [#allocation6], 1 }
 0x4ee   :  { %6655 = vsyncpa [#allocation4], 1 }

</bundles_post_ra>
